<compile_context>
chip_gen: v7x
topology: tpu7x:2x2x1
jax: 0.10.0
libtpu: 0.0.40
codegen_flags: <defaults>
</compile_context>

<pallas_src>
import numpy as np
import jax
import jax.numpy as jnp
from jax import lax
from jax.experimental import pallas as pl
from jax.experimental.pallas import tpu as pltpu

# ---- small synthetic config ----
BATCH = 4
NUM_NEWS = 8
NUM_ENTITY = 8          # E
ENTITY_DIM = 32         # D  (cfg.model.entity_emb_dim)
HEAD_DIM = 8            # cfg.model.head_dim
NUM_HEADS = ENTITY_DIM // HEAD_DIM
ATT_HIDDEN = 32         # cfg.model.attention_hidden_dim (== ENTITY_DIM in this config)
NEWS_DIM = 400
NEWS_PAD = 512          # lane-dense padded output width (multiple of 128)
LN_EPS = 1e-5
SOFTMAX_EPS = 1e-8
NEG_BIAS = -1e30        # additive mask bias: exp(x + NEG_BIAS) == 0 exactly

# News items per grid step (TE = T * NUM_ENTITY = 128 flattened MXU rows).
# Do NOT raise to 32: score/exp/normalize work and live score tensors scale with TE^2.
ITEMS_PER_TILE = 16

# Matmul operand dtype. Keep f32 to match the f32 reference at 2e-3 tolerance;
# flip to jnp.bfloat16 on v6e/v7x for single-pass MXU if ~1e-2 tolerance is acceptable
# (accumulation stays f32 via preferred_element_type).
MATMUL_DTYPE = jnp.float32

# Row indices inside the packed (10, 32) bias/gain array.
(VEC_BQ, VEC_BK, VEC_BV, VEC_G1, VEC_B1,
 VEC_BA1, VEC_WA2T, VEC_BA2, VEC_G2, VEC_B2) = range(10)


def _mm(a, b):
    """MXU matmul with f32 accumulation; operands optionally cast to MATMUL_DTYPE."""
    return jnp.dot(a.astype(MATMUL_DTYPE), b.astype(MATMUL_DTYPE),
                   preferred_element_type=jnp.float32)


def key_entity_kernel(x_ref, m_ref,
                      wq_ref, wk_ref, wv_ref, wa1_ref, wo_ref, bo_ref,
                      vecs_ref, hm_ref, bd_ref, seg_ref,
                      out_ref):
    _, TE, D = x_ref.shape          # TE = T * NUM_ENTITY (128), D = 32
    T = TE // NUM_ENTITY

    x = x_ref[0]                    # (TE, D)  T news items' entities, flattened
    key_mask = m_ref[0]             # (1, TE)  1.0 = valid entity, 0.0 = padding

    # Packed bias / gain vectors (one resident (10,32) tile; static row slices).
    bq = vecs_ref[VEC_BQ:VEC_BQ + 1, :]       # already scaled by 1/sqrt(head_dim)
    bk = vecs_ref[VEC_BK:VEC_BK + 1, :]
    bv = vecs_ref[VEC_BV:VEC_BV + 1, :]
    g1 = vecs_ref[VEC_G1:VEC_G1 + 1, :]
    b1 = vecs_ref[VEC_B1:VEC_B1 + 1, :]
    ba1 = vecs_ref[VEC_BA1:VEC_BA1 + 1, :]
    wa2t = vecs_ref[VEC_WA2T:VEC_WA2T + 1, :]
    ba2 = vecs_ref[VEC_BA2:VEC_BA2 + 1, 0:1]  # (1, 1)
    g2 = vecs_ref[VEC_G2:VEC_G2 + 1, :]
    b2 = vecs_ref[VEC_B2:VEC_B2 + 1, :]

    # Dropout layers are identity at inference time.
    # ---- Q / K / V projections over the whole tile: (TE,D)x(D,D) MXU matmuls ----
    q = _mm(x, wq_ref[...]) + bq    # score scale already folded into wq / bq
    k = _mm(x, wk_ref[...]) + bk
    v = _mm(x, wv_ref[...]) + bv

    # ---- stacked multi-head self-attention (block-diagonal over the T items) ----
    hm = hm_ref[...]                                    # (H*TE, D) per-head lane masks
    qs = jnp.concatenate([q] * NUM_HEADS, axis=0) * hm  # (H*TE, D) head-masked q stack
    # One score matmul for all heads; k^T absorbed into dot_general (no XLU transpose).
    s = lax.dot_general(qs.astype(MATMUL_DTYPE), k.astype(MATMUL_DTYPE),
                        (((1,), (1,)), ((), ())),
                        preferred_element_type=jnp.float32)      # (H*TE, TE)
    # bd_ref: 0 on per-item diagonal blocks, -1e30 elsewhere -> exp gives exact 0.
    # Key mask multiplies after exp (same order as the reference).
    p = jnp.exp(s + bd_ref[...]) * key_mask                      # (H*TE, TE)
    p = p * pl.reciprocal(jnp.sum(p, axis=-1, keepdims=True) + SOFTMAX_EPS,
                          approx=False)
    ctxs = _mm(p, v) * hm                                        # (H*TE, D)
    ctx = ctxs[0:TE]
    for h in range(1, NUM_HEADS):                                # 4-way masked reduce
        ctx = ctx + ctxs[h * TE:(h + 1) * TE]                    # (TE, D)

    # ---- LayerNorm(entity_dim) ----
    mu = jnp.mean(ctx, axis=-1, keepdims=True)
    xc = ctx - mu
    var = jnp.mean(xc * xc, axis=-1, keepdims=True)
    h1 = xc * lax.rsqrt(var + LN_EPS) * g1 + b1                  # (TE, D)

    # ---- AttentionPooling(entity_dim, attention_hidden_dim) over each item ----
    e_act = jnp.tanh(_mm(h1, wa1_ref[...]) + ba1)                # (TE, H)
    score = jnp.sum(e_act * wa2t, axis=-1, keepdims=True) + ba2  # (TE, 1)
    a = jnp.exp(score)                                           # (TE, 1)

    # Per-item segment sum expressed as small matmuls; mask folded into seg.
    seg = seg_ref[...] * key_mask                                # (T, TE)
    num = _mm(seg, a * h1)                                       # (T, D)
    den = _mm(seg, a)                                            # (T, 1)
    pooled = num * pl.reciprocal(den + SOFTMAX_EPS, approx=False)

    # ---- LayerNorm(entity_dim) ----
    mu2 = jnp.mean(pooled, axis=-1, keepdims=True)
    pc = pooled - mu2
    var2 = jnp.mean(pc * pc, axis=-1, keepdims=True)
    h2 = pc * lax.rsqrt(var2 + LN_EPS) * g2 + b2                 # (T, D)

    # ---- Linear(entity_dim -> news_dim, zero-padded to 512 lanes) + LeakyReLU(0.2) ----
    o = _mm(h2, wo_ref[...]) + bo_ref[...]                       # (T, 512) lane-dense
    out_ref[...] = jnp.where(o > 0, o, 0.2 * o)


def key_entity_encoder(entity_input, entity_mask, params, items_per_tile=ITEMS_PER_TILE):
    B, N, E, D = entity_input.shape
    assert E == NUM_ENTITY and D == ENTITY_DIM
    BN = B * N
    T = items_per_tile
    TE = T * E
    HTE = NUM_HEADS * TE

    num_tiles = pl.cdiv(BN, T)
    if num_tiles % 2:            # balance the parallel grid across v7x's two TensorCores
        num_tiles += 1
    BN_pad = num_tiles * T

    x = entity_input.reshape(BN, E, D).astype(jnp.float32)
    # PyTorch casts the mask to .half(); a 0/1 float32 mask is numerically equivalent.
    m = entity_mask.reshape(BN, E).astype(jnp.float32)
    if BN_pad != BN:             # pad to a whole number of tiles; padded items fully masked
        x = jnp.pad(x, ((0, BN_pad - BN), (0, 0), (0, 0)))
        m = jnp.pad(m, ((0, BN_pad - BN), (0, 0)))
    x = x.reshape(num_tiles, TE, D)       # T items flattened per grid step
    m = m.reshape(num_tiles, 1, TE)       # lane-dense key mask per grid step

    # ---- host-side weight prep ----
    inv_sqrt_dk = 1.0 / float(np.sqrt(HEAD_DIM))
    wq = params["wq"] * inv_sqrt_dk                   # fold score scale into q projection
    bq = params["bq"] * inv_sqrt_dk
    wa2t = params["wa2"].T                            # (1, ATT_HIDDEN), no in-kernel .T
    ba2 = jnp.pad(params["ba2"], ((0, 0), (0, ENTITY_DIM - 1)))   # pad (1,1) -> (1,32)
    # Packed bias/gain table (all rows are 32 wide in this config).
    vecs = jnp.concatenate(
        [bq, params["bk"], params["bv"], params["g1"], params["b1"],
         params["ba1"], wa2t, ba2, params["g2"], params["b2"]], axis=0)   # (10, 32)
    wo_pad = jnp.pad(params["wo"], ((0, 0), (0, NEWS_PAD - NEWS_DIM)))
    bo_pad = jnp.pad(params["bo"], ((0, 0), (0, NEWS_PAD - NEWS_DIM)))

    # ---- host-precomputed masks (resident in VMEM via constant index maps) ----
    col = jnp.arange(D)[None, :]
    head_of_row = (jnp.arange(HTE) // TE)[:, None]
    hm_stack = (col // HEAD_DIM == head_of_row).astype(jnp.float32)       # (HTE, D)
    qi = ((jnp.arange(HTE) % TE) // E)[:, None]
    kj = (jnp.arange(TE) // E)[None, :]
    bd_bias = jnp.where(qi == kj, 0.0, NEG_BIAS).astype(jnp.float32)      # (HTE, TE)
    segbase = (kj == jnp.arange(T)[:, None]).astype(jnp.float32)          # (T, TE)

    resident = [wq, params["wk"], params["wv"], params["wa1"], wo_pad, bo_pad,
                vecs, hm_stack, bd_bias, segbase]

    in_specs = [
        pl.BlockSpec((1, TE, D), lambda i: (i, 0, 0)),   # one tile of T news items
        pl.BlockSpec((1, 1, TE), lambda i: (i, 0, 0)),   # its entity mask (lane-dense)
    ] + [pl.BlockSpec(w.shape, lambda i: (0, 0)) for w in resident]   # weights stay resident

    out = pl.pallas_call(
        key_entity_kernel,
        out_shape=jax.ShapeDtypeStruct((BN_pad, NEWS_PAD), jnp.float32),
        grid=(num_tiles,),
        in_specs=in_specs,
        out_specs=pl.BlockSpec((T, NEWS_PAD), lambda i: (i, 0)),
        compiler_params=pltpu.CompilerParams(dimension_semantics=("parallel",)),
    )(x, m, *resident)

    return out[:BN, :NEWS_DIM].reshape(B, N, NEWS_DIM)


def make_params(key):
    ks = jax.random.split(key, 6)

    def lin(k, fan_in, w_shape, b_shape):
        kw, kb = jax.random.split(k)
        bound = 1.0 / np.sqrt(fan_in)
        w = jax.random.uniform(kw, w_shape, jnp.float32, -bound, bound)
        b = jax.random.uniform(kb, b_shape, jnp.float32, -bound, bound)
        return w, b

    D, H = ENTITY_DIM, ATT_HIDDEN
    wq, bq = lin(ks[0], D, (D, D), (1, D))
    wk, bk = lin(ks[1], D, (D, D), (1, D))
    wv, bv = lin(ks[2], D, (D, D), (1, D))
    wa1, ba1 = lin(ks[3], D, (D, H), (1, H))
    wa2, ba2 = lin(ks[4], H, (H, 1), (1, 1))
    wo, bo = lin(ks[5], D, (D, NEWS_DIM), (1, NEWS_DIM))
    return dict(
        wq=wq, bq=bq, wk=wk, bk=bk, wv=wv, bv=bv,
        g1=jnp.ones((1, D), jnp.float32), b1=jnp.zeros((1, D), jnp.float32),
        wa1=wa1, ba1=ba1, wa2=wa2, ba2=ba2,
        g2=jnp.ones((1, D), jnp.float32), b2=jnp.zeros((1, D), jnp.float32),
        wo=wo, bo=bo,
    )


def reference(entity_input, entity_mask, p):
    """Pure-JAX reference of the same forward pass (for correctness check)."""
    B, N, E, D = entity_input.shape
    BN = B * N
    x = entity_input.reshape(BN, E, D).astype(jnp.float32)
    m = entity_mask.reshape(BN, E).astype(jnp.float32)
    hp = jax.lax.Precision.HIGHEST

    q = jnp.einsum("bed,df->bef", x, p["wq"], precision=hp) + p["bq"]
    k = jnp.einsum("bed,df->bef", x, p["wk"], precision=hp) + p["bk"]
    v = jnp.einsum("bed,df->bef", x, p["wv"], precision=hp) + p["bv"]
    qh = q.reshape(BN, E, NUM_HEADS, HEAD_DIM)
    kh = k.reshape(BN, E, NUM_HEADS, HEAD_DIM)
    vh = v.reshape(BN, E, NUM_HEADS, HEAD_DIM)
    s = jnp.einsum("beht,bfht->bhef", qh, kh, precision=hp) / np.sqrt(HEAD_DIM)
    pr = jnp.exp(s) * m[:, None, None, :]
    pr = pr / (pr.sum(-1, keepdims=True) + SOFTMAX_EPS)
    ctx = jnp.einsum("bhef,bfht->beht", pr, vh, precision=hp).reshape(BN, E, D)

    mu = ctx.mean(-1, keepdims=True)
    var = ((ctx - mu) ** 2).mean(-1, keepdims=True)
    h1 = (ctx - mu) / jnp.sqrt(var + LN_EPS) * p["g1"] + p["b1"]

    e = jnp.tanh(jnp.einsum("bed,dh->beh", h1, p["wa1"], precision=hp) + p["ba1"])
    alpha = jnp.einsum("beh,ho->beo", e, p["wa2"], precision=hp) + p["ba2"]
    alpha = jnp.exp(alpha) * m[:, :, None]
    alpha = alpha / (alpha.sum(axis=1, keepdims=True) + SOFTMAX_EPS)
    pooled = jnp.sum(alpha * h1, axis=1)

    mu2 = pooled.mean(-1, keepdims=True)
    var2 = ((pooled - mu2) ** 2).mean(-1, keepdims=True)
    h2 = (pooled - mu2) / jnp.sqrt(var2 + LN_EPS) * p["g2"] + p["b2"]

    o = jnp.einsum("bd,dn->bn", h2, p["wo"], precision=hp) + p["bo"]
    o = jnp.where(o > 0, o, 0.2 * o)
    return o.reshape(B, N, NEWS_DIM)


if __name__ == "__main__":
    key = jax.random.PRNGKey(0)
    kx, kp = jax.random.split(key)

    entity_input = jax.random.normal(
        kx, (BATCH, NUM_NEWS, NUM_ENTITY, ENTITY_DIM), jnp.float32)
    lengths = 1 + (jnp.arange(BATCH * NUM_NEWS) % NUM_ENTITY)
    entity_mask = (jnp.arange(NUM_ENTITY)[None, :] < lengths[:, None]).astype(jnp.float32)
    entity_mask = entity_mask.reshape(BATCH, NUM_NEWS, NUM_ENTITY)

    params = make_params(kp)

    out = key_entity_encoder(entity_input, entity_mask, params)
    out = jax.block_until_ready(out)
    assert out.shape == (BATCH, NUM_NEWS, NEWS_DIM)

    ref = reference(entity_input, entity_mask, params)
    np.testing.assert_allclose(np.asarray(out), np.asarray(ref), rtol=2e-3, atol=2e-3)

    print("KERNEL_OK")
</pallas_src>

<mosaic_0001>
module attributes {stable_mosaic.version = 11 : i64} {
  func.func @key_entity_kernel(%arg0: i32, %arg1: memref<1x128x32xf32, #tpu.memory_space<vmem>>, %arg2: memref<1x1x128xf32, #tpu.memory_space<vmem>>, %arg3: memref<32x32xf32, #tpu.memory_space<vmem>>, %arg4: memref<32x32xf32, #tpu.memory_space<vmem>>, %arg5: memref<32x32xf32, #tpu.memory_space<vmem>>, %arg6: memref<32x32xf32, #tpu.memory_space<vmem>>, %arg7: memref<32x512xf32, #tpu.memory_space<vmem>>, %arg8: memref<1x512xf32, #tpu.memory_space<vmem>>, %arg9: memref<10x32xf32, #tpu.memory_space<vmem>>, %arg10: memref<512x32xf32, #tpu.memory_space<vmem>>, %arg11: memref<512x128xf32, #tpu.memory_space<vmem>>, %arg12: memref<16x128xf32, #tpu.memory_space<vmem>>, %arg13: memref<16x512xf32, #tpu.memory_space<vmem>>) attributes {dimension_semantics = [#tpu.dimension_semantics<parallel>], iteration_bounds = array<i64: 2>, scalar_prefetch = 0 : i64, scratch_operands = 0 : i64, tpu.core_type = #tpu.core_type<tc>, window_params = [{transform_indices = @transform_0, window_bounds = array<i64: 1, 128, 32>}, {transform_indices = @transform_1, window_bounds = array<i64: 1, 1, 128>}, {pipeline_mode = #tpu.pipeline_mode<synchronous>, transform_indices = @transform_2, window_bounds = array<i64: 32, 32>}, {pipeline_mode = #tpu.pipeline_mode<synchronous>, transform_indices = @transform_3, window_bounds = array<i64: 32, 32>}, {pipeline_mode = #tpu.pipeline_mode<synchronous>, transform_indices = @transform_4, window_bounds = array<i64: 32, 32>}, {pipeline_mode = #tpu.pipeline_mode<synchronous>, transform_indices = @transform_5, window_bounds = array<i64: 32, 32>}, {pipeline_mode = #tpu.pipeline_mode<synchronous>, transform_indices = @transform_6, window_bounds = array<i64: 32, 512>}, {pipeline_mode = #tpu.pipeline_mode<synchronous>, transform_indices = @transform_7, window_bounds = array<i64: 1, 512>}, {pipeline_mode = #tpu.pipeline_mode<synchronous>, transform_indices = @transform_8, window_bounds = array<i64: 10, 32>}, {pipeline_mode = #tpu.pipeline_mode<synchronous>, transform_indices = @transform_9, window_bounds = array<i64: 512, 32>}, {pipeline_mode = #tpu.pipeline_mode<synchronous>, transform_indices = @transform_10, window_bounds = array<i64: 512, 128>}, {pipeline_mode = #tpu.pipeline_mode<synchronous>, transform_indices = @transform_11, window_bounds = array<i64: 16, 128>}, {transform_indices = @transform_12, window_bounds = array<i64: 16, 512>}]} {
    %c0 = arith.constant 0 : index
    %c0_0 = arith.constant 0 : index
    %c0_1 = arith.constant 0 : index
    %0 = vector.load %arg1[%c0, %c0_0, %c0_1] : memref<1x128x32xf32, #tpu.memory_space<vmem>>, vector<1x128x32xf32>
    %1 = vector.shape_cast %0 : vector<1x128x32xf32> to vector<128x32xf32>
    %c0_2 = arith.constant 0 : index
    %c0_3 = arith.constant 0 : index
    %c0_4 = arith.constant 0 : index
    %2 = vector.load %arg2[%c0_2, %c0_3, %c0_4] : memref<1x1x128xf32, #tpu.memory_space<vmem>>, vector<1x1x128xf32>
    %3 = vector.shape_cast %2 : vector<1x1x128xf32> to vector<1x128xf32>
    %c0_5 = arith.constant 0 : index
    %c0_6 = arith.constant 0 : index
    %4 = vector.load %arg9[%c0_5, %c0_6] : memref<10x32xf32, #tpu.memory_space<vmem>>, vector<1x32xf32>
    %c1 = arith.constant 1 : index
    %c0_7 = arith.constant 0 : index
    %5 = vector.load %arg9[%c1, %c0_7] : memref<10x32xf32, #tpu.memory_space<vmem>>, vector<1x32xf32>
    %c2 = arith.constant 2 : index
    %c0_8 = arith.constant 0 : index
    %6 = vector.load %arg9[%c2, %c0_8] : memref<10x32xf32, #tpu.memory_space<vmem>>, vector<1x32xf32>
    %c3 = arith.constant 3 : index
    %c0_9 = arith.constant 0 : index
    %7 = vector.load %arg9[%c3, %c0_9] : memref<10x32xf32, #tpu.memory_space<vmem>>, vector<1x32xf32>
    %c4 = arith.constant 4 : index
    %c0_10 = arith.constant 0 : index
    %8 = vector.load %arg9[%c4, %c0_10] : memref<10x32xf32, #tpu.memory_space<vmem>>, vector<1x32xf32>
    %c5 = arith.constant 5 : index
    %c0_11 = arith.constant 0 : index
    %9 = vector.load %arg9[%c5, %c0_11] : memref<10x32xf32, #tpu.memory_space<vmem>>, vector<1x32xf32>
    %c6 = arith.constant 6 : index
    %c0_12 = arith.constant 0 : index
    %10 = vector.load %arg9[%c6, %c0_12] : memref<10x32xf32, #tpu.memory_space<vmem>>, vector<1x32xf32>
    %c7 = arith.constant 7 : index
    %c0_13 = arith.constant 0 : index
    %11 = vector.load %arg9[%c7, %c0_13] : memref<10x32xf32, #tpu.memory_space<vmem>>, vector<1x1xf32>
    %c8 = arith.constant 8 : index
    %c0_14 = arith.constant 0 : index
    %12 = vector.load %arg9[%c8, %c0_14] : memref<10x32xf32, #tpu.memory_space<vmem>>, vector<1x32xf32>
    %c9 = arith.constant 9 : index
    %c0_15 = arith.constant 0 : index
    %13 = vector.load %arg9[%c9, %c0_15] : memref<10x32xf32, #tpu.memory_space<vmem>>, vector<1x32xf32>
    %c0_16 = arith.constant 0 : index
    %c0_17 = arith.constant 0 : index
    %14 = vector.load %arg3[%c0_16, %c0_17] : memref<32x32xf32, #tpu.memory_space<vmem>>, vector<32x32xf32>
    %cst = arith.constant dense<0.000000e+00> : vector<128x32xf32>
    %15 = tpu.matmul %1, %14, %cst {dimension_numbers = #tpu.dot_dimension_numbers<[1], [0], [0], [1], [0, 0, 1, 1], [], []>} : vector<128x32xf32>, vector<32x32xf32>, vector<128x32xf32> -> vector<128x32xf32>
    %16 = vector.broadcast %4 : vector<1x32xf32> to vector<128x32xf32>
    %17 = arith.addf %15, %16 : vector<128x32xf32>
    %c0_18 = arith.constant 0 : index
    %c0_19 = arith.constant 0 : index
    %18 = vector.load %arg4[%c0_18, %c0_19] : memref<32x32xf32, #tpu.memory_space<vmem>>, vector<32x32xf32>
    %cst_20 = arith.constant dense<0.000000e+00> : vector<128x32xf32>
    %19 = tpu.matmul %1, %18, %cst_20 {dimension_numbers = #tpu.dot_dimension_numbers<[1], [0], [0], [1], [0, 0, 1, 1], [], []>} : vector<128x32xf32>, vector<32x32xf32>, vector<128x32xf32> -> vector<128x32xf32>
    %20 = vector.broadcast %5 : vector<1x32xf32> to vector<128x32xf32>
    %21 = arith.addf %19, %20 : vector<128x32xf32>
    %c0_21 = arith.constant 0 : index
    %c0_22 = arith.constant 0 : index
    %22 = vector.load %arg5[%c0_21, %c0_22] : memref<32x32xf32, #tpu.memory_space<vmem>>, vector<32x32xf32>
    %cst_23 = arith.constant dense<0.000000e+00> : vector<128x32xf32>
    %23 = tpu.matmul %1, %22, %cst_23 {dimension_numbers = #tpu.dot_dimension_numbers<[1], [0], [0], [1], [0, 0, 1, 1], [], []>} : vector<128x32xf32>, vector<32x32xf32>, vector<128x32xf32> -> vector<128x32xf32>
    %24 = vector.broadcast %6 : vector<1x32xf32> to vector<128x32xf32>
    %25 = arith.addf %23, %24 : vector<128x32xf32>
    %c0_24 = arith.constant 0 : index
    %c0_25 = arith.constant 0 : index
    %26 = vector.load %arg10[%c0_24, %c0_25] : memref<512x32xf32, #tpu.memory_space<vmem>>, vector<512x32xf32>
    %27 = tpu.concatenate %17, %17, %17, %17 in 0 : vector<128x32xf32>, vector<128x32xf32>, vector<128x32xf32>, vector<128x32xf32> -> vector<512x32xf32>
    %28 = arith.mulf %27, %26 : vector<512x32xf32>
    %cst_26 = arith.constant dense<0.000000e+00> : vector<512x128xf32>
    %29 = tpu.matmul %28, %21, %cst_26 {dimension_numbers = #tpu.dot_dimension_numbers<[1], [1], [0], [0], [0, 0, 1, 0], [], []>} : vector<512x32xf32>, vector<128x32xf32>, vector<512x128xf32> -> vector<512x128xf32>
    %c0_27 = arith.constant 0 : index
    %c0_28 = arith.constant 0 : index
    %30 = vector.load %arg11[%c0_27, %c0_28] : memref<512x128xf32, #tpu.memory_space<vmem>>, vector<512x128xf32>
    %31 = arith.addf %29, %30 : vector<512x128xf32>
    %32 = math.exp %31 : vector<512x128xf32>
    %33 = vector.broadcast %3 : vector<1x128xf32> to vector<512x128xf32>
    %34 = arith.mulf %32, %33 : vector<512x128xf32>
    %cst_29 = arith.constant dense<0.000000e+00> : vector<512xf32>
    %35 = vector.multi_reduction <add>, %34, %cst_29 [1] : vector<512x128xf32> to vector<512xf32>
    %36 = vector.shape_cast %35 : vector<512xf32> to vector<512x1xf32>
    %cst_30 = arith.constant 9.99999993E-9 : f32
    %37 = vector.broadcast %cst_30 : f32 to vector<512x1xf32>
    %38 = arith.addf %36, %37 : vector<512x1xf32>
    %39 = tpu.reciprocal %38 : vector<512x1xf32> -> vector<512x1xf32>
    %40 = vector.broadcast %39 : vector<512x1xf32> to vector<512x128xf32>
    %41 = arith.mulf %34, %40 : vector<512x128xf32>
    %cst_31 = arith.constant dense<0.000000e+00> : vector<512x32xf32>
    %42 = tpu.matmul %41, %25, %cst_31 {dimension_numbers = #tpu.dot_dimension_numbers<[1], [0], [0], [1], [0, 0, 1, 1], [], []>} : vector<512x128xf32>, vector<128x32xf32>, vector<512x32xf32> -> vector<512x32xf32>
    %43 = arith.mulf %42, %26 : vector<512x32xf32>
    %44 = vector.extract_strided_slice %43 {offsets = [0, 0], sizes = [128, 32], strides = [1, 1]} : vector<512x32xf32> to vector<128x32xf32>
    %45 = vector.extract_strided_slice %43 {offsets = [128, 0], sizes = [128, 32], strides = [1, 1]} : vector<512x32xf32> to vector<128x32xf32>
    %46 = arith.addf %44, %45 : vector<128x32xf32>
    %47 = vector.extract_strided_slice %43 {offsets = [256, 0], sizes = [128, 32], strides = [1, 1]} : vector<512x32xf32> to vector<128x32xf32>
    %48 = arith.addf %46, %47 : vector<128x32xf32>
    %49 = vector.extract_strided_slice %43 {offsets = [384, 0], sizes = [128, 32], strides = [1, 1]} : vector<512x32xf32> to vector<128x32xf32>
    %50 = arith.addf %48, %49 : vector<128x32xf32>
    %cst_32 = arith.constant dense<0.000000e+00> : vector<128xf32>
    %51 = vector.multi_reduction <add>, %50, %cst_32 [1] : vector<128x32xf32> to vector<128xf32>
    %52 = vector.shape_cast %51 : vector<128xf32> to vector<128x1xf32>
    %cst_33 = arith.constant 3.200000e+01 : f32
    %53 = vector.broadcast %cst_33 : f32 to vector<128x1xf32>
    %54 = arith.divf %52, %53 : vector<128x1xf32>
    %55 = vector.broadcast %54 : vector<128x1xf32> to vector<128x32xf32>
    %56 = arith.subf %50, %55 : vector<128x32xf32>
    %57 = arith.mulf %56, %56 : vector<128x32xf32>
    %cst_34 = arith.constant dense<0.000000e+00> : vector<128xf32>
    %58 = vector.multi_reduction <add>, %57, %cst_34 [1] : vector<128x32xf32> to vector<128xf32>
    %59 = vector.shape_cast %58 : vector<128xf32> to vector<128x1xf32>
    %cst_35 = arith.constant 3.200000e+01 : f32
    %60 = vector.broadcast %cst_35 : f32 to vector<128x1xf32>
    %61 = arith.divf %59, %60 : vector<128x1xf32>
    %cst_36 = arith.constant 9.99999974E-6 : f32
    %62 = vector.broadcast %cst_36 : f32 to vector<128x1xf32>
    %63 = arith.addf %61, %62 : vector<128x1xf32>
    %64 = math.rsqrt %63 : vector<128x1xf32>
    %65 = vector.broadcast %64 : vector<128x1xf32> to vector<128x32xf32>
    %66 = arith.mulf %56, %65 : vector<128x32xf32>
    %67 = vector.broadcast %7 : vector<1x32xf32> to vector<128x32xf32>
    %68 = arith.mulf %66, %67 : vector<128x32xf32>
    %69 = vector.broadcast %8 : vector<1x32xf32> to vector<128x32xf32>
    %70 = arith.addf %68, %69 : vector<128x32xf32>
    %c0_37 = arith.constant 0 : index
    %c0_38 = arith.constant 0 : index
    %71 = vector.load %arg6[%c0_37, %c0_38] : memref<32x32xf32, #tpu.memory_space<vmem>>, vector<32x32xf32>
    %cst_39 = arith.constant dense<0.000000e+00> : vector<128x32xf32>
    %72 = tpu.matmul %70, %71, %cst_39 {dimension_numbers = #tpu.dot_dimension_numbers<[1], [0], [0], [1], [0, 0, 1, 1], [], []>} : vector<128x32xf32>, vector<32x32xf32>, vector<128x32xf32> -> vector<128x32xf32>
    %73 = vector.broadcast %9 : vector<1x32xf32> to vector<128x32xf32>
    %74 = arith.addf %72, %73 : vector<128x32xf32>
    %75 = math.tanh %74 : vector<128x32xf32>
    %76 = vector.broadcast %10 : vector<1x32xf32> to vector<128x32xf32>
    %77 = arith.mulf %75, %76 : vector<128x32xf32>
    %cst_40 = arith.constant dense<0.000000e+00> : vector<128xf32>
    %78 = vector.multi_reduction <add>, %77, %cst_40 [1] : vector<128x32xf32> to vector<128xf32>
    %79 = vector.shape_cast %78 : vector<128xf32> to vector<128x1xf32>
    %80 = vector.broadcast %11 : vector<1x1xf32> to vector<128x1xf32>
    %81 = arith.addf %79, %80 : vector<128x1xf32>
    %82 = math.exp %81 : vector<128x1xf32>
    %c0_41 = arith.constant 0 : index
    %c0_42 = arith.constant 0 : index
    %83 = vector.load %arg12[%c0_41, %c0_42] : memref<16x128xf32, #tpu.memory_space<vmem>>, vector<16x128xf32>
    %84 = vector.broadcast %3 : vector<1x128xf32> to vector<16x128xf32>
    %85 = arith.mulf %83, %84 : vector<16x128xf32>
    %86 = vector.broadcast %82 : vector<128x1xf32> to vector<128x32xf32>
    %87 = arith.mulf %86, %70 : vector<128x32xf32>
    %cst_43 = arith.constant dense<0.000000e+00> : vector<16x32xf32>
    %88 = tpu.matmul %85, %87, %cst_43 {dimension_numbers = #tpu.dot_dimension_numbers<[1], [0], [0], [1], [0, 0, 1, 1], [], []>} : vector<16x128xf32>, vector<128x32xf32>, vector<16x32xf32> -> vector<16x32xf32>
    %cst_44 = arith.constant dense<0.000000e+00> : vector<16x1xf32>
    %89 = tpu.matmul %85, %82, %cst_44 {dimension_numbers = #tpu.dot_dimension_numbers<[1], [0], [0], [1], [0, 0, 1, 1], [], []>} : vector<16x128xf32>, vector<128x1xf32>, vector<16x1xf32> -> vector<16x1xf32>
    %cst_45 = arith.constant 9.99999993E-9 : f32
    %90 = vector.broadcast %cst_45 : f32 to vector<16x1xf32>
    %91 = arith.addf %89, %90 : vector<16x1xf32>
    %92 = tpu.reciprocal %91 : vector<16x1xf32> -> vector<16x1xf32>
    %93 = vector.broadcast %92 : vector<16x1xf32> to vector<16x32xf32>
    %94 = arith.mulf %88, %93 : vector<16x32xf32>
    %cst_46 = arith.constant dense<0.000000e+00> : vector<16xf32>
    %95 = vector.multi_reduction <add>, %94, %cst_46 [1] : vector<16x32xf32> to vector<16xf32>
    %96 = vector.shape_cast %95 : vector<16xf32> to vector<16x1xf32>
    %cst_47 = arith.constant 3.200000e+01 : f32
    %97 = vector.broadcast %cst_47 : f32 to vector<16x1xf32>
    %98 = arith.divf %96, %97 : vector<16x1xf32>
    %99 = vector.broadcast %98 : vector<16x1xf32> to vector<16x32xf32>
    %100 = arith.subf %94, %99 : vector<16x32xf32>
    %101 = arith.mulf %100, %100 : vector<16x32xf32>
    %cst_48 = arith.constant dense<0.000000e+00> : vector<16xf32>
    %102 = vector.multi_reduction <add>, %101, %cst_48 [1] : vector<16x32xf32> to vector<16xf32>
    %103 = vector.shape_cast %102 : vector<16xf32> to vector<16x1xf32>
    %cst_49 = arith.constant 3.200000e+01 : f32
    %104 = vector.broadcast %cst_49 : f32 to vector<16x1xf32>
    %105 = arith.divf %103, %104 : vector<16x1xf32>
    %cst_50 = arith.constant 9.99999974E-6 : f32
    %106 = vector.broadcast %cst_50 : f32 to vector<16x1xf32>
    %107 = arith.addf %105, %106 : vector<16x1xf32>
    %108 = math.rsqrt %107 : vector<16x1xf32>
    %109 = vector.broadcast %108 : vector<16x1xf32> to vector<16x32xf32>
    %110 = arith.mulf %100, %109 : vector<16x32xf32>
    %111 = vector.broadcast %12 : vector<1x32xf32> to vector<16x32xf32>
    %112 = arith.mulf %110, %111 : vector<16x32xf32>
    %113 = vector.broadcast %13 : vector<1x32xf32> to vector<16x32xf32>
    %114 = arith.addf %112, %113 : vector<16x32xf32>
    %c0_51 = arith.constant 0 : index
    %c0_52 = arith.constant 0 : index
    %115 = vector.load %arg7[%c0_51, %c0_52] : memref<32x512xf32, #tpu.memory_space<vmem>>, vector<32x512xf32>
    %cst_53 = arith.constant dense<0.000000e+00> : vector<16x512xf32>
    %116 = tpu.matmul %114, %115, %cst_53 {dimension_numbers = #tpu.dot_dimension_numbers<[1], [0], [0], [1], [0, 0, 1, 1], [], []>} : vector<16x32xf32>, vector<32x512xf32>, vector<16x512xf32> -> vector<16x512xf32>
    %c0_54 = arith.constant 0 : index
    %c0_55 = arith.constant 0 : index
    %117 = vector.load %arg8[%c0_54, %c0_55] : memref<1x512xf32, #tpu.memory_space<vmem>>, vector<1x512xf32>
    %118 = vector.broadcast %117 : vector<1x512xf32> to vector<16x512xf32>
    %119 = arith.addf %116, %118 : vector<16x512xf32>
    %cst_56 = arith.constant 0.000000e+00 : f32
    %120 = vector.broadcast %cst_56 : f32 to vector<16x512xf32>
    %121 = arith.cmpf ogt, %119, %120 : vector<16x512xf32>
    %cst_57 = arith.constant 2.000000e-01 : f32
    %122 = vector.broadcast %cst_57 : f32 to vector<16x512xf32>
    %123 = arith.mulf %122, %119 : vector<16x512xf32>
    %124 = arith.select %121, %119, %123 : vector<16x512xi1>, vector<16x512xf32>
    %c0_58 = arith.constant 0 : index
    %c0_59 = arith.constant 0 : index
    %125 = vector.load %arg13[%c0_58, %c0_59] : memref<16x512xf32, #tpu.memory_space<vmem>>, vector<16x512xf32>
    tpu.vector_store %arg13[%c0_58, %c0_59], %124 {strides = array<i32>} : memref<16x512xf32, #tpu.memory_space<vmem>>, vector<16x512xf32>,
    return
  }
  func.func @transform_0(%arg0: i32) -> (i32, i32, i32) {
    %c0_i32 = arith.constant 0 : i32
    %c0_i32_0 = arith.constant 0 : i32
    %c0_i32_1 = arith.constant 0 : i32
    return %arg0, %c0_i32, %c0_i32_0 : i32, i32, i32
  }
  func.func @transform_1(%arg0: i32) -> (i32, i32, i32) {
    %c0_i32 = arith.constant 0 : i32
    %c0_i32_0 = arith.constant 0 : i32
    %c0_i32_1 = arith.constant 0 : i32
    return %arg0, %c0_i32, %c0_i32_0 : i32, i32, i32
  }
  func.func @transform_2(%arg0: i32) -> (i32, i32) {
    %c0_i32 = arith.constant 0 : i32
    %c0_i32_0 = arith.constant 0 : i32
    %c0_i32_1 = arith.constant 0 : i32
    return %c0_i32, %c0_i32_0 : i32, i32
  }
  func.func @transform_3(%arg0: i32) -> (i32, i32) {
    %c0_i32 = arith.constant 0 : i32
    %c0_i32_0 = arith.constant 0 : i32
    %c0_i32_1 = arith.constant 0 : i32
    return %c0_i32, %c0_i32_0 : i32, i32
  }
  func.func @transform_4(%arg0: i32) -> (i32, i32) {
    %c0_i32 = arith.constant 0 : i32
    %c0_i32_0 = arith.constant 0 : i32
    %c0_i32_1 = arith.constant 0 : i32
    return %c0_i32, %c0_i32_0 : i32, i32
  }
  func.func @transform_5(%arg0: i32) -> (i32, i32) {
    %c0_i32 = arith.constant 0 : i32
    %c0_i32_0 = arith.constant 0 : i32
    %c0_i32_1 = arith.constant 0 : i32
    return %c0_i32, %c0_i32_0 : i32, i32
  }
  func.func @transform_6(%arg0: i32) -> (i32, i32) {
    %c0_i32 = arith.constant 0 : i32
    %c0_i32_0 = arith.constant 0 : i32
    %c0_i32_1 = arith.constant 0 : i32
    return %c0_i32, %c0_i32_0 : i32, i32
  }
  func.func @transform_7(%arg0: i32) -> (i32, i32) {
    %c0_i32 = arith.constant 0 : i32
    %c0_i32_0 = arith.constant 0 : i32
    %c0_i32_1 = arith.constant 0 : i32
    return %c0_i32, %c0_i32_0 : i32, i32
  }
  func.func @transform_8(%arg0: i32) -> (i32, i32) {
    %c0_i32 = arith.constant 0 : i32
    %c0_i32_0 = arith.constant 0 : i32
    %c0_i32_1 = arith.constant 0 : i32
    return %c0_i32, %c0_i32_0 : i32, i32
  }
  func.func @transform_9(%arg0: i32) -> (i32, i32) {
    %c0_i32 = arith.constant 0 : i32
    %c0_i32_0 = arith.constant 0 : i32
    %c0_i32_1 = arith.constant 0 : i32
    return %c0_i32, %c0_i32_0 : i32, i32
  }
  func.func @transform_10(%arg0: i32) -> (i32, i32) {
    %c0_i32 = arith.constant 0 : i32
    %c0_i32_0 = arith.constant 0 : i32
    %c0_i32_1 = arith.constant 0 : i32
    return %c0_i32, %c0_i32_0 : i32, i32
  }
  func.func @transform_11(%arg0: i32) -> (i32, i32) {
    %c0_i32 = arith.constant 0 : i32
    %c0_i32_0 = arith.constant 0 : i32
    %c0_i32_1 = arith.constant 0 : i32
    return %c0_i32, %c0_i32_0 : i32, i32
  }
  func.func @transform_12(%arg0: i32) -> (i32, i32) {
    %c0_i32 = arith.constant 0 : i32
    %c0_i32_0 = arith.constant 0 : i32
    return %arg0, %c0_i32 : i32, i32
  }
}

</mosaic_0001>

<bundles_post_ra>
// kernel: tpu_custom_call.1
= control target key start
LH: loop header
LB: loop body
LE: loop exit
PB: predicated region body
PF: predicated region fallthrough
CT: control target
= control target key end

     0   :  { %s7740_s0 = inlined_call_operand.vmem [shape: f32[2,128,32], index: 0, kind: input, shape index: {}]   ;;  %s7741_s1 = inlined_call_operand.vmem [shape: f32[2,1,128], index: 1, kind: input, shape index: {}]   ;;  %s7742_s2 = inlined_call_operand.vmem [shape: f32[32,32], index: 2, kind: input, shape index: {}]   ;;  %s7743_s3 = inlined_call_operand.vmem [shape: f32[32,32], index: 3, kind: input, shape index: {}]   ;;  %s7744_s4 = inlined_call_operand.vmem [shape: f32[32,32], index: 4, kind: input, shape index: {}]   ;;  %s7745_s5 = inlined_call_operand.vmem [shape: f32[32,32], index: 5, kind: input, shape index: {}]   ;;  %s7746_s6 = inlined_call_operand.vmem [shape: f32[32,512], index: 6, kind: input, shape index: {}]   ;;  %s7747_s7 = inlined_call_operand.vmem [shape: f32[1,512], index: 7, kind: input, shape index: {}]   ;;  %s7748_s8 = inlined_call_operand.vmem [shape: f32[10,32], index: 8, kind: input, shape index: {}]   ;;  %s7749_s9 = inlined_call_operand.vmem [shape: f32[512,32], index: 9, kind: input, shape index: {}]   ;;  %s7750_s10 = inlined_call_operand.vmem [shape: f32[512,128], index: 10, kind: input, shape index: {}]   ;;  %s7751_s11 = inlined_call_operand.vmem [shape: f32[16,128], index: 11, kind: input, shape index: {}]   ;;  %s7752_s12 = inlined_call_operand.hbm [shape: f32[32,512], index: 12, kind: output, shape index: {}]  }
   0x1   :  { %7769 = sst [smem:[#allocation22_spill]] %s7740_s0 }
   0x2   :  { %17 = vsyncpa [#allocation3], 0 }
   0x3   :  { %19 = vsyncpa [#allocation3 + $0x1], 0  ;;  %s5700_s21 = smov 0   ;;  %s5702_s22 = smov 0  }
   0x4   :  { %s5704_s23 = smov 0   ;;  %s5706_s24 = smov 0  }
   0x5 LB: > { %s5721_s25 = sadd.s32 4294967295, %s5628_s24   ;;  %s3998_s26 = sadd.s32 4294967294, %s5628_s24   ;;  %s5628_s24 = sphi %s5706_s24, %s7812_s24   ;;  %s5624_s23 = sphi %s5704_s23, %s7811_s23   ;;  %s5620_s22 = sphi %s5702_s22, %s7810_s22   ;;  %s5616_s21 = sphi %s5700_s21, %s7809_s21  }
   0x6   : > { %s5725_s27 = sadd.s32 1, %s5628_s24   ;;  %s294_s28 = sadd.s32 1, %s5624_s23 }
   0x7   : > { %s291_s29 = ssub.s32 %s5628_s24, %s5725_s27  ;;  %p304_p0 = scmp.ne.s32.totalorder %s5624_s23, %s5620_s22 }
   0x8   : > { %p292_p1 = scmp.eq.s32.totalorder %s291_s29, 0  ;;  %p305_p2 = scmp.eq.s32.totalorder %s5721_s25, 1 }
   0x9   : > { %p310_p3 = scmp.ne.s32.totalorder %s5620_s22, %s5616_s21  ;;  %p311_p4 = scmp.eq.s32.totalorder %s3998_s26, 1 }
   0xa   : > { %s5736_s30 = scalar_select %p292_p1, %s5624_s23, %s294_s28  }
   0xb   : > { %p5738_p5 = por %p305_p2, %p304_p0  ;;  %p5742_p6 = por %p311_p4, %p310_p3 }
   0xc   : > { %7770 = sst [smem:[#allocation5_spill]] %s5736_s30  ;;  %p4001_p7 = scmp.ge.s32.totalorder %s5628_s24, 1 }
   0xd   : > { %p373_p8 = scmp.lt.s32.totalorder %s5628_s24, 3 }
   0xf   : > { %p374_p9 = pnand %p4001_p7, %p373_p8 }
  0x11   : > { %377 = sbr.rel (%p374_p9) target bundleno = 2671 (0xa6f), region = 68 }
  0x18   : > { %v656_v0 = vld [vmem:[%s7743_s3] sm:$0xff]  ;;  %v657_v1 = vld [vmem:[%s7743_s3 + $0x8] sm:$0xff]  ;;  %v658_v2 = vld [vmem:[%s7743_s3 + $0x10] sm:$0xff]  ;;  %p418_p10 = scmp.lt.s32.totalorder %s5721_s25, 1  ;;  %vm462_vm0 = vcmask 261120   ;;  %s7773_s0 = sld [smem:[#allocation22_spill]] }
  0x19   : > { %v4911_v3 = vpack.c.bf16 %v657_v1, %v656_v0  ;;  %v659_v4 = vld [vmem:[%s7743_s3 + $0x18] sm:$0xff]  ;;  %v454_v5 = vld [vmem:[%s7742_s2] sm:$0xff]  ;;  %v455_v6 = vld [vmem:[%s7742_s2 + $0x8] sm:$0xff]  ;;  %s415_s29 = sand.u32 1, %s5620_s22   ;;  %s4172_s18 = sshll.u32 %s5721_s25, 10 }
  0x1a   : > { %v4915_v7 = vpack.c.bf16 %v659_v4, %v658_v2  ;;  %s5768_s17 = scalar_select %p418_p10, %s5721_s25, 1  ;;  %v4903_v8 = vpack.c.bf16 %v455_v6, %v454_v5  ;;  %v456_v9 = vld [vmem:[%s7742_s2 + $0x10] sm:$0xff]  ;;  %v457_v10 = vld [vmem:[%s7742_s2 + $0x18] sm:$0xff]  ;;  %v5894_v28 = vld [vmem:[%s7748_s8 + $0x1] ss:$0 sm:$0xff] }
  0x1b   : > { %4912 = vmatprep.subr.bf16.mxu1 %v4911_v3  ;;  %v4907_v11 = vpack.c.bf16 %v457_v10, %v456_v9  ;;  %v5899_v30 = vld [vmem:[%s7748_s8] ss:$0 sm:$0xff]  ;;  %vm5910_vm1 = vmpackc.low %vm462_vm0, %vm462_vm0  ;;  %v810_v37 = vld [vmem:[%s7744_s4 + $0x8] sm:$0xff]  ;;  %s7699_s25 = scalar_lea.sflag [#allocation3], %s415_s29  ;;  %s5632_s26 = smov [#allocation2]  }
  0x1c   : > { %4914 = vmatpush3.bf16.msra.mxu1 %v4911_v3  ;;  %s4170_s30 = sshll.u32 %s5768_s17, 7  ;;  %4904 = vmatprep.subr.bf16.mxu0 %v4903_v8  ;;  %v962_v36 = vld [vmem:[%s7749_s9] sm:$0xff]  ;;  %s6393_s28 = scalar_lea.vmem %s7741_s1, %s5768_s17 }
  0x1d   : > { %4916 = vmatprep.subr.bf16.mxu1 %v4915_v7  ;;  %4906 = vmatpush3.bf16.msra.mxu0 %v4903_v8 }
  0x1e   : > { %s5780_s15 = scalar_lea.vmem %s7773_s0, %s4170_s30  ;;  %4908 = vmatprep.subr.bf16.mxu0 %v4907_v11  ;;  %s7691_s0 = scalar_lea.hbm %s7752_s12, %s4172_s18 }
  0x1f   : > { %v427_v12 = vld [vmem:[%s5780_s15] sm:$0xff]  ;;  %v5786_v13 = vld [vmem:[%s5780_s15 + $0x8] sm:$0xff]  ;;  %v5789_v14 = vld [vmem:[%s5780_s15 + $0x10] sm:$0xff]  ;;  %s5570_s30 = sshll.u32 %s5632_s26, 4  ;;  %s5571_s30 = int_to_ptr.vmem [resolvable:$false] %s5570_s30 }
  0x20   : > { %4489 = vmatprep.mubr.msk.f32.mxu1 %vm462_vm0, %v427_v12  ;;  %4457 = vmatprep.mubr.msk.f32.mxu0 %vm462_vm0, %v427_v12  ;;  %v5796_v15 = vld [vmem:[%s5780_s15 + $0x18] sm:$0xff]  ;;  %v5801_v16 = vld [vmem:[%s5780_s15 + $0x20] sm:$0xff]  ;;  %v5810_v17 = vld [vmem:[%s5780_s15 + $0x28] sm:$0xff] }
  0x21   : > { %4918 = vmatpush3.bf16.msra.mxu1 %v4915_v7  ;;  %4910 = vmatpush3.bf16.msra.mxu0 %v4907_v11  ;;  %v5815_v18 = vld [vmem:[%s5780_s15 + $0x30] sm:$0xff]  ;;  %v5824_v19 = vld [vmem:[%s5780_s15 + $0x38] sm:$0xff]  ;;  %v5829_v20 = vld [vmem:[%s5780_s15 + $0x40] sm:$0xff] }
  0x22   : > { %v5838_v21 = vld [vmem:[%s5780_s15 + $0x48] sm:$0xff]  ;;  %v5843_v22 = vld [vmem:[%s5780_s15 + $0x50] sm:$0xff]  ;;  %v5852_v23 = vld [vmem:[%s5780_s15 + $0x58] sm:$0xff] }
  0x23   : > { %v5857_v24 = vld [vmem:[%s5780_s15 + $0x60] sm:$0xff]  ;;  %v5866_v25 = vld [vmem:[%s5780_s15 + $0x68] sm:$0xff]  ;;  %v5871_v26 = vld [vmem:[%s5780_s15 + $0x70] sm:$0xff] }
  0x24   : > { %4490 = vmatmul.mubr.msk.f32.vlgmr.msra.gmra.mrb[0].mxu1 %vm462_vm0, %v5786_v13  ;;  %4458 = vmatmul.mubr.msk.f32.vlgmr.msra.gmra.mrb[0].mxu0 %vm462_vm0, %v5786_v13  ;;  %v5880_v27 = vld [vmem:[%s5780_s15 + $0x78] sm:$0xff]  ;;  %s4002_s15 = sshll.u32 %s415_s29, 6 }
  0x25   : > { %4492 = vmatprep.mubr.msk.f32.mxu1 %vm462_vm0, %v5789_v14  ;;  %4460 = vmatprep.mubr.msk.f32.mxu0 %vm462_vm0, %v5789_v14  ;;  %s7678_s16 = scalar_lea.vmem [#allocation2], %s4002_s15  ;;  %s5572_s15 = scalar_lea.vmem %s5571_s30, 2048 }
  0x28   : > { %4493 = vmatmul.mubr.msk.f32.gmra.mrb[2].mxu1 %vm462_vm0, %v5796_v15  ;;  %4461 = vmatmul.mubr.msk.f32.gmra.mrb[2].mxu0 %vm462_vm0, %v5796_v15 }
  0x29   : > { %4495 = vmatprep.mubr.msk.f32.mxu1 %vm462_vm0, %v5801_v16  ;;  %4463 = vmatprep.mubr.msk.f32.mxu0 %vm462_vm0, %v5801_v16 }
  0x2c   : > { %4496 = vmatmul.mubr.msk.f32.gmra.mrb[4].mxu1 %vm462_vm0, %v5810_v17  ;;  %4464 = vmatmul.mubr.msk.f32.gmra.mrb[4].mxu0 %vm462_vm0, %v5810_v17 }
  0x2d   : > { %4498 = vmatprep.mubr.msk.f32.mxu1 %vm462_vm0, %v5815_v18  ;;  %4466 = vmatprep.mubr.msk.f32.mxu0 %vm462_vm0, %v5815_v18 }
  0x30   : > { %4499 = vmatmul.mubr.msk.f32.gmra.mrb[6].mxu1 %vm462_vm0, %v5824_v19  ;;  %4467 = vmatmul.mubr.msk.f32.gmra.mrb[6].mxu0 %vm462_vm0, %v5824_v19 }
  0x31   : > { %4501 = vmatprep.mubr.msk.f32.mxu1 %vm462_vm0, %v5829_v20  ;;  %4469 = vmatprep.mubr.msk.f32.mxu0 %vm462_vm0, %v5829_v20 }
  0x34   : > { %4502 = vmatmul.mubr.msk.f32.gmra.mrb[8].mxu1 %vm462_vm0, %v5838_v21  ;;  %4470 = vmatmul.mubr.msk.f32.gmra.mrb[8].mxu0 %vm462_vm0, %v5838_v21 }
  0x35   : > { %4504 = vmatprep.mubr.msk.f32.mxu1 %vm462_vm0, %v5843_v22  ;;  %4472 = vmatprep.mubr.msk.f32.mxu0 %vm462_vm0, %v5843_v22 }
  0x38   : > { %4505 = vmatmul.mubr.msk.f32.gmra.mrb[10].mxu1 %vm462_vm0, %v5852_v23  ;;  %4473 = vmatmul.mubr.msk.f32.gmra.mrb[10].mxu0 %vm462_vm0, %v5852_v23 }
  0x39   : > { %4507 = vmatprep.mubr.msk.f32.mxu1 %vm462_vm0, %v5857_v24  ;;  %4475 = vmatprep.mubr.msk.f32.mxu0 %vm462_vm0, %v5857_v24 }
  0x3c   : > { %4508 = vmatmul.mubr.msk.f32.gmra.mrb[12].mxu1 %vm462_vm0, %v5866_v25  ;;  %4476 = vmatmul.mubr.msk.f32.gmra.mrb[12].mxu0 %vm462_vm0, %v5866_v25 }
  0x3d   : > { %4510 = vmatprep.mubr.msk.f32.mxu1 %vm462_vm0, %v5871_v26  ;;  %4478 = vmatprep.mubr.msk.f32.mxu0 %vm462_vm0, %v5871_v26 }
  0x40   : > { %4511 = vmatmul.mubr.msk.f32.gmra.mrb[14].mxu1 %vm462_vm0, %v5880_v27  ;;  %4479 = vmatmul.mubr.msk.f32.gmra.mrb[14].mxu0 %vm462_vm0, %v5880_v27 }
  0x41   : > { %4521 = vmatprep.mubr.msk.f32.mxu0 %vm462_vm0, %v427_v12 }
  0xf7   : > { %v4491_v29 = vpop.f32.mrb[0].mxu1  ;;  %v5902_v33 = vpop.f32.mrb[0].mxu0 }
  0xf8   : > { %v736_v31 = vadd.f32 %v4491_v29, %v5894_v28  ;;  %v730_v32 = vpop.f32.mrb[1].mxu1  ;;  %v577_v35 = vpop.f32.mrb[1].mxu0 }
  0xf9   : > { %v731_v34 = vadd.f32 %v5894_v28, %v730_v32  ;;  %v5915_v38 = vadd.f32 %v5899_v30, %v577_v35 }
  0xfb   : > { %v4927_v39 = vpack.c.bf16 %v736_v31, %v731_v34  ;;  %v4494_v40 = vpop.f32.mrb[2].mxu1  ;;  %v4462_v43 = vpop.f32.mrb[2].mxu0  ;;  %v1026_v44 = vmul.f32 %v962_v36, %v5915_v38 }
  0xfc   : > { %v746_v41 = vadd.f32 %v4494_v40, %v5894_v28  ;;  %v740_v42 = vpop.f32.mrb[3].mxu1  ;;  %v5923_v46 = vadd.f32 %v4462_v43, %v5899_v30  ;;  %v587_v47 = vpop.f32.mrb[3].mxu0 }
  0xfd   : > { %4929 = vmatprep.subr.msk.bf16.mxu1 %vm5910_vm1, %v4927_v39  ;;  %v741_v45 = vadd.f32 %v5894_v28, %v740_v42  ;;  %v5928_v48 = vadd.f32 %v5899_v30, %v587_v47  ;;  %4577 = vmatprep.mubr.msk.f32.mxu1 %vm462_vm0, %v1026_v44 }
  0xfe   : > { %4932 = vmatpush3.bf16.xpose.msk.msra.mxu1 %vm5910_vm1, %v4927_v39 }
  0xff   : > { %v4933_v49 = vpack.c.bf16 %v746_v41, %v741_v45  ;;  %v4497_v50 = vpop.f32.mrb[4].mxu1  ;;  %v4465_v53 = vpop.f32.mrb[4].mxu0 }
 0x100   : > { %v756_v51 = vadd.f32 %v4497_v50, %v5894_v28  ;;  %v750_v52 = vpop.f32.mrb[5].mxu1  ;;  %v5936_v55 = vadd.f32 %v4465_v53, %v5899_v30  ;;  %v597_v56 = vpop.f32.mrb[5].mxu0 }
 0x101   : > { %4935 = vmatprep.subr.msk.bf16.mxu1 %vm5910_vm1, %v4933_v49  ;;  %v751_v54 = vadd.f32 %v5894_v28, %v750_v52  ;;  %v5939_v57 = vadd.f32 %v5899_v30, %v597_v56 }
 0x103   : > { %v4939_v58 = vpack.c.bf16 %v756_v51, %v751_v54  ;;  %v4500_v59 = vpop.f32.mrb[6].mxu1  ;;  %v4468_v62 = vpop.f32.mrb[6].mxu0 }
 0x104   : > { %v766_v60 = vadd.f32 %v4500_v59, %v5894_v28  ;;  %v760_v61 = vpop.f32.mrb[7].mxu1  ;;  %v5944_v0 = vadd.f32 %v4468_v62, %v5899_v30  ;;  %v607_v1 = vpop.f32.mrb[7].mxu0 }
 0x105   : > { %v761_v63 = vadd.f32 %v5894_v28, %v760_v61  ;;  %v5949_v2 = vadd.f32 %v5899_v30, %v607_v1  ;;  %v964_v1 = vld [vmem:[%s7749_s9 + $0x10] sm:$0xff] }
 0x106   : > { %4938 = vmatpush3.bf16.xpose.msk.msra.mxu1 %vm5910_vm1, %v4933_v49 }
 0x107   : > { %4941 = vmatprep.subr.msk.bf16.mxu1 %vm5910_vm1, %v4939_v58  ;;  %v4945_v3 = vpack.c.bf16 %v766_v60, %v761_v63  ;;  %v4503_v4 = vpop.f32.mrb[8].mxu1  ;;  %v4471_v7 = vpop.f32.mrb[8].mxu0 }
 0x108   : > { %v776_v5 = vadd.f32 %v4503_v4, %v5894_v28  ;;  %v770_v6 = vpop.f32.mrb[9].mxu1  ;;  %v5956_v9 = vadd.f32 %v4471_v7, %v5899_v30  ;;  %v617_v10 = vpop.f32.mrb[9].mxu0  ;;  %v809_v4 = vld [vmem:[%s7744_s4] sm:$0xff] }
 0x109   : > { %v771_v8 = vadd.f32 %v5894_v28, %v770_v6  ;;  %v5959_v11 = vadd.f32 %v5899_v30, %v617_v10  ;;  %v812_v6 = vld [vmem:[%s7744_s4 + $0x18] sm:$0xff] }
 0x10b   : > { %v4951_v12 = vpack.c.bf16 %v776_v5, %v771_v8  ;;  %v4506_v29 = vpop.f32.mrb[10].mxu1  ;;  %v4474_v34 = vpop.f32.mrb[10].mxu0  ;;  %v4919_v5 = vpack.c.bf16 %v810_v37, %v809_v4  ;;  %v966_v8 = vld [vmem:[%s7749_s9 + $0x20] sm:$0xff]  ;;  %v985_v37 = vld [vmem:[%s7749_s9 + $0xb8] sm:$0xff] }
 0x10c   : > { %v786_v31 = vadd.f32 %v4506_v29, %v5894_v28  ;;  %v780_v32 = vpop.f32.mrb[11].mxu1  ;;  %v5964_v36 = vadd.f32 %v4474_v34, %v5899_v30  ;;  %v627_v39 = vpop.f32.mrb[11].mxu0  ;;  %v1030_v29 = vmul.f32 %v966_v8, %v5939_v57  ;;  %v968_v34 = vld [vmem:[%s7749_s9 + $0x30] sm:$0xff] }
 0x10d   : > { %v781_v35 = vadd.f32 %v5894_v28, %v780_v32  ;;  %v5969_v40 = vadd.f32 %v5899_v30, %v627_v39  ;;  %4920 = vmatprep.subr.bf16.mxu0 %v4919_v5  ;;  %v1032_v39 = vmul.f32 %v968_v34, %v5949_v2  ;;  %v992_v34 = vld [vmem:[%s7749_s9 + $0xf0] sm:$0xff] }
 0x10e   : > { %4944 = vmatpush3.bf16.xpose.msk.msra.mxu1 %vm5910_vm1, %v4939_v58  ;;  %4922 = vmatpush3.bf16.msra.mxu0 %v4919_v5  ;;  %v987_v5 = vld [vmem:[%s7749_s9 + $0xc8] sm:$0xff] }
 0x10f   : > { %4947 = vmatprep.subr.msk.bf16.mxu1 %vm5910_vm1, %v4945_v3  ;;  %v4957_v41 = vpack.c.bf16 %v786_v31, %v781_v35  ;;  %v4509_v42 = vpop.f32.mrb[12].mxu1  ;;  %v4477_v45 = vpop.f32.mrb[12].mxu0  ;;  %v967_v31 = vld [vmem:[%s7749_s9 + $0x28] sm:$0xff] }
 0x110   : > { %v796_v43 = vadd.f32 %v4509_v42, %v5894_v28  ;;  %v790_v44 = vpop.f32.mrb[13].mxu1  ;;  %v5976_v49 = vadd.f32 %v4477_v45, %v5899_v30  ;;  %v637_v50 = vpop.f32.mrb[13].mxu0  ;;  %v1031_v35 = vmul.f32 %v967_v31, %v5936_v55  ;;  %v970_v42 = vld [vmem:[%s7749_s9 + $0x40] sm:$0xff]  ;;  %v971_v45 = vld [vmem:[%s7749_s9 + $0x48] sm:$0xff] }
 0x111   : > { %v791_v47 = vadd.f32 %v5894_v28, %v790_v44  ;;  %v5979_v51 = vadd.f32 %v5899_v30, %v637_v50  ;;  %v1034_v44 = vmul.f32 %v970_v42, %v5959_v11  ;;  %v973_v50 = vld [vmem:[%s7749_s9 + $0x58] sm:$0xff]  ;;  %v994_v42 = vld [vmem:[%s7749_s9 + $0x100] sm:$0xff] }
 0x113   : > { %v4963_v52 = vpack.c.bf16 %v796_v43, %v791_v47  ;;  %v4512_v53 = vpop.f32.mrb[14].mxu1  ;;  %v4480_v58 = vpop.f32.mrb[14].mxu0  ;;  %v972_v47 = vld [vmem:[%s7749_s9 + $0x50] sm:$0xff] }
 0x114   : > { %v806_v54 = vadd.f32 %v4512_v53, %v5894_v28  ;;  %v800_v56 = vpop.f32.mrb[15].mxu1  ;;  %v5984_v60 = vadd.f32 %v4480_v58, %v5899_v30  ;;  %v647_v61 = vpop.f32.mrb[15].mxu0  ;;  %v975_v53 = vld [vmem:[%s7749_s9 + $0x68] sm:$0xff]  ;;  %v978_v58 = vld [vmem:[%s7749_s9 + $0x80] sm:$0xff] }
 0x115   : > { %v801_v59 = vadd.f32 %v5894_v28, %v800_v56  ;;  %v5989_v62 = vadd.f32 %v5899_v30, %v647_v61  ;;  %v6009_v28 = vadd.f32 %v5902_v33, %v5899_v30  ;;  %v811_v30 = vld [vmem:[%s7744_s4 + $0x10] sm:$0xff]  ;;  %v1028_v33 = vmul.f32 %v964_v1, %v5928_v48  ;;  %v977_v56 = vld [vmem:[%s7749_s9 + $0x78] sm:$0xff] }
 0x116   : > { %4950 = vmatpush3.bf16.xpose.msk.msra.mxu1 %vm5910_vm1, %v4945_v3  ;;  %v963_v3 = vld [vmem:[%s7749_s9 + $0x8] sm:$0xff]  ;;  %v4923_v10 = vpack.c.bf16 %v812_v6, %v811_v30  ;;  %v1049_v30 = vmul.f32 %v985_v37, %v5944_v0  ;;  %v988_v6 = vld [vmem:[%s7749_s9 + $0xd0] sm:$0xff]  ;;  %v1009_v37 = vld [vmem:[%s7749_s9 + $0x178] sm:$0xff] }
 0x117   : > { %4953 = vmatprep.subr.msk.bf16.mxu1 %vm5910_vm1, %v4951_v12  ;;  %v4969_v63 = vpack.c.bf16 %v806_v54, %v801_v59  ;;  %v1027_v7 = vmul.f32 %v963_v3, %v6009_v28  ;;  %v976_v54 = vld [vmem:[%s7749_s9 + $0x70] sm:$0xff]  ;;  %v979_v59 = vld [vmem:[%s7749_s9 + $0x88] sm:$0xff]  ;;  %v1052_v8 = vmul.f32 %v988_v6, %v5969_v40 }
 0x118   : > { %4924 = vmatprep.subr.bf16.mxu0 %v4923_v10  ;;  %v983_v3 = vld [vmem:[%s7749_s9 + $0xa8] sm:$0xff]  ;;  %v1012_v6 = vld [vmem:[%s7749_s9 + $0x190] sm:$0xff] }
 0x119   : > { %4926 = vmatpush3.bf16.msra.mxu0 %v4923_v10  ;;  %v989_v10 = vld [vmem:[%s7749_s9 + $0xd8] sm:$0xff] }
 0x11c   : > { %4522 = vmatmul.mubr.msk.f32.vlgmr.msra.gmra.mrb[16].mxu0 %vm462_vm0, %v5786_v13  ;;  %v1035_v13 = vmul.f32 %v971_v45, %v5956_v9  ;;  %v995_v45 = vld [vmem:[%s7749_s9 + $0x108] sm:$0xff] }
 0x11d   : > { %4524 = vmatprep.mubr.msk.f32.mxu0 %vm462_vm0, %v5789_v14  ;;  %v1036_v14 = vmul.f32 %v972_v47, %v5969_v40  ;;  %v996_v47 = vld [vmem:[%s7749_s9 + $0x110] sm:$0xff] }
 0x11e   : > { %4956 = vmatpush3.bf16.xpose.msk.msra.mxu1 %vm5910_vm1, %v4951_v12  ;;  %v965_v12 = vld [vmem:[%s7749_s9 + $0x18] sm:$0xff] }
 0x11f   : > { %4959 = vmatprep.subr.msk.bf16.mxu1 %vm5910_vm1, %v4957_v41  ;;  %v1029_v32 = vmul.f32 %v965_v12, %v5923_v46  ;;  %v990_v12 = vld [vmem:[%s7749_s9 + $0xe0] sm:$0xff] }
 0x120   : > { %4525 = vmatmul.mubr.msk.f32.gmra.mrb[18].mxu0 %vm462_vm0, %v5796_v15  ;;  %v1037_v15 = vmul.f32 %v973_v50, %v5964_v36  ;;  %v1054_v31 = vmul.f32 %v990_v12, %v5979_v51  ;;  %v997_v50 = vld [vmem:[%s7749_s9 + $0x118] sm:$0xff] }
 0x121   : > { %4527 = vmatprep.mubr.msk.f32.mxu0 %vm462_vm0, %v5801_v16 }
 0x124   : > { %4528 = vmatmul.mubr.msk.f32.gmra.mrb[20].mxu0 %vm462_vm0, %v5810_v17  ;;  %v1039_v17 = vmul.f32 %v975_v53, %v5976_v49  ;;  %v999_v53 = vld [vmem:[%s7749_s9 + $0x128] sm:$0xff] }
 0x125   : > { %4530 = vmatprep.mubr.msk.f32.mxu0 %vm462_vm0, %v5815_v18  ;;  %v1040_v18 = vmul.f32 %v976_v54, %v5989_v62  ;;  %v1000_v54 = vld [vmem:[%s7749_s9 + $0x130] sm:$0xff] }
 0x126   : > { %4962 = vmatpush3.bf16.xpose.msk.msra.mxu1 %vm5910_vm1, %v4957_v41  ;;  %v969_v41 = vld [vmem:[%s7749_s9 + $0x38] sm:$0xff] }
 0x127   : > { %4965 = vmatprep.subr.msk.bf16.mxu1 %vm5910_vm1, %v4963_v52  ;;  %v1033_v43 = vmul.f32 %v969_v41, %v5944_v0  ;;  %v993_v41 = vld [vmem:[%s7749_s9 + $0xf8] sm:$0xff] }
 0x128   : > { %4531 = vmatmul.mubr.msk.f32.gmra.mrb[22].mxu0 %vm462_vm0, %v5824_v19  ;;  %v1041_v19 = vmul.f32 %v977_v56, %v5984_v60  ;;  %v1001_v56 = vld [vmem:[%s7749_s9 + $0x138] sm:$0xff] }
 0x129   : > { %4533 = vmatprep.mubr.msk.f32.mxu0 %vm462_vm0, %v5829_v20  ;;  %v1042_v20 = vmul.f32 %v978_v58, %v5915_v38  ;;  %v1065_v58 = vmul.f32 %v1001_v56, %v5944_v0  ;;  %v1095_v56 = vld [vmem:[%s7750_s10 + $0x28] sm:$0xff] }
 0x12c   : > { %4534 = vmatmul.mubr.msk.f32.gmra.mrb[24].mxu0 %vm462_vm0, %v5838_v21  ;;  %v980_v21 = vld [vmem:[%s7749_s9 + $0x90] sm:$0xff] }
 0x12d   : > { %4536 = vmatprep.mubr.msk.f32.mxu0 %vm462_vm0, %v5843_v22  ;;  %v1043_v22 = vmul.f32 %v979_v59, %v6009_v28  ;;  %v1044_v61 = vmul.f32 %v980_v21, %v5928_v48  ;;  %v1003_v59 = vld [vmem:[%s7749_s9 + $0x148] sm:$0xff]  ;;  %v1004_v21 = vld [vmem:[%s7749_s9 + $0x150] sm:$0xff] }
 0x12e   : > { %4968 = vmatpush3.bf16.xpose.msk.msra.mxu1 %vm5910_vm1, %v4963_v52  ;;  %v974_v52 = vld [vmem:[%s7749_s9 + $0x60] sm:$0xff] }
 0x12f   : > { %4971 = vmatprep.subr.msk.bf16.mxu1 %vm5910_vm1, %v4969_v63  ;;  %v1038_v16 = vmul.f32 %v974_v52, %v5979_v51  ;;  %v998_v52 = vld [vmem:[%s7749_s9 + $0x120] sm:$0xff] }
 0x130   : > { %4537 = vmatmul.mubr.msk.f32.gmra.mrb[26].mxu0 %vm462_vm0, %v5852_v23  ;;  %v982_v23 = vld [vmem:[%s7749_s9 + $0xa0] sm:$0xff] }
 0x131   : > { %4539 = vmatprep.mubr.msk.f32.mxu0 %vm462_vm0, %v5857_v24  ;;  %v1046_v1 = vmul.f32 %v982_v23, %v5939_v57  ;;  %v1006_v23 = vld [vmem:[%s7749_s9 + $0x160] sm:$0xff] }
 0x134   : > { %4540 = vmatmul.mubr.msk.f32.gmra.mrb[28].mxu0 %vm462_vm0, %v5866_v25  ;;  %v984_v25 = vld [vmem:[%s7749_s9 + $0xb0] sm:$0xff] }
 0x135   : > { %4542 = vmatprep.mubr.msk.f32.mxu0 %vm462_vm0, %v5871_v26  ;;  %v1047_v26 = vmul.f32 %v983_v3, %v5936_v55  ;;  %v1048_v4 = vmul.f32 %v984_v25, %v5949_v2  ;;  %v1007_v3 = vld [vmem:[%s7749_s9 + $0x168] sm:$0xff]  ;;  %v1008_v25 = vld [vmem:[%s7749_s9 + $0x170] sm:$0xff] }
 0x136   : > { %4974 = vmatpush3.bf16.xpose.msk.msra.mxu1 %vm5910_vm1, %v4969_v63  ;;  %v981_v63 = vld [vmem:[%s7749_s9 + $0x98] sm:$0xff] }
 0x137   : > { %v1045_v24 = vmul.f32 %v981_v63, %v5923_v46  ;;  %v1005_v63 = vld [vmem:[%s7749_s9 + $0x158] sm:$0xff] }
 0x138   : > { %4543 = vmatmul.mubr.msk.f32.gmra.mrb[30].mxu0 %vm462_vm0, %v5880_v27  ;;  %v986_v27 = vld [vmem:[%s7749_s9 + $0xc0] sm:$0xff] }
 0x13d   : > { %4578 = vmatmul.mubr.msk.f32.vlgmr.msra.gmra.mrb[16].mxu1 %vm462_vm0, %v1027_v7  ;;  %v1051_v7 = vmul.f32 %v987_v5, %v5956_v9  ;;  %v1011_v5 = vld [vmem:[%s7749_s9 + $0x188] sm:$0xff] }
 0x13e   : > { %4580 = vmatprep.mubr.msk.f32.mxu1 %vm462_vm0, %v1028_v33  ;;  %v1050_v33 = vmul.f32 %v986_v27, %v5959_v11  ;;  %v1010_v27 = vld [vmem:[%s7749_s9 + $0x180] sm:$0xff] }
 0x141   : > { %4581 = vmatmul.mubr.msk.f32.gmra.mrb[18].mxu1 %vm462_vm0, %v1029_v32  ;;  %v991_v32 = vld [vmem:[%s7749_s9 + $0xe8] sm:$0xff] }
 0x142   : > { %4583 = vmatprep.mubr.msk.f32.mxu1 %vm462_vm0, %v1030_v29  ;;  %v1053_v29 = vmul.f32 %v989_v10, %v5964_v36  ;;  %v1014_v10 = vld [vmem:[%s7749_s9 + $0x1a0] sm:$0xff] }
 0x145   : > { %4584 = vmatmul.mubr.msk.f32.gmra.mrb[20].mxu1 %vm462_vm0, %v1031_v35  ;;  %v1055_v35 = vmul.f32 %v991_v32, %v5976_v49 }
 0x146   : > { %4586 = vmatprep.mubr.msk.f32.mxu1 %vm462_vm0, %v1032_v39  ;;  %v1056_v39 = vmul.f32 %v992_v34, %v5989_v62 }
 0x149   : > { %4587 = vmatmul.mubr.msk.f32.gmra.mrb[22].mxu1 %vm462_vm0, %v1033_v43  ;;  %v1057_v43 = vmul.f32 %v993_v41, %v5984_v60 }
 0x14a   : > { %4589 = vmatprep.mubr.msk.f32.mxu1 %vm462_vm0, %v1034_v44  ;;  %v1058_v44 = vmul.f32 %v994_v42, %v5915_v38 }
 0x14d   : > { %4590 = vmatmul.mubr.msk.f32.gmra.mrb[24].mxu1 %vm462_vm0, %v1035_v13  ;;  %v1059_v13 = vmul.f32 %v995_v45, %v6009_v28 }
 0x14e   : > { %4592 = vmatprep.mubr.msk.f32.mxu1 %vm462_vm0, %v1036_v14  ;;  %v1060_v14 = vmul.f32 %v996_v47, %v5928_v48  ;;  %v1091_v47 = vld [vmem:[%s7750_s10 + $0x8] sm:$0xff] }
 0x151   : > { %4593 = vmatmul.mubr.msk.f32.gmra.mrb[26].mxu1 %vm462_vm0, %v1037_v15  ;;  %v1061_v15 = vmul.f32 %v997_v50, %v5923_v46 }
 0x152   : > { %4595 = vmatprep.mubr.msk.f32.mxu1 %vm462_vm0, %v1038_v16  ;;  %v1062_v16 = vmul.f32 %v998_v52, %v5939_v57  ;;  %v1093_v52 = vld [vmem:[%s7750_s10 + $0x18] sm:$0xff] }
 0x155   : > { %4596 = vmatmul.mubr.msk.f32.gmra.mrb[28].mxu1 %vm462_vm0, %v1039_v17  ;;  %v1063_v17 = vmul.f32 %v999_v53, %v5936_v55 }
 0x156   : > { %4598 = vmatprep.mubr.msk.f32.mxu1 %vm462_vm0, %v1040_v18  ;;  %v1064_v18 = vmul.f32 %v1000_v54, %v5949_v2 }
 0x159   : > { %4599 = vmatmul.mubr.msk.f32.gmra.mrb[30].mxu1 %vm462_vm0, %v1041_v19  ;;  %v1002_v19 = vld [vmem:[%s7749_s9 + $0x140] sm:$0xff] }
 0x15a   : > { %4601 = vmatprep.mubr.msk.f32.mxu1 %vm462_vm0, %v1042_v20  ;;  %v1066_v20 = vmul.f32 %v1002_v19, %v5959_v11  ;;  %v1094_v19 = vld [vmem:[%s7750_s10 + $0x20] sm:$0xff] }
 0x15d   : > { %4602 = vmatmul.mubr.msk.f32.gmra.mrb[32].mxu1 %vm462_vm0, %v1043_v22  ;;  %v1067_v22 = vmul.f32 %v1003_v59, %v5956_v9 }
 0x15e   : > { %4604 = vmatprep.mubr.msk.f32.mxu1 %vm462_vm0, %v1044_v61  ;;  %v1068_v61 = vmul.f32 %v1004_v21, %v5969_v40 }
 0x161   : > { %4605 = vmatmul.mubr.msk.f32.gmra.mrb[34].mxu1 %vm462_vm0, %v1045_v24  ;;  %v1069_v24 = vmul.f32 %v1005_v63, %v5964_v36  ;;  %v1097_v63 = vld [vmem:[%s7750_s10 + $0x38] sm:$0xff] }
 0x162   : > { %4607 = vmatprep.mubr.msk.f32.mxu1 %vm462_vm0, %v1046_v1  ;;  %v1070_v1 = vmul.f32 %v1006_v23, %v5979_v51  ;;  %v1096_v23 = vld [vmem:[%s7750_s10 + $0x30] sm:$0xff] }
 0x165   : > { %4608 = vmatmul.mubr.msk.f32.gmra.mrb[36].mxu1 %vm462_vm0, %v1047_v26  ;;  %v1071_v26 = vmul.f32 %v1007_v3, %v5976_v49 }
 0x166   : > { %4610 = vmatprep.mubr.msk.f32.mxu1 %vm462_vm0, %v1048_v4  ;;  %v1072_v4 = vmul.f32 %v1008_v25, %v5989_v62 }
 0x169   : > { %4611 = vmatmul.mubr.msk.f32.gmra.mrb[38].mxu1 %vm462_vm0, %v1049_v30  ;;  %v1073_v30 = vmul.f32 %v1009_v37, %v5984_v60 }
 0x16a   : > { %4613 = vmatprep.mubr.msk.f32.mxu1 %vm462_vm0, %v1050_v33  ;;  %v1074_v33 = vmul.f32 %v1010_v27, %v5915_v38  ;;  %v1013_v38 = vld [vmem:[%s7749_s9 + $0x198] sm:$0xff] }
 0x16b   : > { %v1077_v12 = vmul.f32 %v1013_v38, %v5923_v46  ;;  %v1017_v46 = vld [vmem:[%s7749_s9 + $0x1b8] sm:$0xff] }
 0x16c   : > { %v1081_v34 = vmul.f32 %v1017_v46, %v5944_v0  ;;  %v1021_v0 = vld [vmem:[%s7749_s9 + $0x1d8] sm:$0xff] }
 0x16d   : > { %4614 = vmatmul.mubr.msk.f32.gmra.mrb[40].mxu1 %vm462_vm0, %v1051_v7  ;;  %v1075_v7 = vmul.f32 %v1011_v5, %v6009_v28  ;;  %v1016_v28 = vld [vmem:[%s7749_s9 + $0x1b0] sm:$0xff]  ;;  %v1085_v42 = vmul.f32 %v1021_v0, %v5964_v36  ;;  %v1025_v36 = vld [vmem:[%s7749_s9 + $0x1f8] sm:$0xff]  ;;  %v6406_v5 = vld [vmem:[%s6393_s28] ss:$0 sm:$0xff] }
 0x16e   : > { %4616 = vmatprep.mubr.msk.f32.mxu1 %vm462_vm0, %v1052_v8  ;;  %v1076_v8 = vmul.f32 %v1012_v6, %v5928_v48  ;;  %v1015_v48 = vld [vmem:[%s7749_s9 + $0x1a8] sm:$0xff]  ;;  %v1080_v32 = vmul.f32 %v1016_v28, %v5949_v2  ;;  %v1020_v2 = vld [vmem:[%s7749_s9 + $0x1d0] sm:$0xff] }
 0x16f   : > { %v1084_v41 = vmul.f32 %v1020_v2, %v5969_v40  ;;  %v1024_v40 = vld [vmem:[%s7749_s9 + $0x1f0] sm:$0xff] }
 0x170   : > { %v1088_v45 = vmul.f32 %v1024_v40, %v5989_v62 }
 0x171   : > { %4617 = vmatmul.mubr.msk.f32.gmra.mrb[42].mxu1 %vm462_vm0, %v1053_v29  ;;  %v1078_v29 = vmul.f32 %v1014_v10, %v5939_v57  ;;  %v1018_v57 = vld [vmem:[%s7749_s9 + $0x1c0] sm:$0xff] }
 0x172   : > { %4619 = vmatprep.mubr.msk.f32.mxu1 %vm462_vm0, %v1054_v31  ;;  %v1079_v31 = vmul.f32 %v1015_v48, %v5936_v55  ;;  %v1019_v55 = vld [vmem:[%s7749_s9 + $0x1c8] sm:$0xff] }
 0x175   : > { %4620 = vmatmul.mubr.msk.f32.gmra.mrb[44].mxu1 %vm462_vm0, %v1055_v35  ;;  %v1082_v35 = vmul.f32 %v1018_v57, %v5959_v11  ;;  %v1022_v11 = vld [vmem:[%s7749_s9 + $0x1e0] sm:$0xff] }
 0x176   : > { %4622 = vmatprep.mubr.msk.f32.mxu1 %vm462_vm0, %v1056_v39  ;;  %v1083_v39 = vmul.f32 %v1019_v55, %v5956_v9  ;;  %v1023_v9 = vld [vmem:[%s7749_s9 + $0x1e8] sm:$0xff] }
 0x179   : > { %4623 = vmatmul.mubr.msk.f32.gmra.mrb[46].mxu1 %vm462_vm0, %v1057_v43  ;;  %v1086_v43 = vmul.f32 %v1022_v11, %v5979_v51  ;;  %v1089_v51 = vmul.f32 %v1025_v36, %v5984_v60  ;;  %v1092_v60 = vld [vmem:[%s7750_s10 + $0x10] sm:$0xff] }
 0x17a   : > { %4625 = vmatprep.mubr.msk.f32.mxu1 %vm462_vm0, %v1058_v44  ;;  %v1087_v44 = vmul.f32 %v1023_v9, %v5976_v49  ;;  %v1090_v49 = vld [vmem:[%s7750_s10] sm:$0xff] }
 0x17d   : > { %4626 = vmatmul.mubr.msk.f32.gmra.mrb[48].mxu1 %vm462_vm0, %v1059_v13 }
 0x17e   : > { %4628 = vmatprep.mubr.msk.f32.mxu1 %vm462_vm0, %v1060_v14 }
 0x181   : > { %4629 = vmatmul.mubr.msk.f32.gmra.mrb[50].mxu1 %vm462_vm0, %v1061_v15 }
 0x182   : > { %4631 = vmatprep.mubr.msk.f32.mxu1 %vm462_vm0, %v1062_v16 }
 0x185   : > { %4632 = vmatmul.mubr.msk.f32.gmra.mrb[52].mxu1 %vm462_vm0, %v1063_v17 }
 0x186   : > { %4634 = vmatprep.mubr.msk.f32.mxu1 %vm462_vm0, %v1064_v18 }
 0x189   : > { %4635 = vmatmul.mubr.msk.f32.gmra.mrb[54].mxu1 %vm462_vm0, %v1065_v58 }
 0x18a   : > { %4637 = vmatprep.mubr.msk.f32.mxu1 %vm462_vm0, %v1066_v20 }
 0x18d   : > { %4638 = vmatmul.mubr.msk.f32.gmra.mrb[56].mxu1 %vm462_vm0, %v1067_v22 }
 0x18e   : > { %4640 = vmatprep.mubr.msk.f32.mxu1 %vm462_vm0, %v1068_v61 }
 0x191   : > { %4641 = vmatmul.mubr.msk.f32.gmra.mrb[58].mxu1 %vm462_vm0, %v1069_v24 }
 0x192   : > { %4643 = vmatprep.mubr.msk.f32.mxu1 %vm462_vm0, %v1070_v1  ;;  %v6401_v1 = vld [vmem:[%s7748_s8 + $0x2] ss:$0 sm:$0xff] }
 0x195   : > { %4644 = vmatmul.mubr.msk.f32.gmra.mrb[60].mxu1 %vm462_vm0, %v1071_v26 }
 0x196   : > { %4646 = vmatprep.mubr.msk.f32.mxu1 %vm462_vm0, %v1072_v4 }
 0x199   : > { %4647 = vmatmul.mubr.msk.f32.gmra.mrb[62].mxu1 %vm462_vm0, %v1073_v30 }
 0x19a   : > { %4649 = vmatprep.mubr.msk.f32.mxu1 %vm462_vm0, %v1074_v33 }
 0x19d   : > { %4650 = vmatmul.mubr.msk.f32.gmra.mrb[64].mxu1 %vm462_vm0, %v1075_v7  ;;  %v1099_v7 = vld [vmem:[%s7750_s10 + $0x48] sm:$0xff] }
 0x19e   : > { %4652 = vmatprep.mubr.msk.f32.mxu1 %vm462_vm0, %v1076_v8  ;;  %v1098_v8 = vld [vmem:[%s7750_s10 + $0x40] sm:$0xff] }
 0x1a1   : > { %4653 = vmatmul.mubr.msk.f32.gmra.mrb[66].mxu1 %vm462_vm0, %v1077_v12 }
 0x1a2   : > { %4655 = vmatprep.mubr.msk.f32.mxu1 %vm462_vm0, %v1078_v29 }
 0x1a5   : > { %4656 = vmatmul.mubr.msk.f32.gmra.mrb[68].mxu1 %vm462_vm0, %v1079_v31 }
 0x1a6   : > { %4658 = vmatprep.mubr.msk.f32.mxu1 %vm462_vm0, %v1080_v32 }
 0x1a9   : > { %4659 = vmatmul.mubr.msk.f32.gmra.mrb[70].mxu1 %vm462_vm0, %v1081_v34 }
 0x1aa   : > { %4661 = vmatprep.mubr.msk.f32.mxu1 %vm462_vm0, %v1082_v35 }
 0x1ad   : > { %4662 = vmatmul.mubr.msk.f32.gmra.mrb[72].mxu1 %vm462_vm0, %v1083_v39  ;;  %v1101_v39 = vld [vmem:[%s7750_s10 + $0x58] sm:$0xff] }
 0x1ae   : > { %4664 = vmatprep.mubr.msk.f32.mxu1 %vm462_vm0, %v1084_v41  ;;  %v1100_v41 = vld [vmem:[%s7750_s10 + $0x50] sm:$0xff] }
 0x1b1   : > { %4665 = vmatmul.mubr.msk.f32.gmra.mrb[74].mxu1 %vm462_vm0, %v1085_v42 }
 0x1b2   : > { %4667 = vmatprep.mubr.msk.f32.mxu1 %vm462_vm0, %v1086_v43 }
 0x1b5   : > { %4668 = vmatmul.mubr.msk.f32.gmra.mrb[76].mxu1 %vm462_vm0, %v1087_v44 }
 0x1b6   : > { %4670 = vmatprep.mubr.msk.f32.mxu1 %vm462_vm0, %v1088_v45 }
 0x1b9   : > { %4671 = vmatmul.mubr.msk.f32.gmra.mrb[78].mxu1 %vm462_vm0, %v1089_v51 }
 0x1ef   : > { %v4523_v24 = vpop.f32.mrb[16].mxu0 }
 0x1f0   : > { %v889_v4 = vadd.f32 %v4523_v24, %v6401_v1  ;;  %v883_v37 = vpop.f32.mrb[17].mxu0 }
 0x1f1   : > { %v884_v33 = vadd.f32 %v6401_v1, %v883_v37 }
 0x1f3   : > { %v4975_v38 = vpack.c.bf16 %v889_v4, %v884_v33  ;;  %v4526_v10 = vpop.f32.mrb[18].mxu0  ;;  %v1104_v4 = vld [vmem:[%s7750_s10 + $0x70] sm:$0xff] }
 0x1f4   : > { %v899_v31 = vadd.f32 %v4526_v10, %v6401_v1  ;;  %v893_v32 = vpop.f32.mrb[19].mxu0 }
 0x1f5   : > { %v894_v35 = vadd.f32 %v6401_v1, %v893_v32  ;;  %4976 = vmatprep.subr.bf16.mxu0 %v4975_v38 }
 0x1f6   : > { %4978 = vmatpush3.bf16.msra.mxu0 %v4975_v38 }
 0x1f7   : > { %v4979_v0 = vpack.c.bf16 %v899_v31, %v894_v35  ;;  %v4529_v11 = vpop.f32.mrb[20].mxu0  ;;  %v1106_v31 = vld [vmem:[%s7750_s10 + $0x80] sm:$0xff] }
 0x1f8   : > { %v909_v44 = vadd.f32 %v4529_v11, %v6401_v1  ;;  %v903_v45 = vpop.f32.mrb[21].mxu0 }
 0x1f9   : > { %4980 = vmatprep.subr.bf16.mxu0 %v4979_v0 }
 0x1fa   : > { %4982 = vmatpush3.bf16.msra.mxu0 %v4979_v0 }
 0x210   : > { %v4579_v62 = vpop.f32.mrb[16].mxu1 }
 0x211   : > { %v1466_v13 = vadd.f32 %v4579_v62, %v1091_v47  ;;  %v1460_v14 = vpop.f32.mrb[17].mxu1  ;;  %v904_v62 = vadd.f32 %v6401_v1, %v903_v45 }
 0x212   : > { %v1461_v50 = vadd.f32 %v1460_v14, %v1090_v49 }
 0x213   : > { %v1781_v15 = vmul.f32 1.442695, %v1466_v13  ;;  %v4532_v13 = vpop.f32.mrb[22].mxu0 }
 0x214   : > { %v1779_v16 = vmul.f32 1.442695, %v1461_v50  ;;  %v4582_v53 = vpop.f32.mrb[18].mxu1 }
 0x215   : > { %v1476_v54 = vadd.f32 %v4582_v53, %v1093_v52  ;;  %v1470_v17 = vpop.f32.mrb[19].mxu1  ;;  %v1103_v52 = vld [vmem:[%s7750_s10 + $0x68] sm:$0xff]  ;;  %v4983_v53 = vpack.c.bf16 %v909_v44, %v904_v62  ;;  %v1108_v44 = vld [vmem:[%s7750_s10 + $0x90] sm:$0xff] }
 0x216   : > { %5140 = vpow2.f32 %v1779_v16  ;;  %v1471_v18 = vadd.f32 %v1470_v17, %v1092_v60  ;;  %v919_v60 = vadd.f32 %v4532_v13, %v6401_v1  ;;  %v1102_v16 = vld [vmem:[%s7750_s10 + $0x60] sm:$0xff] }
 0x217   : > { %5142 = vpow2.f32 %v1781_v15  ;;  %v1785_v58 = vmul.f32 1.442695, %v1476_v54  ;;  %v913_v15 = vpop.f32.mrb[23].mxu0  ;;  %4984 = vmatprep.subr.bf16.mxu0 %v4983_v53 }
 0x218   : > { %v1783_v20 = vmul.f32 1.442695, %v1471_v18  ;;  %v4585_v59 = vpop.f32.mrb[20].mxu1  ;;  %v914_v54 = vadd.f32 %v6401_v1, %v913_v15  ;;  %v4535_v17 = vpop.f32.mrb[24].mxu0  ;;  %4986 = vmatpush3.bf16.msra.mxu0 %v4983_v53 }
 0x219   : > { %v1486_v21 = vadd.f32 %v4585_v59, %v1095_v56  ;;  %v1480_v22 = vpop.f32.mrb[21].mxu1  ;;  %v923_v59 = vpop.f32.mrb[25].mxu0 }
 0x21a   : > { %5144 = vpow2.f32 %v1783_v20  ;;  %v1481_v61 = vadd.f32 %v1480_v22, %v1094_v19  ;;  %v929_v20 = vadd.f32 %v4535_v17, %v6401_v1  ;;  %v4538_v37 = vpop.f32.mrb[26].mxu0  ;;  %v1111_v17 = vld [vmem:[%s7750_s10 + $0xa8] sm:$0xff] }
 0x21b   : > { %5146 = vpow2.f32 %v1785_v58  ;;  %v1789_v3 = vmul.f32 1.442695, %v1486_v21  ;;  %v933_v11 = vpop.f32.mrb[27].mxu0 }
 0x21c   : > { %v1787_v25 = vmul.f32 1.442695, %v1481_v61  ;;  %v4588_v26 = vpop.f32.mrb[22].mxu1  ;;  %v4541_v45 = vpop.f32.mrb[28].mxu0 }
 0x21d   : > { %v1496_v27 = vadd.f32 %v4588_v26, %v1097_v63  ;;  %v1490_v30 = vpop.f32.mrb[23].mxu1  ;;  %v924_v26 = vadd.f32 %v6401_v1, %v923_v59 }
 0x21e   : > { %5148 = vpow2.f32 %v1787_v25  ;;  %v1491_v6 = vadd.f32 %v1490_v30, %v1096_v23  ;;  %v4987_v23 = vpack.c.bf16 %v919_v60, %v914_v54  ;;  %v1105_v25 = vld [vmem:[%s7750_s10 + $0x78] sm:$0xff] }
 0x21f   : > { %5150 = vpow2.f32 %v1789_v3  ;;  %v1793_v29 = vmul.f32 1.442695, %v1496_v27 }
 0x220   : > { %v5141_v12 = vpop.eup %5140  ;;  %v1791_v48 = vmul.f32 1.442695, %v1491_v6  ;;  %v4591_v28 = vpop.f32.mrb[24].mxu1  ;;  %4988 = vmatprep.subr.bf16.mxu0 %v4987_v23 }
 0x221   : > { %v1506_v46 = vadd.f32 %v4591_v28, %v1099_v7  ;;  %v1500_v57 = vpop.f32.mrb[25].mxu1  ;;  %v6416_v34 = vmul.f32 %v5141_v12, %v6406_v5  ;;  %v5143_v55 = vpop.eup %5142  ;;  %v4991_v7 = vpack.c.bf16 %v929_v20, %v924_v26  ;;  %v1107_v28 = vld [vmem:[%s7750_s10 + $0x88] sm:$0xff]  ;;  %4990 = vmatpush3.bf16.msra.mxu0 %v4987_v23 }
 0x222   : > { %5152 = vpow2.f32 %v1791_v48  ;;  %v1501_v2 = vadd.f32 %v1500_v57, %v1098_v8  ;;  %v6431_v49 = vmul.f32 %v5143_v55, %v6406_v5  ;;  %v939_v55 = vadd.f32 %v4538_v37, %v6401_v1 }
 0x223   : > { %1977 = vadd.xlane.f32.xlu0 %v6416_v34  ;;  %5154 = vpow2.f32 %v1793_v29  ;;  %v1797_v43 = vmul.f32 1.442695, %v1506_v46  ;;  %4992 = vmatprep.subr.bf16.mxu0 %v4991_v7 }
 0x224   : > { %v5145_v42 = vpop.eup %5144  ;;  %v1795_v9 = vmul.f32 1.442695, %v1501_v2  ;;  %v4594_v40 = vpop.f32.mrb[26].mxu1 }
 0x225   : > { %v1516_v36 = vadd.f32 %v4594_v40, %v1101_v39  ;;  %v1510_v51 = vpop.f32.mrb[27].mxu1  ;;  %v6428_v47 = vmul.f32 %v5145_v42, %v6406_v5  ;;  %v5147_v14 = vpop.eup %5146  ;;  %v934_v40 = vadd.f32 %v6401_v1, %v933_v11  ;;  %4994 = vmatpush3.bf16.msra.mxu0 %v4991_v7 }
 0x226   : > { %5156 = vpow2.f32 %v1795_v9  ;;  %v1511_v50 = vadd.f32 %v1510_v51, %v1100_v41  ;;  %v6446_v61 = vmul.f32 %v5147_v14, %v6406_v5  ;;  %v1109_v9 = vld [vmem:[%s7750_s10 + $0x98] sm:$0xff] }
 0x227   : > { %1981 = vadd.xlane.f32.xlu1 %v6428_v47  ;;  %1979 = vadd.xlane.f32.xlu0 %v6431_v49  ;;  %5158 = vpow2.f32 %v1797_v43  ;;  %v1801_v56 = vmul.f32 1.442695, %v1516_v36  ;;  %v4995_v14 = vpack.c.bf16 %v939_v55, %v934_v40 }
 0x228   : > { %v5149_v18 = vpop.eup %5148  ;;  %v1799_v19 = vmul.f32 1.442695, %v1511_v50  ;;  %v4597_v58 = vpop.f32.mrb[28].mxu1 }
 0x229   : > { %v1526_v21 = vadd.f32 %v4597_v58, %v1103_v52  ;;  %v1520_v22 = vpop.f32.mrb[29].mxu1  ;;  %v6449_v63 = vmul.f32 %v5149_v18, %v6406_v5  ;;  %v5151_v24 = vpop.eup %5150  ;;  %4996 = vmatprep.subr.bf16.mxu0 %v4995_v14 }
 0x22a   : > { %5160 = vpow2.f32 %v1799_v19  ;;  %v1521_v3 = vadd.f32 %v1520_v22, %v1102_v16  ;;  %v6461_v10 = vmul.f32 %v5151_v24, %v6406_v5  ;;  %v949_v16 = vadd.f32 %v4541_v45, %v6401_v1  ;;  %v943_v18 = vpop.f32.mrb[29].mxu0  ;;  %4998 = vmatpush3.bf16.msra.mxu0 %v4995_v14 }
 0x22b   : > { %1983 = vadd.xlane.f32.xlu1 %v6446_v61  ;;  %1985 = vadd.xlane.f32.xlu0 %v6449_v63  ;;  %5162 = vpow2.f32 %v1801_v56  ;;  %v1805_v30 = vmul.f32 1.442695, %v1526_v21  ;;  %v1110_v56 = vld [vmem:[%s7750_s10 + $0xa0] sm:$0xff]  ;;  %v944_v19 = vadd.f32 %v6401_v1, %v943_v18  ;;  %v4544_v22 = vpop.f32.mrb[30].mxu0 }
 0x22c   : > { %v5153_v27 = vpop.eup %5152  ;;  %v1803_v33 = vmul.f32 1.442695, %v1521_v3  ;;  %v4600_v6 = vpop.f32.mrb[30].mxu1 }
 0x22d   : > { %v1536_v8 = vadd.f32 %v4600_v6, %v1105_v25  ;;  %v1530_v38 = vpop.f32.mrb[31].mxu1  ;;  %v6464_v12 = vmul.f32 %v5153_v27, %v6406_v5  ;;  %v5155_v29 = vpop.eup %5154  ;;  %v4999_v26 = vpack.c.bf16 %v949_v16, %v944_v19  ;;  %v1113_v27 = vld [vmem:[%s7750_s10 + $0xb8] sm:$0xff]  ;;  %v1112_v6 = vld [vmem:[%s7750_s10 + $0xb0] sm:$0xff] }
 0x22e   : > { %5164 = vpow2.f32 %v1803_v33  ;;  %v1531_v48 = vadd.f32 %v1530_v38, %v1104_v4  ;;  %v6476_v41 = vmul.f32 %v5155_v29, %v6406_v5  ;;  %v953_v33 = vpop.f32.mrb[31].mxu0 }
 0x22f   : > { %1987 = vadd.xlane.f32.xlu1 %v6461_v10  ;;  %1989 = vadd.xlane.f32.xlu0 %v6464_v12  ;;  %5166 = vpow2.f32 %v1805_v30  ;;  %v1809_v46 = vmul.f32 1.442695, %v1536_v8  ;;  %v959_v30 = vadd.f32 %v4544_v22, %v6401_v1  ;;  %v954_v7 = vadd.f32 %v6401_v1, %v953_v33  ;;  %v1115_v1 = vld [vmem:[%s7750_s10 + $0xc8] sm:$0xff]  ;;  %v1121_v33 = vld [vmem:[%s7750_s10 + $0xf8] sm:$0xff] }
 0x230   : > { %v5157_v32 = vpop.eup %5156  ;;  %v1807_v57 = vmul.f32 1.442695, %v1531_v48  ;;  %v4603_v35 = vpop.f32.mrb[32].mxu1  ;;  %5000 = vmatprep.subr.bf16.mxu0 %v4999_v26 }
 0x231   : > { %v1546_v2 = vadd.f32 %v4603_v35, %v1107_v28  ;;  %v1540_v39 = vpop.f32.mrb[33].mxu1  ;;  %v6479_v0 = vmul.f32 %v5157_v32, %v6406_v5  ;;  %v5159_v42 = vpop.eup %5158  ;;  %5002 = vmatpush3.bf16.msra.mxu0 %v4999_v26 }
 0x232   : > { %5168 = vpow2.f32 %v1807_v57  ;;  %v1541_v43 = vadd.f32 %v1540_v39, %v1106_v31  ;;  %v6491_v60 = vmul.f32 %v5159_v42, %v6406_v5  ;;  %v5003_v57 = vpack.c.bf16 %v959_v30, %v954_v7 }
 0x233   : > { %1991 = vadd.xlane.f32.xlu1 %v6476_v41  ;;  %1993 = vadd.xlane.f32.xlu0 %v6479_v0  ;;  %5170 = vpow2.f32 %v1809_v46  ;;  %v1813_v51 = vmul.f32 1.442695, %v1546_v2  ;;  %v1114_v2 = vld [vmem:[%s7750_s10 + $0xc0] sm:$0xff] }
 0x234   : > { %v5161_v36 = vpop.eup %5160  ;;  %v1811_v62 = vmul.f32 1.442695, %v1541_v43  ;;  %v4606_v13 = vpop.f32.mrb[34].mxu1  ;;  %5004 = vmatprep.subr.bf16.mxu0 %v5003_v57 }
 0x235   : > { %v1556_v50 = vadd.f32 %v4606_v13, %v1109_v9  ;;  %v1550_v52 = vpop.f32.mrb[35].mxu1  ;;  %v6494_v15 = vmul.f32 %v5161_v36, %v6406_v5  ;;  %v5163_v53 = vpop.eup %5162  ;;  %5006 = vmatpush3.bf16.msra.mxu0 %v5003_v57  ;;  %v1116_v13 = vld [vmem:[%s7750_s10 + $0xd0] sm:$0xff] }
 0x236   : > { %5172 = vpow2.f32 %v1811_v62  ;;  %v1551_v54 = vadd.f32 %v1550_v52, %v1108_v44  ;;  %v6507_v3 = vmul.f32 %v5163_v53, %v6406_v5  ;;  %v1117_v62 = vld [vmem:[%s7750_s10 + $0xd8] sm:$0xff] }
 0x237   : > { %1995 = vadd.xlane.f32.xlu1 %v6491_v60  ;;  %1997 = vadd.xlane.f32.xlu0 %v6494_v15  ;;  %5174 = vpow2.f32 %v1813_v51  ;;  %v1817_v20 = vmul.f32 1.442695, %v1556_v50 }
 0x238   : > { %v5165_v58 = vpop.eup %5164  ;;  %v1815_v59 = vmul.f32 1.442695, %v1551_v54  ;;  %v4609_v21 = vpop.f32.mrb[36].mxu1 }
 0x239   : > { %v1566_v23 = vadd.f32 %v4609_v21, %v1111_v17  ;;  %v1560_v24 = vpop.f32.mrb[37].mxu1  ;;  %v6510_v25 = vmul.f32 %v5165_v58, %v6406_v5  ;;  %v5167_v4 = vpop.eup %5166  ;;  %v1119_v58 = vld [vmem:[%s7750_s10 + $0xe8] sm:$0xff] }
 0x23a   : > { %5176 = vpow2.f32 %v1815_v59  ;;  %v1561_v37 = vadd.f32 %v1560_v24, %v1110_v56  ;;  %v6523_v32 = vmul.f32 %v5167_v4, %v6406_v5 }
 0x23b   : > { %1999 = vadd.xlane.f32.xlu1 %v6507_v3  ;;  %2001 = vadd.xlane.f32.xlu0 %v6510_v25  ;;  %5178 = vpow2.f32 %v1817_v20  ;;  %v1821_v38 = vmul.f32 1.442695, %v1566_v23  ;;  %v1118_v20 = vld [vmem:[%s7750_s10 + $0xe0] sm:$0xff] }
 0x23c   : > { %v5169_v8 = vpop.eup %5168  ;;  %v1819_v29 = vmul.f32 1.442695, %v1561_v37  ;;  %v4612_v48 = vpop.f32.mrb[38].mxu1 }
 0x23d   : > { %v1576_v28 = vadd.f32 %v4612_v48, %v1113_v27  ;;  %v1570_v31 = vpop.f32.mrb[39].mxu1  ;;  %v6526_v46 = vmul.f32 %v5169_v8, %v6406_v5  ;;  %v5171_v35 = vpop.eup %5170 }
 0x23e   : > { %5180 = vpow2.f32 %v1819_v29  ;;  %v1571_v55 = vadd.f32 %v1570_v31, %v1112_v6  ;;  %v6537_v44 = vmul.f32 %v5171_v35, %v6406_v5  ;;  %v1120_v6 = vld [vmem:[%s7750_s10 + $0xf0] sm:$0xff] }
 0x23f   : > { %2003 = vadd.xlane.f32.xlu1 %v6523_v32  ;;  %2005 = vadd.xlane.f32.xlu0 %v6526_v46  ;;  %5182 = vpow2.f32 %v1821_v38  ;;  %v1825_v11 = vmul.f32 1.442695, %v1576_v28 }
 0x240   : > { %v5173_v39 = vpop.eup %5172  ;;  %v1823_v42 = vmul.f32 1.442695, %v1571_v55  ;;  %v4615_v43 = vpop.f32.mrb[40].mxu1 }
 0x241   : > { %v1586_v9 = vadd.f32 %v4615_v43, %v1115_v1  ;;  %v1580_v40 = vpop.f32.mrb[41].mxu1  ;;  %v6540_v45 = vmul.f32 %v5173_v39, %v6406_v5  ;;  %v5175_v36 = vpop.eup %5174  ;;  %v1123_v1 = vld [vmem:[%s7750_s10 + $0x108] sm:$0xff] }
 0x242   : > { %5184 = vpow2.f32 %v1823_v42  ;;  %v1581_v51 = vadd.f32 %v1580_v40, %v1114_v2  ;;  %v6551_v17 = vmul.f32 %v5175_v36, %v6406_v5  ;;  %v1122_v2 = vld [vmem:[%s7750_s10 + $0x100] sm:$0xff] }
 0x243   : > { %2007 = vadd.xlane.f32.xlu1 %v6537_v44  ;;  %2009 = vadd.xlane.f32.xlu0 %v6540_v45  ;;  %5186 = vpow2.f32 %v1825_v11  ;;  %v1829_v50 = vmul.f32 1.442695, %v1586_v9 }
 0x244   : > { %v5177_v14 = vpop.eup %5176  ;;  %v1827_v52 = vmul.f32 1.442695, %v1581_v51  ;;  %v4618_v16 = vpop.f32.mrb[42].mxu1 }
 0x245   : > { %v1596_v53 = vadd.f32 %v4618_v16, %v1117_v62  ;;  %v1590_v54 = vpop.f32.mrb[43].mxu1  ;;  %v6554_v18 = vmul.f32 %v5177_v14, %v6406_v5  ;;  %v5179_v56 = vpop.eup %5178  ;;  %v1125_v14 = vld [vmem:[%s7750_s10 + $0x118] sm:$0xff] }
 0x246   : > { %5188 = vpow2.f32 %v1827_v52  ;;  %v1591_v19 = vadd.f32 %v1590_v54, %v1116_v13  ;;  %v6565_v4 = vmul.f32 %v5179_v56, %v6406_v5 }
 0x247   : > { %2011 = vadd.xlane.f32.xlu1 %v6551_v17  ;;  %2013 = vadd.xlane.f32.xlu0 %v6554_v18  ;;  %5190 = vpow2.f32 %v1829_v50  ;;  %v1833_v21 = vmul.f32 1.442695, %v1596_v53  ;;  %v1124_v50 = vld [vmem:[%s7750_s10 + $0x110] sm:$0xff] }
 0x248   : > { %v5181_v59 = vpop.eup %5180  ;;  %v1831_v22 = vmul.f32 1.442695, %v1591_v19  ;;  %v4621_v23 = vpop.f32.mrb[44].mxu1 }
 0x249   : > { %v1606_v24 = vadd.f32 %v4621_v23, %v1119_v58  ;;  %v1600_v26 = vpop.f32.mrb[45].mxu1  ;;  %v6568_v37 = vmul.f32 %v5181_v59, %v6406_v5  ;;  %v5183_v27 = vpop.eup %5182  ;;  %v1126_v23 = vld [vmem:[%s7750_s10 + $0x120] sm:$0xff] }
 0x24a   : > { %5192 = vpow2.f32 %v1831_v22  ;;  %v1601_v30 = vadd.f32 %v1600_v26, %v1118_v20  ;;  %v6579_v31 = vmul.f32 %v5183_v27, %v6406_v5  ;;  %v1127_v22 = vld [vmem:[%s7750_s10 + $0x128] sm:$0xff] }
 0x24b   : > { %2015 = vadd.xlane.f32.xlu1 %v6565_v4  ;;  %2017 = vadd.xlane.f32.xlu0 %v6568_v37  ;;  %5194 = vpow2.f32 %v1833_v21  ;;  %v1837_v8 = vmul.f32 1.442695, %v1606_v24 }
 0x24c   : > { %v5185_v7 = vpop.eup %5184  ;;  %v1835_v38 = vmul.f32 1.442695, %v1601_v30  ;;  %v4624_v29 = vpop.f32.mrb[46].mxu1 }
 0x24d   : > { %v1616_v48 = vadd.f32 %v4624_v29, %v1121_v33  ;;  %v1610_v28 = vpop.f32.mrb[47].mxu1  ;;  %v6582_v57 = vmul.f32 %v5185_v7, %v6406_v5  ;;  %v5187_v35 = vpop.eup %5186 }
 0x24e   : > { %5196 = vpow2.f32 %v1835_v38  ;;  %v1611_v55 = vadd.f32 %v1610_v28, %v1120_v6  ;;  %v6593_v36 = vmul.f32 %v5187_v35, %v6406_v5  ;;  %v1128_v28 = vld [vmem:[%s7750_s10 + $0x130] sm:$0xff] }
 0x24f   : > { %2019 = vadd.xlane.f32.xlu1 %v6579_v31  ;;  %2021 = vadd.xlane.f32.xlu0 %v6582_v57  ;;  %5198 = vpow2.f32 %v1837_v8  ;;  %v1841_v11 = vmul.f32 1.442695, %v1616_v48  ;;  %v1129_v48 = vld [vmem:[%s7750_s10 + $0x138] sm:$0xff] }
 0x250   : > { %v5189_v39 = vpop.eup %5188  ;;  %v1839_v42 = vmul.f32 1.442695, %v1611_v55  ;;  %v4627_v43 = vpop.f32.mrb[48].mxu1 }
 0x251   : > { %v1626_v9 = vadd.f32 %v4627_v43, %v1123_v1  ;;  %v1620_v40 = vpop.f32.mrb[49].mxu1  ;;  %v6596_v51 = vmul.f32 %v5189_v39, %v6406_v5  ;;  %v5191_v62 = vpop.eup %5190 }
 0x252   : > { %5200 = vpow2.f32 %v1839_v42  ;;  %v1621_v13 = vadd.f32 %v1620_v40, %v1122_v2  ;;  %v6607_v58 = vmul.f32 %v5191_v62, %v6406_v5  ;;  %v1131_v62 = vld [vmem:[%s7750_s10 + $0x148] sm:$0xff] }
 0x253   : > { %2023 = vadd.xlane.f32.xlu1 %v6593_v36  ;;  %2025 = vadd.xlane.f32.xlu0 %v6596_v51  ;;  %5202 = vpow2.f32 %v1841_v11  ;;  %v1845_v16 = vmul.f32 1.442695, %v1626_v9 }
 0x254   : > { %v5193_v52 = vpop.eup %5192  ;;  %v1843_v53 = vmul.f32 1.442695, %v1621_v13  ;;  %v4630_v54 = vpop.f32.mrb[50].mxu1  ;;  %v1130_v13 = vld [vmem:[%s7750_s10 + $0x140] sm:$0xff] }
 0x255   : > { %v1636_v56 = vadd.f32 %v4630_v54, %v1125_v14  ;;  %v1630_v19 = vpop.f32.mrb[51].mxu1  ;;  %v6610_v20 = vmul.f32 %v5193_v52, %v6406_v5  ;;  %v5195_v59 = vpop.eup %5194 }
 0x256   : > { %5204 = vpow2.f32 %v1843_v53  ;;  %v1631_v21 = vadd.f32 %v1630_v19, %v1124_v50  ;;  %v6621_v7 = vmul.f32 %v5195_v59, %v6406_v5 }
 0x257   : > { %2027 = vadd.xlane.f32.xlu1 %v6607_v58  ;;  %2029 = vadd.xlane.f32.xlu0 %v6610_v20  ;;  %5206 = vpow2.f32 %v1845_v16  ;;  %v1849_v26 = vmul.f32 1.442695, %v1636_v56 }
 0x258   : > { %v5197_v24 = vpop.eup %5196  ;;  %v1847_v27 = vmul.f32 1.442695, %v1631_v21  ;;  %v4633_v30 = vpop.f32.mrb[52].mxu1 }
 0x259   : > { %v1646_v33 = vadd.f32 %v4633_v30, %v1127_v22  ;;  %v1640_v6 = vpop.f32.mrb[53].mxu1  ;;  %v6624_v8 = vmul.f32 %v5197_v24, %v6406_v5  ;;  %v5199_v38 = vpop.eup %5198  ;;  %v1133_v22 = vld [vmem:[%s7750_s10 + $0x158] sm:$0xff] }
 0x25a   : > { %5208 = vpow2.f32 %v1847_v27  ;;  %v1641_v29 = vadd.f32 %v1640_v6, %v1126_v23  ;;  %v6635_v42 = vmul.f32 %v5199_v38, %v6406_v5  ;;  %v1132_v23 = vld [vmem:[%s7750_s10 + $0x150] sm:$0xff] }
 0x25b   : > { %2031 = vadd.xlane.f32.xlu1 %v6621_v7  ;;  %2033 = vadd.xlane.f32.xlu0 %v6624_v8  ;;  %5210 = vpow2.f32 %v1849_v26  ;;  %v1853_v55 = vmul.f32 1.442695, %v1646_v33 }
 0x25c   : > { %v5201_v35 = vpop.eup %5200  ;;  %v1851_v1 = vmul.f32 1.442695, %v1641_v29  ;;  %v4636_v2 = vpop.f32.mrb[54].mxu1 }
 0x25d   : > { %v1656_v39 = vadd.f32 %v4636_v2, %v1129_v48  ;;  %v1650_v11 = vpop.f32.mrb[55].mxu1  ;;  %v6638_v43 = vmul.f32 %v5201_v35, %v6406_v5  ;;  %v5203_v9 = vpop.eup %5202  ;;  %v1135_v35 = vld [vmem:[%s7750_s10 + $0x168] sm:$0xff] }
 0x25e   : > { %5212 = vpow2.f32 %v1851_v1  ;;  %v1651_v40 = vadd.f32 %v1650_v11, %v1128_v28  ;;  %v6649_v56 = vmul.f32 %v5203_v9, %v6406_v5 }
 0x25f   : > { %2035 = vadd.xlane.f32.xlu1 %v6635_v42  ;;  %2037 = vadd.xlane.f32.xlu0 %v6638_v43  ;;  %5214 = vpow2.f32 %v1853_v55  ;;  %v1857_v50 = vmul.f32 1.442695, %v1656_v39  ;;  %v1134_v55 = vld [vmem:[%s7750_s10 + $0x160] sm:$0xff] }
 0x260   : > { %v5205_v14 = vpop.eup %5204  ;;  %v1855_v52 = vmul.f32 1.442695, %v1651_v40  ;;  %v4639_v16 = vpop.f32.mrb[56].mxu1 }
 0x261   : > { %v1666_v53 = vadd.f32 %v4639_v16, %v1131_v62  ;;  %v1660_v54 = vpop.f32.mrb[57].mxu1  ;;  %v6652_v19 = vmul.f32 %v5205_v14, %v6406_v5  ;;  %v5207_v59 = vpop.eup %5206  ;;  %v1136_v16 = vld [vmem:[%s7750_s10 + $0x170] sm:$0xff] }
 0x262   : > { %5216 = vpow2.f32 %v1855_v52  ;;  %v1661_v21 = vadd.f32 %v1660_v54, %v1130_v13  ;;  %v6663_v38 = vmul.f32 %v5207_v59, %v6406_v5  ;;  %v1137_v52 = vld [vmem:[%s7750_s10 + $0x178] sm:$0xff] }
 0x263   : > { %2039 = vadd.xlane.f32.xlu1 %v6649_v56  ;;  %2041 = vadd.xlane.f32.xlu0 %v6652_v19  ;;  %5218 = vpow2.f32 %v1857_v50  ;;  %v1861_v26 = vmul.f32 1.442695, %v1666_v53 }
 0x264   : > { %v5209_v24 = vpop.eup %5208  ;;  %v1859_v27 = vmul.f32 1.442695, %v1661_v21  ;;  %v4642_v30 = vpop.f32.mrb[58].mxu1 }
 0x265   : > { %v1676_v33 = vadd.f32 %v4642_v30, %v1133_v22  ;;  %v1670_v6 = vpop.f32.mrb[59].mxu1  ;;  %v6666_v29 = vmul.f32 %v5209_v24, %v6406_v5  ;;  %v5211_v48 = vpop.eup %5210 }
 0x266   : > { %5220 = vpow2.f32 %v1859_v27  ;;  %v1671_v28 = vadd.f32 %v1670_v6, %v1132_v23  ;;  %v6677_v62 = vmul.f32 %v5211_v48, %v6406_v5  ;;  %v1138_v6 = vld [vmem:[%s7750_s10 + $0x180] sm:$0xff] }
 0x267   : > { %2043 = vadd.xlane.f32.xlu1 %v6663_v38  ;;  %2045 = vadd.xlane.f32.xlu0 %v6666_v29  ;;  %5222 = vpow2.f32 %v1861_v26  ;;  %v1865_v2 = vmul.f32 1.442695, %v1676_v33  ;;  %v1139_v33 = vld [vmem:[%s7750_s10 + $0x188] sm:$0xff] }
 0x268   : > { %v5213_v1 = vpop.eup %5212  ;;  %v1863_v39 = vmul.f32 1.442695, %v1671_v28  ;;  %v4645_v11 = vpop.f32.mrb[60].mxu1 }
 0x269   : > { %v1686_v9 = vadd.f32 %v4645_v11, %v1135_v35  ;;  %v1680_v40 = vpop.f32.mrb[61].mxu1  ;;  %v6680_v13 = vmul.f32 %v5213_v1, %v6406_v5  ;;  %v5215_v14 = vpop.eup %5214 }
 0x26a   : > { %5224 = vpow2.f32 %v1863_v39  ;;  %v1681_v50 = vadd.f32 %v1680_v40, %v1134_v55  ;;  %v6691_v24 = vmul.f32 %v5215_v14, %v6406_v5  ;;  %v1141_v14 = vld [vmem:[%s7750_s10 + $0x198] sm:$0xff] }
 0x26b   : > { %2047 = vadd.xlane.f32.xlu1 %v6677_v62  ;;  %2049 = vadd.xlane.f32.xlu0 %v6680_v13  ;;  %5226 = vpow2.f32 %v1865_v2  ;;  %v1869_v54 = vmul.f32 1.442695, %v1686_v9 }
 0x26c   : > { %v5217_v53 = vpop.eup %5216  ;;  %v1867_v59 = vmul.f32 1.442695, %v1681_v50  ;;  %v4648_v21 = vpop.f32.mrb[62].mxu1  ;;  %v1140_v50 = vld [vmem:[%s7750_s10 + $0x190] sm:$0xff] }
 0x26d   : > { %v1696_v22 = vadd.f32 %v4648_v21, %v1137_v52  ;;  %v1690_v23 = vpop.f32.mrb[63].mxu1  ;;  %v6694_v26 = vmul.f32 %v5217_v53, %v6406_v5  ;;  %v5219_v27 = vpop.eup %5218 }
 0x26e   : > { %5228 = vpow2.f32 %v1867_v59  ;;  %v1691_v30 = vadd.f32 %v1690_v23, %v1136_v16  ;;  %v6705_v39 = vmul.f32 %v5219_v27, %v6406_v5 }
 0x26f   : > { %2051 = vadd.xlane.f32.xlu1 %v6691_v24  ;;  %2053 = vadd.xlane.f32.xlu0 %v6694_v26  ;;  %5230 = vpow2.f32 %v1869_v54  ;;  %v1873_v28 = vmul.f32 1.442695, %v1696_v22 }
 0x270   : > { %v5221_v48 = vpop.eup %5220  ;;  %v1871_v35 = vmul.f32 1.442695, %v1691_v30  ;;  %v4651_v55 = vpop.f32.mrb[64].mxu1 }
 0x271   : > { %v1706_v1 = vadd.f32 %v4651_v55, %v1139_v33  ;;  %v1700_v2 = vpop.f32.mrb[65].mxu1  ;;  %v6708_v11 = vmul.f32 %v5221_v48, %v6406_v5  ;;  %v5223_v9 = vpop.eup %5222  ;;  %v1143_v33 = vld [vmem:[%s7750_s10 + $0x1a8] sm:$0xff] }
 0x272   : > { %5232 = vpow2.f32 %v1871_v35  ;;  %v1701_v40 = vadd.f32 %v1700_v2, %v1138_v6  ;;  %v6719_v22 = vmul.f32 %v5223_v9, %v6406_v5  ;;  %v1142_v6 = vld [vmem:[%s7750_s10 + $0x1a0] sm:$0xff] }
 0x273   : > { %2055 = vadd.xlane.f32.xlu1 %v6705_v39  ;;  %2057 = vadd.xlane.f32.xlu0 %v6708_v11  ;;  %5234 = vpow2.f32 %v1873_v28  ;;  %v1877_v16 = vmul.f32 1.442695, %v1706_v1 }
 0x274   : > { %v5225_v52 = vpop.eup %5224  ;;  %v1875_v53 = vmul.f32 1.442695, %v1701_v40  ;;  %v4654_v54 = vpop.f32.mrb[66].mxu1 }
 0x275   : > { %v1716_v59 = vadd.f32 %v4654_v54, %v1141_v14  ;;  %v1710_v21 = vpop.f32.mrb[67].mxu1  ;;  %v6722_v23 = vmul.f32 %v5225_v52, %v6406_v5  ;;  %v5227_v27 = vpop.eup %5226  ;;  %v1145_v52 = vld [vmem:[%s7750_s10 + $0x1b8] sm:$0xff] }
 0x276   : > { %5236 = vpow2.f32 %v1875_v53  ;;  %v1711_v30 = vadd.f32 %v1710_v21, %v1140_v50  ;;  %v6733_v9 = vmul.f32 %v5227_v27, %v6406_v5 }
 0x277   : > { %2059 = vadd.xlane.f32.xlu1 %v6719_v22  ;;  %2061 = vadd.xlane.f32.xlu0 %v6722_v23  ;;  %5238 = vpow2.f32 %v1877_v16  ;;  %v1881_v28 = vmul.f32 1.442695, %v1716_v59  ;;  %v1144_v16 = vld [vmem:[%s7750_s10 + $0x1b0] sm:$0xff] }
 0x278   : > { %v5229_v48 = vpop.eup %5228  ;;  %v1879_v35 = vmul.f32 1.442695, %v1711_v30  ;;  %v4657_v55 = vpop.f32.mrb[68].mxu1 }
 0x279   : > { %v1726_v1 = vadd.f32 %v4657_v55, %v1143_v33  ;;  %v1720_v2 = vpop.f32.mrb[69].mxu1  ;;  %v6736_v40 = vmul.f32 %v5229_v48, %v6406_v5  ;;  %v5231_v14 = vpop.eup %5230  ;;  %v1147_v55 = vld [vmem:[%s7750_s10 + $0x1c8] sm:$0xff] }
 0x27a   : > { %5240 = vpow2.f32 %v1879_v35  ;;  %v1721_v50 = vadd.f32 %v1720_v2, %v1142_v6  ;;  %v6747_v33 = vmul.f32 %v5231_v14, %v6406_v5 }
 0x27b   : > { %2063 = vadd.xlane.f32.xlu1 %v6733_v9  ;;  %2065 = vadd.xlane.f32.xlu0 %v6736_v40  ;;  %5242 = vpow2.f32 %v1881_v28  ;;  %v1885_v54 = vmul.f32 1.442695, %v1726_v1  ;;  %v1146_v28 = vld [vmem:[%s7750_s10 + $0x1c0] sm:$0xff] }
 0x27c   : > { %v5233_v53 = vpop.eup %5232  ;;  %v1883_v59 = vmul.f32 1.442695, %v1721_v50  ;;  %v4660_v21 = vpop.f32.mrb[70].mxu1 }
 0x27d   : > { %v1736_v27 = vadd.f32 %v4660_v21, %v1145_v52  ;;  %v1730_v30 = vpop.f32.mrb[71].mxu1  ;;  %v6750_v6 = vmul.f32 %v5233_v53, %v6406_v5  ;;  %v5235_v48 = vpop.eup %5234 }
 0x27e   : > { %5244 = vpow2.f32 %v1883_v59  ;;  %v1731_v35 = vadd.f32 %v1730_v30, %v1144_v16  ;;  %v6761_v16 = vmul.f32 %v5235_v48, %v6406_v5 }
 0x27f   : > { %7776 = vst [vmem:[#allocation6_spill] sm:$0xff] %v6750_v6  ;;  %2067 = vadd.xlane.f32.xlu1 %v6747_v33  ;;  %2069 = vadd.xlane.f32.xlu0 %v6750_v6  ;;  %5246 = vpow2.f32 %v1885_v54  ;;  %v1889_v2 = vmul.f32 1.442695, %v1736_v27  ;;  %v1149_v6 = vld [vmem:[%s7750_s10 + $0x1d8] sm:$0xff]  ;;  %v1148_v54 = vld [vmem:[%s7750_s10 + $0x1d0] sm:$0xff] }
 0x280   : > { %v5237_v1 = vpop.eup %5236  ;;  %v1887_v14 = vmul.f32 1.442695, %v1731_v35  ;;  %v4663_v50 = vpop.f32.mrb[72].mxu1  ;;  %7777 = vst [vmem:[#allocation7_spill] sm:$0xff] %v6761_v16 }
 0x281   : > { %v1746_v52 = vadd.f32 %v4663_v50, %v1147_v55  ;;  %v1740_v53 = vpop.f32.mrb[73].mxu1  ;;  %v6764_v59 = vmul.f32 %v5237_v1, %v6406_v5  ;;  %v5239_v21 = vpop.eup %5238 }
 0x282   : > { %5248 = vpow2.f32 %v1887_v14  ;;  %v1741_v30 = vadd.f32 %v1740_v53, %v1146_v28  ;;  %v6775_v28 = vmul.f32 %v5239_v21, %v6406_v5 }
 0x283   : > { %7778 = vst [vmem:[#allocation8_spill] sm:$0xff] %v6764_v59  ;;  %2071 = vadd.xlane.f32.xlu1 %v6761_v16  ;;  %2073 = vadd.xlane.f32.xlu0 %v6764_v59  ;;  %5250 = vpow2.f32 %v1889_v2  ;;  %v1893_v48 = vmul.f32 1.442695, %v1746_v52  ;;  %v1151_v16 = vld [vmem:[%s7750_s10 + $0x1e8] sm:$0xff] }
 0x284   : > { %v5241_v27 = vpop.eup %5240  ;;  %v1891_v35 = vmul.f32 1.442695, %v1741_v30  ;;  %v4666_v55 = vpop.f32.mrb[74].mxu1  ;;  %7779 = vst [vmem:[#allocation9_spill] sm:$0xff] %v6775_v28 }
 0x285   : > { %v1756_v1 = vadd.f32 %v4666_v55, %v1149_v6  ;;  %v1750_v14 = vpop.f32.mrb[75].mxu1  ;;  %v6778_v50 = vmul.f32 %v5241_v27, %v6406_v5  ;;  %v5243_v53 = vpop.eup %5242  ;;  %v1150_v6 = vld [vmem:[%s7750_s10 + $0x1e0] sm:$0xff] }
 0x286   : > { %5252 = vpow2.f32 %v1891_v35  ;;  %v1751_v59 = vadd.f32 %v1750_v14, %v1148_v54  ;;  %v6789_v54 = vmul.f32 %v5243_v53, %v6406_v5 }
 0x287   : > { %7780 = vst [vmem:[#allocation10_spill] sm:$0xff] %v6778_v50  ;;  %2075 = vadd.xlane.f32.xlu1 %v6775_v28  ;;  %2077 = vadd.xlane.f32.xlu0 %v6778_v50  ;;  %5254 = vpow2.f32 %v1893_v48  ;;  %v1897_v52 = vmul.f32 1.442695, %v1756_v1  ;;  %v1153_v28 = vld [vmem:[%s7750_s10 + $0x1f8] sm:$0xff] }
 0x288   : > { %v5245_v2 = vpop.eup %5244  ;;  %v1895_v21 = vmul.f32 1.442695, %v1751_v59  ;;  %v4669_v30 = vpop.f32.mrb[76].mxu1 }
 0x289   : > { %v1766_v27 = vadd.f32 %v4669_v30, %v1151_v16  ;;  %v1760_v35 = vpop.f32.mrb[77].mxu1  ;;  %v6792_v55 = vmul.f32 %v5245_v2, %v6406_v5  ;;  %v5247_v14 = vpop.eup %5246  ;;  %v1152_v16 = vld [vmem:[%s7750_s10 + $0x1f0] sm:$0xff] }
 0x28a   : > { %5256 = vpow2.f32 %v1895_v21  ;;  %v1761_v50 = vadd.f32 %v1760_v35, %v1150_v6  ;;  %v6803_v6 = vmul.f32 %v5247_v14, %v6406_v5 }
 0x28b   : > { %7781 = vst [vmem:[#allocation11_spill] sm:$0xff] %v6792_v55  ;;  %2079 = vadd.xlane.f32.xlu1 %v6789_v54  ;;  %2081 = vadd.xlane.f32.xlu0 %v6792_v55  ;;  %5258 = vpow2.f32 %v1897_v52  ;;  %v1901_v48 = vmul.f32 1.442695, %v1766_v27 }
 0x28c   : > { %v5249_v59 = vpop.eup %5248  ;;  %v1899_v1 = vmul.f32 1.442695, %v1761_v50  ;;  %v4672_v53 = vpop.f32.mrb[78].mxu1 }
 0x28d   : > { %v1776_v2 = vadd.f32 %v4672_v53, %v1153_v28  ;;  %v1770_v21 = vpop.f32.mrb[79].mxu1  ;;  %v6806_v30 = vmul.f32 %v5249_v59, %v6406_v5  ;;  %v5251_v35 = vpop.eup %5250 }
 0x28e   : > { %5260 = vpow2.f32 %v1899_v1  ;;  %v1771_v55 = vadd.f32 %v1770_v21, %v1152_v16  ;;  %v6811_v28 = vmul.f32 %v5251_v35, %v6406_v5  ;;  %v5500_v1 = vld [vmem:[%s6393_s28] ss:$0 sm:$0xff] }
 0x28f   : > { %7782 = vst [vmem:[#allocation12_spill] sm:$0xff] %v6806_v30  ;;  %2083 = vadd.xlane.f32.xlu1 %v6803_v6  ;;  %2085 = vadd.xlane.f32.xlu0 %v6806_v30  ;;  %5262 = vpow2.f32 %v1901_v48  ;;  %v1905_v50 = vmul.f32 1.442695, %v1776_v2 }
 0x290   : > { %v5253_v52 = vpop.eup %5252  ;;  %v1903_v27 = vmul.f32 1.442695, %v1771_v55  ;;  %7783 = vst [vmem:[#allocation13_spill] sm:$0xff] %v6811_v28 }
 0x291   : > { %v6814_v14 = vmul.f32 %v5253_v52, %v6406_v5  ;;  %v5255_v59 = vpop.eup %5254 }
 0x292   : > { %5264 = vpow2.f32 %v1903_v27  ;;  %v6819_v53 = vmul.f32 %v5500_v1, %v5255_v59 }
 0x293   : > { %7784 = vst [vmem:[#allocation14_spill] sm:$0xff] %v6814_v14  ;;  %2087 = vadd.xlane.f32.xlu1 %v6811_v28  ;;  %2089 = vadd.xlane.f32.xlu0 %v6814_v14  ;;  %5266 = vpow2.f32 %v1905_v50 }
 0x294   : > { %v5257_v16 = vpop.eup %5256  ;;  %7785 = vst [vmem:[#allocation15_spill] sm:$0xff] %v6819_v53 }
 0x295   : > { %v6821_v48 = vmul.f32 %v5500_v1, %v5257_v16  ;;  %v5259_v55 = vpop.eup %5258 }
 0x296   : > { %v6825_v2 = vmul.f32 %v5500_v1, %v5259_v55 }
 0x297   : > { %7786 = vst [vmem:[#allocation16_spill] sm:$0xff] %v6821_v48  ;;  %2091 = vadd.xlane.f32.xlu1 %v6819_v53  ;;  %2093 = vadd.xlane.f32.xlu0 %v6821_v48 }
 0x298   : > { %v5261_v5 = vpop.eup %5260  ;;  %7787 = vst [vmem:[#allocation17_spill] sm:$0xff] %v6825_v2 }
 0x299   : > { %v6827_v21 = vmul.f32 %v5500_v1, %v5261_v5  ;;  %v5263_v35 = vpop.eup %5262 }
 0x29a   : > { %v6831_v50 = vmul.f32 %v5500_v1, %v5263_v35 }
 0x29b   : > { %7788 = vst [vmem:[#allocation18_spill] sm:$0xff] %v6827_v21  ;;  %2095 = vadd.xlane.f32.xlu1 %v6825_v2  ;;  %2097 = vadd.xlane.f32.xlu0 %v6827_v21 }
 0x29c   : > { %v5265_v52 = vpop.eup %5264  ;;  %7789 = vst [vmem:[#allocation19_spill] sm:$0xff] %v6831_v50 }
 0x29d   : > { %v6833_v27 = vmul.f32 %v5500_v1, %v5265_v52  ;;  %v5267_v59 = vpop.eup %5266 }
 0x29e   : > { %v6837_v16 = vmul.f32 %v5500_v1, %v5267_v59 }
 0x29f   : > { %7790 = vst [vmem:[#allocation20_spill] sm:$0xff] %v6833_v27  ;;  %2099 = vadd.xlane.f32.xlu1 %v6831_v50  ;;  %2101 = vadd.xlane.f32.xlu0 %v6833_v27 }
 0x2a0   : > { %7791 = vst [vmem:[#allocation21_spill] sm:$0xff] %v6837_v16 }
 0x2a3   : > { %2103 = vadd.xlane.f32.xlu1 %v6837_v16 }
 0x2b0   : > { %v1978_v55 = vpop.xlane.xlu0 %1977 }
 0x2b1   : > { %v2105_v5 = vadd.f32 1e-08, %v1978_v55 }
 0x2b3   : > { %5268 = vrcp.f32 %v2105_v5 }
 0x2b4   : > { %v1982_v2 = vpop.xlane.xlu1 %1981  ;;  %v1980_v48 = vpop.xlane.xlu0 %1979 }
 0x2b5   : > { %v2107_v21 = vadd.f32 1e-08, %v1982_v2  ;;  %v2106_v53 = vadd.f32 1e-08, %v1980_v48 }
 0x2b7   : > { %5270 = vrcp.f32 %v2107_v21 }
 0x2b8   : > { %5272 = vrcp.f32 %v2106_v53  ;;  %v1984_v35 = vpop.xlane.xlu1 %1983  ;;  %v1986_v52 = vpop.xlane.xlu0 %1985 }
 0x2b9   : > { %v2108_v14 = vadd.f32 1e-08, %v1984_v35  ;;  %v2109_v28 = vadd.f32 1e-08, %v1986_v52 }
 0x2bb   : > { %5274 = vrcp.f32 %v2108_v14 }
 0x2bc   : > { %5276 = vrcp.f32 %v2109_v28  ;;  %v1988_v27 = vpop.xlane.xlu1 %1987  ;;  %v1990_v1 = vpop.xlane.xlu0 %1989 }
 0x2bd   : > { %v5269_v59 = vpop.eup %5268  ;;  %v2110_v50 = vadd.f32 1e-08, %v1988_v27  ;;  %v2111_v16 = vadd.f32 1e-08, %v1990_v1 }
 0x2be   : > { %v2233_v55 = vmul.f32 %v5269_v59, %v6416_v34 }
 0x2bf   : > { %5278 = vrcp.f32 %v2110_v50 }
 0x2c0   : > { %5280 = vrcp.f32 %v2111_v16  ;;  %v1992_v5 = vpop.xlane.xlu1 %1991  ;;  %4705 = vmatprep.mubr.f32.mxu0 %v2233_v55  ;;  %v1994_v48 = vpop.xlane.xlu0 %1993 }
 0x2c1   : > { %v5271_v2 = vpop.eup %5270  ;;  %v2112_v53 = vadd.f32 1e-08, %v1992_v5  ;;  %v2113_v21 = vadd.f32 1e-08, %v1994_v48 }
 0x2c2   : > { %v5273_v30 = vpop.eup %5272  ;;  %v2235_v35 = vmul.f32 %v5271_v2, %v6428_v47 }
 0x2c3   : > { %5282 = vrcp.f32 %v2112_v53  ;;  %v2234_v28 = vmul.f32 %v5273_v30, %v6431_v49 }
 0x2c4   : > { %5284 = vrcp.f32 %v2113_v21  ;;  %v1996_v14 = vpop.xlane.xlu1 %1995  ;;  %v1998_v27 = vpop.xlane.xlu0 %1997 }
 0x2c5   : > { %v5275_v52 = vpop.eup %5274  ;;  %v2114_v1 = vadd.f32 1e-08, %v1996_v14  ;;  %4706 = vmatmul.mubr.f32.vlgmr.msra.gmra.mrb[32].mxu0 %v2234_v28  ;;  %v2115_v34 = vadd.f32 1e-08, %v1998_v27 }
 0x2c6   : > { %v5277_v50 = vpop.eup %5276  ;;  %4708 = vmatprep.mubr.f32.mxu0 %v2235_v35  ;;  %v2236_v16 = vmul.f32 %v5275_v52, %v6446_v61 }
 0x2c7   : > { %5286 = vrcp.f32 %v2114_v1  ;;  %v2237_v59 = vmul.f32 %v5277_v50, %v6449_v63 }
 0x2c8   : > { %5288 = vrcp.f32 %v2115_v34  ;;  %v2000_v55 = vpop.xlane.xlu1 %1999  ;;  %v2002_v47 = vpop.xlane.xlu0 %2001 }
 0x2c9   : > { %v5279_v5 = vpop.eup %5278  ;;  %v2116_v48 = vadd.f32 1e-08, %v2000_v55  ;;  %4709 = vmatmul.mubr.f32.gmra.mrb[34].mxu0 %v2236_v16  ;;  %v2117_v49 = vadd.f32 1e-08, %v2002_v47 }
 0x2ca   : > { %v5281_v30 = vpop.eup %5280  ;;  %4711 = vmatprep.mubr.f32.mxu0 %v2237_v59  ;;  %v2238_v2 = vmul.f32 %v5279_v5, %v6461_v10 }
 0x2cb   : > { %5290 = vrcp.f32 %v2116_v48  ;;  %v2239_v53 = vmul.f32 %v5281_v30, %v6464_v12 }
 0x2cc   : > { %5292 = vrcp.f32 %v2117_v49  ;;  %v2004_v21 = vpop.xlane.xlu1 %2003  ;;  %v2006_v61 = vpop.xlane.xlu0 %2005 }
 0x2cd   : > { %v5283_v35 = vpop.eup %5282  ;;  %v2118_v28 = vadd.f32 1e-08, %v2004_v21  ;;  %4712 = vmatmul.mubr.f32.gmra.mrb[36].mxu0 %v2238_v2  ;;  %v2119_v63 = vadd.f32 1e-08, %v2006_v61 }
 0x2ce   : > { %v5285_v14 = vpop.eup %5284  ;;  %4714 = vmatprep.mubr.f32.mxu0 %v2239_v53  ;;  %v2240_v27 = vmul.f32 %v5283_v35, %v6476_v41 }
 0x2cf   : > { %5294 = vrcp.f32 %v2118_v28  ;;  %v2241_v52 = vmul.f32 %v5285_v14, %v6479_v0 }
 0x2d0   : > { %5296 = vrcp.f32 %v2119_v63  ;;  %v2008_v1 = vpop.xlane.xlu1 %2007  ;;  %v2010_v10 = vpop.xlane.xlu0 %2009 }
 0x2d1   : > { %v5287_v34 = vpop.eup %5286  ;;  %v2120_v50 = vadd.f32 1e-08, %v2008_v1  ;;  %4715 = vmatmul.mubr.f32.gmra.mrb[38].mxu0 %v2240_v27  ;;  %v2121_v12 = vadd.f32 1e-08, %v2010_v10 }
 0x2d2   : > { %v5289_v16 = vpop.eup %5288  ;;  %4717 = vmatprep.mubr.f32.mxu0 %v2241_v52  ;;  %v2242_v59 = vmul.f32 %v5287_v34, %v6491_v60 }
 0x2d3   : > { %5298 = vrcp.f32 %v2120_v50  ;;  %v2243_v55 = vmul.f32 %v5289_v16, %v6494_v15 }
 0x2d4   : > { %5300 = vrcp.f32 %v2121_v12  ;;  %v2012_v47 = vpop.xlane.xlu1 %2011  ;;  %v2014_v41 = vpop.xlane.xlu0 %2013 }
 0x2d5   : > { %v5291_v5 = vpop.eup %5290  ;;  %v2122_v48 = vadd.f32 1e-08, %v2012_v47  ;;  %4718 = vmatmul.mubr.f32.gmra.mrb[40].mxu0 %v2242_v59  ;;  %v2123_v0 = vadd.f32 1e-08, %v2014_v41 }
 0x2d6   : > { %v5293_v49 = vpop.eup %5292  ;;  %4720 = vmatprep.mubr.f32.mxu0 %v2243_v55  ;;  %v2244_v30 = vmul.f32 %v5291_v5, %v6507_v3 }
 0x2d7   : > { %5302 = vrcp.f32 %v2122_v48  ;;  %v2245_v2 = vmul.f32 %v5293_v49, %v6510_v25 }
 0x2d8   : > { %5304 = vrcp.f32 %v2123_v0  ;;  %v2016_v53 = vpop.xlane.xlu1 %2015  ;;  %v2018_v60 = vpop.xlane.xlu0 %2017 }
 0x2d9   : > { %v5295_v21 = vpop.eup %5294  ;;  %v2124_v61 = vadd.f32 1e-08, %v2016_v53  ;;  %4721 = vmatmul.mubr.f32.gmra.mrb[42].mxu0 %v2244_v30  ;;  %v2125_v15 = vadd.f32 1e-08, %v2018_v60 }
 0x2da   : > { %v5297_v35 = vpop.eup %5296  ;;  %4723 = vmatprep.mubr.f32.mxu0 %v2245_v2  ;;  %v2246_v28 = vmul.f32 %v5295_v21, %v6523_v32 }
 0x2db   : > { %5306 = vrcp.f32 %v2124_v61  ;;  %v2247_v63 = vmul.f32 %v5297_v35, %v6526_v46 }
 0x2dc   : > { %5308 = vrcp.f32 %v2125_v15  ;;  %v2020_v14 = vpop.xlane.xlu1 %2019  ;;  %v2022_v3 = vpop.xlane.xlu0 %2021 }
 0x2dd   : > { %v5299_v27 = vpop.eup %5298  ;;  %v2126_v52 = vadd.f32 1e-08, %v2020_v14  ;;  %4724 = vmatmul.mubr.f32.gmra.mrb[44].mxu0 %v2246_v28  ;;  %v2127_v25 = vadd.f32 1e-08, %v2022_v3 }
 0x2de   : > { %v5301_v1 = vpop.eup %5300  ;;  %4726 = vmatprep.mubr.f32.mxu0 %v2247_v63  ;;  %v2248_v10 = vmul.f32 %v5299_v27, %v6537_v44 }
 0x2df   : > { %5310 = vrcp.f32 %v2126_v52  ;;  %v2249_v34 = vmul.f32 %v5301_v1, %v6540_v45 }
 0x2e0   : > { %5312 = vrcp.f32 %v2127_v25  ;;  %v2024_v50 = vpop.xlane.xlu1 %2023  ;;  %v2026_v32 = vpop.xlane.xlu0 %2025 }
 0x2e1   : > { %v5303_v12 = vpop.eup %5302  ;;  %v2128_v16 = vadd.f32 1e-08, %v2024_v50  ;;  %4727 = vmatmul.mubr.f32.gmra.mrb[46].mxu0 %v2248_v10  ;;  %v2129_v46 = vadd.f32 1e-08, %v2026_v32 }
 0x2e2   : > { %v5305_v59 = vpop.eup %5304  ;;  %4729 = vmatprep.mubr.f32.mxu0 %v2249_v34  ;;  %v2250_v55 = vmul.f32 %v5303_v12, %v6551_v17 }
 0x2e3   : > { %5314 = vrcp.f32 %v2128_v16  ;;  %v2251_v47 = vmul.f32 %v5305_v59, %v6554_v18 }
 0x2e4   : > { %5316 = vrcp.f32 %v2129_v46  ;;  %v2028_v41 = vpop.xlane.xlu1 %2027  ;;  %v2030_v44 = vpop.xlane.xlu0 %2029 }
 0x2e5   : > { %v5307_v5 = vpop.eup %5306  ;;  %v2130_v48 = vadd.f32 1e-08, %v2028_v41  ;;  %4730 = vmatmul.mubr.f32.gmra.mrb[48].mxu0 %v2250_v55  ;;  %v2131_v45 = vadd.f32 1e-08, %v2030_v44 }
 0x2e6   : > { %v5309_v0 = vpop.eup %5308  ;;  %4732 = vmatprep.mubr.f32.mxu0 %v2251_v47  ;;  %v2252_v49 = vmul.f32 %v5307_v5, %v6565_v4 }
 0x2e7   : > { %5318 = vrcp.f32 %v2130_v48  ;;  %v2253_v30 = vmul.f32 %v5309_v0, %v6568_v37 }
 0x2e8   : > { %5320 = vrcp.f32 %v2131_v45  ;;  %v2032_v2 = vpop.xlane.xlu1 %2031  ;;  %v2034_v17 = vpop.xlane.xlu0 %2033 }
 0x2e9   : > { %v5311_v53 = vpop.eup %5310  ;;  %v2132_v60 = vadd.f32 1e-08, %v2032_v2  ;;  %4733 = vmatmul.mubr.f32.gmra.mrb[50].mxu0 %v2252_v49  ;;  %v2133_v18 = vadd.f32 1e-08, %v2034_v17 }
 0x2ea   : > { %v5313_v21 = vpop.eup %5312  ;;  %4735 = vmatprep.mubr.f32.mxu0 %v2253_v30  ;;  %v2254_v61 = vmul.f32 %v5311_v53, %v6579_v31 }
 0x2eb   : > { %5322 = vrcp.f32 %v2132_v60  ;;  %v2255_v15 = vmul.f32 %v5313_v21, %v6582_v57 }
 0x2ec   : > { %5324 = vrcp.f32 %v2133_v18  ;;  %v2036_v35 = vpop.xlane.xlu1 %2035  ;;  %v2038_v4 = vpop.xlane.xlu0 %2037 }
 0x2ed   : > { %v5315_v28 = vpop.eup %5314  ;;  %v2134_v63 = vadd.f32 1e-08, %v2036_v35  ;;  %4736 = vmatmul.mubr.f32.gmra.mrb[52].mxu0 %v2254_v61  ;;  %v2135_v37 = vadd.f32 1e-08, %v2038_v4 }
 0x2ee   : > { %v5317_v14 = vpop.eup %5316  ;;  %4738 = vmatprep.mubr.f32.mxu0 %v2255_v15  ;;  %v2256_v3 = vmul.f32 %v5315_v28, %v6593_v36 }
 0x2ef   : > { %5326 = vrcp.f32 %v2134_v63  ;;  %v2257_v27 = vmul.f32 %v5317_v14, %v6596_v51 }
 0x2f0   : > { %5328 = vrcp.f32 %v2135_v37  ;;  %v2040_v52 = vpop.xlane.xlu1 %2039  ;;  %v2042_v31 = vpop.xlane.xlu0 %2041 }
 0x2f1   : > { %v5319_v25 = vpop.eup %5318  ;;  %v2136_v1 = vadd.f32 1e-08, %v2040_v52  ;;  %4739 = vmatmul.mubr.f32.gmra.mrb[54].mxu0 %v2256_v3  ;;  %v2137_v57 = vadd.f32 1e-08, %v2042_v31 }
 0x2f2   : > { %v5321_v10 = vpop.eup %5320  ;;  %4741 = vmatprep.mubr.f32.mxu0 %v2257_v27  ;;  %v2258_v34 = vmul.f32 %v5319_v25, %v6607_v58 }
 0x2f3   : > { %5330 = vrcp.f32 %v2136_v1  ;;  %v2259_v50 = vmul.f32 %v5321_v10, %v6610_v20 }
 0x2f4   : > { %5332 = vrcp.f32 %v2137_v57  ;;  %v2044_v32 = vpop.xlane.xlu1 %2043  ;;  %v2046_v36 = vpop.xlane.xlu0 %2045 }
 0x2f5   : > { %v5323_v12 = vpop.eup %5322  ;;  %v2138_v16 = vadd.f32 1e-08, %v2044_v32  ;;  %4742 = vmatmul.mubr.f32.gmra.mrb[56].mxu0 %v2258_v34  ;;  %v2139_v51 = vadd.f32 1e-08, %v2046_v36 }
 0x2f6   : > { %v5325_v46 = vpop.eup %5324  ;;  %4744 = vmatprep.mubr.f32.mxu0 %v2259_v50  ;;  %v2260_v59 = vmul.f32 %v5323_v12, %v6621_v7 }
 0x2f7   : > { %5334 = vrcp.f32 %v2138_v16  ;;  %v2261_v55 = vmul.f32 %v5325_v46, %v6624_v8 }
 0x2f8   : > { %5336 = vrcp.f32 %v2139_v51  ;;  %v2048_v47 = vpop.xlane.xlu1 %2047  ;;  %v2050_v58 = vpop.xlane.xlu0 %2049 }
 0x2f9   : > { %v5327_v41 = vpop.eup %5326  ;;  %v2140_v44 = vadd.f32 1e-08, %v2048_v47  ;;  %4745 = vmatmul.mubr.f32.gmra.mrb[58].mxu0 %v2260_v59  ;;  %v2141_v20 = vadd.f32 1e-08, %v2050_v58 }
 0x2fa   : > { %v5329_v5 = vpop.eup %5328  ;;  %4747 = vmatprep.mubr.f32.mxu0 %v2261_v55  ;;  %v2262_v48 = vmul.f32 %v5327_v41, %v6635_v42 }
 0x2fb   : > { %5338 = vrcp.f32 %v2140_v44  ;;  %v2263_v45 = vmul.f32 %v5329_v5, %v6638_v43 }
 0x2fc   : > { %5340 = vrcp.f32 %v2141_v20  ;;  %v2052_v0 = vpop.xlane.xlu1 %2051  ;;  %v2054_v7 = vpop.xlane.xlu0 %2053 }
 0x2fd   : > { %v5331_v49 = vpop.eup %5330  ;;  %v2142_v30 = vadd.f32 1e-08, %v2052_v0  ;;  %4748 = vmatmul.mubr.f32.gmra.mrb[60].mxu0 %v2262_v48  ;;  %v2143_v8 = vadd.f32 1e-08, %v2054_v7 }
 0x2fe   : > { %v5333_v2 = vpop.eup %5332  ;;  %4750 = vmatprep.mubr.f32.mxu0 %v2263_v45  ;;  %v2264_v17 = vmul.f32 %v5331_v49, %v6649_v56 }
 0x2ff   : > { %5342 = vrcp.f32 %v2142_v30  ;;  %v2265_v53 = vmul.f32 %v5333_v2, %v6652_v19 }
 0x300   : > { %5344 = vrcp.f32 %v2143_v8  ;;  %v2056_v60 = vpop.xlane.xlu1 %2055  ;;  %v2058_v42 = vpop.xlane.xlu0 %2057  ;;  %v7792_v8 = vld [vmem:[#allocation6_spill] sm:$0xff] }
 0x301   : > { %v5335_v18 = vpop.eup %5334  ;;  %v2144_v21 = vadd.f32 1e-08, %v2056_v60  ;;  %4751 = vmatmul.mubr.f32.gmra.mrb[62].mxu0 %v2264_v17  ;;  %v2145_v43 = vadd.f32 1e-08, %v2058_v42 }
 0x302   : > { %v5337_v61 = vpop.eup %5336  ;;  %4753 = vmatprep.mubr.f32.mxu0 %v2265_v53  ;;  %v2266_v15 = vmul.f32 %v5335_v18, %v6663_v38  ;;  %v7793_v18 = vld [vmem:[#allocation7_spill] sm:$0xff] }
 0x303   : > { %5346 = vrcp.f32 %v2144_v21  ;;  %v2267_v35 = vmul.f32 %v5337_v61, %v6666_v29 }
 0x304   : > { %5348 = vrcp.f32 %v2145_v43  ;;  %v2060_v4 = vpop.xlane.xlu1 %2059  ;;  %v2062_v56 = vpop.xlane.xlu0 %2061  ;;  %v7794_v43 = vld [vmem:[#allocation8_spill] sm:$0xff] }
 0x305   : > { %v5339_v28 = vpop.eup %5338  ;;  %v2146_v63 = vadd.f32 1e-08, %v2060_v4  ;;  %4754 = vmatmul.mubr.f32.gmra.mrb[64].mxu0 %v2266_v15  ;;  %v2147_v19 = vadd.f32 1e-08, %v2062_v56 }
 0x306   : > { %v5341_v37 = vpop.eup %5340  ;;  %4756 = vmatprep.mubr.f32.mxu0 %v2267_v35  ;;  %v2268_v14 = vmul.f32 %v5339_v28, %v6677_v62 }
 0x307   : > { %5350 = vrcp.f32 %v2146_v63  ;;  %v2269_v3 = vmul.f32 %v5341_v37, %v6680_v13  ;;  %v7795_v63 = vld [vmem:[#allocation9_spill] sm:$0xff]  ;;  %v7796_v37 = vld [vmem:[#allocation10_spill] sm:$0xff] }
 0x308   : > { %5352 = vrcp.f32 %v2147_v19  ;;  %v2064_v27 = vpop.xlane.xlu1 %2063  ;;  %v2066_v38 = vpop.xlane.xlu0 %2065 }
 0x309   : > { %v5343_v52 = vpop.eup %5342  ;;  %v2148_v31 = vadd.f32 1e-08, %v2064_v27  ;;  %4757 = vmatmul.mubr.f32.gmra.mrb[66].mxu0 %v2268_v14  ;;  %v2149_v29 = vadd.f32 1e-08, %v2066_v38 }
 0x30a   : > { %v5345_v25 = vpop.eup %5344  ;;  %4759 = vmatprep.mubr.f32.mxu0 %v2269_v3  ;;  %v2270_v1 = vmul.f32 %v5343_v52, %v6691_v24 }
 0x30b   : > { %5354 = vrcp.f32 %v2148_v31  ;;  %v2271_v57 = vmul.f32 %v5345_v25, %v6694_v26 }
 0x30c   : > { %5356 = vrcp.f32 %v2149_v29  ;;  %v2068_v10 = vpop.xlane.xlu1 %2067  ;;  %v2070_v62 = vpop.xlane.xlu0 %2069 }
 0x30d   : > { %v5347_v34 = vpop.eup %5346  ;;  %v2150_v50 = vadd.f32 1e-08, %v2068_v10  ;;  %4760 = vmatmul.mubr.f32.gmra.mrb[68].mxu0 %v2270_v1  ;;  %v2151_v13 = vadd.f32 1e-08, %v2070_v62  ;;  %v7797_v1 = vld [vmem:[#allocation11_spill] sm:$0xff] }
 0x30e   : > { %v5349_v32 = vpop.eup %5348  ;;  %4762 = vmatprep.mubr.f32.mxu0 %v2271_v57  ;;  %v2272_v36 = vmul.f32 %v5347_v34, %v6705_v39 }
 0x30f   : > { %5358 = vrcp.f32 %v2150_v50  ;;  %v2273_v12 = vmul.f32 %v5349_v32, %v6708_v11 }
 0x310   : > { %5360 = vrcp.f32 %v2151_v13  ;;  %v2072_v16 = vpop.xlane.xlu1 %2071  ;;  %v2074_v24 = vpop.xlane.xlu0 %2073 }
 0x311   : > { %v5351_v51 = vpop.eup %5350  ;;  %v2152_v46 = vadd.f32 1e-08, %v2072_v16  ;;  %4763 = vmatmul.mubr.f32.gmra.mrb[70].mxu0 %v2272_v36  ;;  %v2153_v26 = vadd.f32 1e-08, %v2074_v24 }
 0x312   : > { %v5353_v59 = vpop.eup %5352  ;;  %4765 = vmatprep.mubr.f32.mxu0 %v2273_v12  ;;  %v2274_v55 = vmul.f32 %v5351_v51, %v6719_v22  ;;  %v7798_v12 = vld [vmem:[#allocation12_spill] sm:$0xff] }
 0x313   : > { %5362 = vrcp.f32 %v2152_v46  ;;  %v2275_v47 = vmul.f32 %v5353_v59, %v6722_v23 }
 0x314   : > { %5364 = vrcp.f32 %v2153_v26  ;;  %v2076_v58 = vpop.xlane.xlu1 %2075  ;;  %v2078_v39 = vpop.xlane.xlu0 %2077 }
 0x315   : > { %v5355_v41 = vpop.eup %5354  ;;  %v2154_v44 = vadd.f32 1e-08, %v2076_v58  ;;  %4766 = vmatmul.mubr.f32.gmra.mrb[72].mxu0 %v2274_v55  ;;  %v2155_v11 = vadd.f32 1e-08, %v2078_v39  ;;  %v7799_v55 = vld [vmem:[#allocation13_spill] sm:$0xff]  ;;  %v7800_v58 = vld [vmem:[#allocation14_spill] sm:$0xff] }
 0x316   : > { %v5357_v20 = vpop.eup %5356  ;;  %4768 = vmatprep.mubr.f32.mxu0 %v2275_v47  ;;  %v2276_v5 = vmul.f32 %v5355_v41, %v6733_v9 }
 0x317   : > { %5366 = vrcp.f32 %v2154_v44  ;;  %v2277_v48 = vmul.f32 %v5357_v20, %v6736_v40  ;;  %v7801_v20 = vld [vmem:[#allocation15_spill] sm:$0xff] }
 0x318   : > { %5368 = vrcp.f32 %v2155_v11  ;;  %v2080_v45 = vpop.xlane.xlu1 %2079  ;;  %v2082_v22 = vpop.xlane.xlu0 %2081 }
 0x319   : > { %v5359_v0 = vpop.eup %5358  ;;  %v2156_v7 = vadd.f32 1e-08, %v2080_v45  ;;  %4769 = vmatmul.mubr.f32.gmra.mrb[74].mxu0 %v2276_v5  ;;  %v2157_v23 = vadd.f32 1e-08, %v2082_v22 }
 0x31a   : > { %v5361_v49 = vpop.eup %5360  ;;  %4771 = vmatprep.mubr.f32.mxu0 %v2277_v48  ;;  %v2278_v30 = vmul.f32 %v5359_v0, %v6747_v33  ;;  %v7802_v48 = vld [vmem:[#allocation16_spill] sm:$0xff] }
 0x31b   : > { %5370 = vrcp.f32 %v2156_v7  ;;  %v2279_v2 = vmul.f32 %v5361_v49, %v7792_v8  ;;  %v7803_v7 = vld [vmem:[#allocation17_spill] sm:$0xff]  ;;  %v7804_v49 = vld [vmem:[#allocation18_spill] sm:$0xff] }
 0x31c   : > { %5372 = vrcp.f32 %v2157_v23  ;;  %v2084_v17 = vpop.xlane.xlu1 %2083  ;;  %v2086_v9 = vpop.xlane.xlu0 %2085 }
 0x31d   : > { %v5363_v53 = vpop.eup %5362  ;;  %v2158_v60 = vadd.f32 1e-08, %v2084_v17  ;;  %4772 = vmatmul.mubr.f32.gmra.mrb[76].mxu0 %v2278_v30  ;;  %v2159_v40 = vadd.f32 1e-08, %v2086_v9  ;;  %v7805_v17 = vld [vmem:[#allocation19_spill] sm:$0xff] }
 0x31e   : > { %v5365_v42 = vpop.eup %5364  ;;  %4774 = vmatprep.mubr.f32.mxu0 %v2279_v2  ;;  %v2280_v21 = vmul.f32 %v5363_v53, %v7793_v18  ;;  %v7806_v53 = vld [vmem:[#allocation20_spill] sm:$0xff] }
 0x31f   : > { %5374 = vrcp.f32 %v2158_v60  ;;  %v2281_v61 = vmul.f32 %v5365_v42, %v7794_v43  ;;  %v7807_v42 = vld [vmem:[#allocation21_spill] sm:$0xff] }
 0x320   : > { %5376 = vrcp.f32 %v2159_v40  ;;  %v2088_v15 = vpop.xlane.xlu1 %2087  ;;  %v2090_v33 = vpop.xlane.xlu0 %2089 }
 0x321   : > { %v5367_v35 = vpop.eup %5366  ;;  %v2160_v4 = vadd.f32 1e-08, %v2088_v15  ;;  %4775 = vmatmul.mubr.f32.gmra.mrb[78].mxu0 %v2280_v21  ;;  %v2161_v56 = vadd.f32 1e-08, %v2090_v33 }
 0x322   : > { %v5369_v28 = vpop.eup %5368  ;;  %4777 = vmatprep.mubr.f32.mxu0 %v2281_v61  ;;  %v2282_v19 = vmul.f32 %v5367_v35, %v7795_v63 }
 0x323   : > { %5378 = vrcp.f32 %v2160_v4  ;;  %v2283_v14 = vmul.f32 %v5369_v28, %v7796_v37 }
 0x324   : > { %5380 = vrcp.f32 %v2161_v56  ;;  %v2092_v3 = vpop.xlane.xlu1 %2091  ;;  %v2094_v27 = vpop.xlane.xlu0 %2093 }
 0x325   : > { %v5371_v38 = vpop.eup %5370  ;;  %v2162_v52 = vadd.f32 1e-08, %v2092_v3  ;;  %4778 = vmatmul.mubr.f32.gmra.mrb[80].mxu0 %v2282_v19  ;;  %v2163_v31 = vadd.f32 1e-08, %v2094_v27 }
 0x326   : > { %v5373_v29 = vpop.eup %5372  ;;  %4780 = vmatprep.mubr.f32.mxu0 %v2283_v14  ;;  %v2284_v25 = vmul.f32 %v5371_v38, %v6789_v54 }
 0x327   : > { %5382 = vrcp.f32 %v2162_v52  ;;  %v2285_v57 = vmul.f32 %v5373_v29, %v7797_v1 }
 0x328   : > { %5384 = vrcp.f32 %v2163_v31  ;;  %v2096_v10 = vpop.xlane.xlu1 %2095  ;;  %v2098_v62 = vpop.xlane.xlu0 %2097  ;;  %v5501_v31 = vld [vmem:[%s7749_s9 + $0x8] sm:$0xff] }
 0x329   : > { %v5375_v34 = vpop.eup %5374  ;;  %v2164_v50 = vadd.f32 1e-08, %v2096_v10  ;;  %4781 = vmatmul.mubr.f32.gmra.mrb[82].mxu0 %v2284_v25  ;;  %v2165_v13 = vadd.f32 1e-08, %v2098_v62  ;;  %v5502_v25 = vld [vmem:[%s7749_s9 + $0x88] sm:$0xff]  ;;  %v5503_v10 = vld [vmem:[%s7749_s9] sm:$0xff] }
 0x32a   : > { %v5377_v32 = vpop.eup %5376  ;;  %4783 = vmatprep.mubr.f32.mxu0 %v2285_v57  ;;  %v2286_v36 = vmul.f32 %v5375_v34, %v6803_v6  ;;  %v5504_v34 = vld [vmem:[%s7749_s9 + $0x80] sm:$0xff] }
 0x32b   : > { %5386 = vrcp.f32 %v2164_v50  ;;  %v2287_v16 = vmul.f32 %v5377_v32, %v7798_v12  ;;  %v5505_v12 = vld [vmem:[%s7749_s9 + $0x18] sm:$0xff] }
 0x32c   : > { %5388 = vrcp.f32 %v2165_v13  ;;  %v2100_v24 = vpop.xlane.xlu1 %2099  ;;  %v2102_v54 = vpop.xlane.xlu0 %2101 }
 0x32d   : > { %v5379_v51 = vpop.eup %5378  ;;  %v2166_v46 = vadd.f32 1e-08, %v2100_v24  ;;  %4784 = vmatmul.mubr.f32.gmra.mrb[84].mxu0 %v2286_v36  ;;  %v2167_v26 = vadd.f32 1e-08, %v2102_v54  ;;  %v5506_v24 = vld [vmem:[%s7749_s9 + $0x98] sm:$0xff] }
 0x32e   : > { %v5381_v59 = vpop.eup %5380  ;;  %4786 = vmatprep.mubr.f32.mxu0 %v2287_v16  ;;  %v2288_v47 = vmul.f32 %v5379_v51, %v7799_v55 }
 0x32f   : > { %5390 = vrcp.f32 %v2166_v46  ;;  %v2289_v39 = vmul.f32 %v5381_v59, %v7800_v58  ;;  %v5507_v46 = vld [vmem:[%s7749_s9 + $0x10] sm:$0xff] }
 0x330   : > { %5392 = vrcp.f32 %v2167_v26  ;;  %v2104_v41 = vpop.xlane.xlu1 %2103  ;;  %v5508_v59 = vld [vmem:[%s7749_s9 + $0x90] sm:$0xff] }
 0x331   : > { %v5383_v6 = vpop.eup %5382  ;;  %v2168_v44 = vadd.f32 1e-08, %v2104_v41  ;;  %4787 = vmatmul.mubr.f32.gmra.mrb[86].mxu0 %v2288_v47  ;;  %v5509_v41 = vld [vmem:[%s7749_s9 + $0x28] sm:$0xff] }
 0x332   : > { %v5385_v11 = vpop.eup %5384  ;;  %4789 = vmatprep.mubr.f32.mxu0 %v2289_v39  ;;  %v2290_v5 = vmul.f32 %v5383_v6, %v7801_v20 }
 0x333   : > { %5394 = vrcp.f32 %v2168_v44  ;;  %v2291_v45 = vmul.f32 %v5385_v11, %v7802_v48  ;;  %v5510_v44 = vld [vmem:[%s7749_s9 + $0xa8] sm:$0xff] }
 0x335   : > { %v5387_v22 = vpop.eup %5386  ;;  %4790 = vmatmul.mubr.f32.gmra.mrb[88].mxu0 %v2290_v5  ;;  %v5511_v5 = vld [vmem:[%s7749_s9 + $0x20] sm:$0xff] }
 0x336   : > { %v5389_v0 = vpop.eup %5388  ;;  %4792 = vmatprep.mubr.f32.mxu0 %v2291_v45  ;;  %v2292_v23 = vmul.f32 %v5387_v22, %v7803_v7  ;;  %v5512_v45 = vld [vmem:[%s7749_s9 + $0xa0] sm:$0xff] }
 0x337   : > { %v2293_v30 = vmul.f32 %v5389_v0, %v7804_v49  ;;  %v5513_v49 = vld [vmem:[%s7749_s9 + $0x38] sm:$0xff] }
 0x339   : > { %v5391_v8 = vpop.eup %5390  ;;  %4793 = vmatmul.mubr.f32.gmra.mrb[90].mxu0 %v2292_v23 }
 0x33a   : > { %v5393_v2 = vpop.eup %5392  ;;  %4795 = vmatprep.mubr.f32.mxu0 %v2293_v30  ;;  %v2294_v9 = vmul.f32 %v5391_v8, %v7805_v17  ;;  %v5514_v8 = vld [vmem:[%s7749_s9 + $0xb8] sm:$0xff] }
 0x33b   : > { %v2295_v60 = vmul.f32 %v5393_v2, %v7806_v53 }
 0x33d   : > { %v5395_v40 = vpop.eup %5394  ;;  %4796 = vmatmul.mubr.f32.gmra.mrb[92].mxu0 %v2294_v9  ;;  %v5515_v9 = vld [vmem:[%s7749_s9 + $0x30] sm:$0xff] }
 0x33e   : > { %4798 = vmatprep.mubr.f32.mxu0 %v2295_v60  ;;  %v2296_v18 = vmul.f32 %v5395_v40, %v7807_v42  ;;  %v5516_v60 = vld [vmem:[%s7749_s9 + $0xb0] sm:$0xff] }
 0x341   : > { %4799 = vmatmul.mubr.f32.gmra.mrb[94].mxu0 %v2296_v18 }
 0x398   : > { %v4707_v21 = vpop.f32.mrb[32].mxu0 }
 0x399   : > { %v2363_v43 = vpop.f32.mrb[33].mxu0  ;;  %v2683_v29 = vmul.f32 %v5501_v31, %v4707_v21 }
 0x39a   : > { %v2682_v62 = vmul.f32 %v5503_v10, %v2363_v43  ;;  %v5517_v43 = vld [vmem:[%s7749_s9 + $0x48] sm:$0xff] }
 0x39c   : > { %v4710_v61 = vpop.f32.mrb[34].mxu0 }
 0x39d   : > { %v2373_v15 = vpop.f32.mrb[35].mxu0  ;;  %v2685_v16 = vmul.f32 %v5505_v12, %v4710_v61 }
 0x39e   : > { %v2684_v26 = vmul.f32 %v5507_v46, %v2373_v15  ;;  %v5518_v15 = vld [vmem:[%s7749_s9 + $0xc8] sm:$0xff] }
 0x3a0   : > { %v4713_v33 = vpop.f32.mrb[36].mxu0 }
 0x3a1   : > { %v2383_v35 = vpop.f32.mrb[37].mxu0  ;;  %v2687_v6 = vmul.f32 %v5509_v41, %v4713_v33 }
 0x3a2   : > { %v2686_v48 = vmul.f32 %v5511_v5, %v2383_v35 }
 0x3a4   : > { %v4716_v4 = vpop.f32.mrb[38].mxu0 }
 0x3a5   : > { %v2393_v56 = vpop.f32.mrb[39].mxu0  ;;  %v2689_v30 = vmul.f32 %v5513_v49, %v4716_v4  ;;  %v5519_v4 = vld [vmem:[%s7749_s9 + $0x40] sm:$0xff] }
 0x3a6   : > { %v2688_v53 = vmul.f32 %v5515_v9, %v2393_v56 }
 0x3a8   : > { %v4719_v28 = vpop.f32.mrb[40].mxu0 }
 0x3a9   : > { %v2403_v63 = vpop.f32.mrb[41].mxu0  ;;  %v2691_v61 = vmul.f32 %v5517_v43, %v4719_v28  ;;  %v5535_v43 = vld [vmem:[%s7749_s9 + $0x118] sm:$0xff] }
 0x3aa   : > { %v2690_v56 = vmul.f32 %v5519_v4, %v2403_v63  ;;  %v5522_v63 = vld [vmem:[%s7749_s9 + $0xd8] sm:$0xff] }
 0x3ac   : > { %v6904_v19 = vpop.f32.mrb[42].mxu0 }
 0x3ad   : > { %v6906_v37 = vpop.f32.mrb[43].mxu0 }
 0x3b0   : > { %v6908_v14 = vpop.f32.mrb[44].mxu0 }
 0x3b1   : > { %v6910_v3 = vpop.f32.mrb[45].mxu0 }
 0x3b4   : > { %v6912_v27 = vpop.f32.mrb[46].mxu0 }
 0x3b5   : > { %v6914_v38 = vpop.f32.mrb[47].mxu0 }
 0x3b8   : > { %v4731_v52 = vpop.f32.mrb[48].mxu0 }
 0x3b9   : > { %v2699_v1 = vmul.f32 %v5502_v25, %v4731_v52  ;;  %v2443_v57 = vpop.f32.mrb[49].mxu0  ;;  %v5520_v52 = vld [vmem:[%s7749_s9 + $0xc0] sm:$0xff] }
 0x3ba   : > { %v2698_v50 = vmul.f32 %v5504_v34, %v2443_v57  ;;  %v5523_v34 = vld [vmem:[%s7749_s9 + $0x50] sm:$0xff] }
 0x3bb   : > { %v6928_v13 = vadd.f32 %v2699_v1, %v2683_v29  ;;  %v5521_v1 = vld [vmem:[%s7749_s9 + $0x58] sm:$0xff] }
 0x3bc   : > { %v6930_v32 = vadd.f32 %v2698_v50, %v2682_v62  ;;  %v4734_v36 = vpop.f32.mrb[50].mxu0  ;;  %v2693_v57 = vmul.f32 %v5521_v1, %v6904_v19  ;;  %v2692_v50 = vmul.f32 %v5523_v34, %v6906_v37  ;;  %v5526_v37 = vld [vmem:[%s7749_s9 + $0xe8] sm:$0xff]  ;;  %v5540_v34 = vld [vmem:[%s7749_s9 + $0x130] sm:$0xff] }
 0x3bd   : > { %v2701_v54 = vmul.f32 %v5506_v24, %v4734_v36  ;;  %v2453_v51 = vpop.f32.mrb[51].mxu0  ;;  %v5524_v36 = vld [vmem:[%s7749_s9 + $0xd0] sm:$0xff] }
 0x3be   : > { %v2700_v55 = vmul.f32 %v5508_v59, %v2453_v51  ;;  %v5527_v59 = vld [vmem:[%s7749_s9 + $0x60] sm:$0xff] }
 0x3bf   : > { %v6944_v47 = vadd.f32 %v2701_v54, %v2685_v16  ;;  %v5525_v54 = vld [vmem:[%s7749_s9 + $0x68] sm:$0xff] }
 0x3c0   : > { %v6946_v58 = vadd.f32 %v2700_v55, %v2684_v26  ;;  %v4737_v39 = vpop.f32.mrb[52].mxu0  ;;  %v2695_v51 = vmul.f32 %v5525_v54, %v6908_v14  ;;  %v2694_v55 = vmul.f32 %v5527_v59, %v6910_v3  ;;  %v5530_v3 = vld [vmem:[%s7749_s9 + $0xf8] sm:$0xff] }
 0x3c1   : > { %v2703_v11 = vmul.f32 %v5510_v44, %v4737_v39  ;;  %v2463_v20 = vpop.f32.mrb[53].mxu0  ;;  %v5528_v39 = vld [vmem:[%s7749_s9 + $0xe0] sm:$0xff] }
 0x3c2   : > { %v2702_v22 = vmul.f32 %v5512_v45, %v2463_v20  ;;  %v5531_v45 = vld [vmem:[%s7749_s9 + $0x70] sm:$0xff] }
 0x3c3   : > { %v6960_v0 = vadd.f32 %v2703_v11, %v2687_v6  ;;  %v5529_v11 = vld [vmem:[%s7749_s9 + $0x78] sm:$0xff] }
 0x3c4   : > { %v6962_v7 = vadd.f32 %v2702_v22, %v2686_v48  ;;  %v4740_v23 = vpop.f32.mrb[54].mxu0  ;;  %v2697_v20 = vmul.f32 %v5529_v11, %v6912_v27  ;;  %v2696_v22 = vmul.f32 %v5531_v45, %v6914_v38  ;;  %v5534_v38 = vld [vmem:[%s7749_s9 + $0x100] sm:$0xff]  ;;  %v5545_v11 = vld [vmem:[%s7749_s9 + $0x168] sm:$0xff] }
 0x3c5   : > { %v2705_v2 = vmul.f32 %v5514_v8, %v4740_v23  ;;  %v2473_v17 = vpop.f32.mrb[55].mxu0  ;;  %v5532_v23 = vld [vmem:[%s7749_s9 + $0xf0] sm:$0xff] }
 0x3c6   : > { %v2704_v40 = vmul.f32 %v5516_v60, %v2473_v17 }
 0x3c7   : > { %v6976_v42 = vadd.f32 %v2705_v2, %v2689_v30  ;;  %v5533_v2 = vld [vmem:[%s7749_s9 + $0x108] sm:$0xff] }
 0x3c8   : > { %v6978_v18 = vadd.f32 %v2704_v40, %v2688_v53  ;;  %v4743_v21 = vpop.f32.mrb[56].mxu0 }
 0x3c9   : > { %v2707_v33 = vmul.f32 %v5518_v15, %v4743_v21  ;;  %v2483_v35 = vpop.f32.mrb[57].mxu0 }
 0x3ca   : > { %v2706_v31 = vmul.f32 %v5520_v52, %v2483_v35 }
 0x3cb   : > { %v6992_v29 = vadd.f32 %v2707_v33, %v2691_v61  ;;  %v5536_v33 = vld [vmem:[%s7749_s9 + $0x110] sm:$0xff] }
 0x3cc   : > { %v6994_v25 = vadd.f32 %v2706_v31, %v2690_v56  ;;  %v4746_v28 = vpop.f32.mrb[58].mxu0  ;;  %v5537_v56 = vld [vmem:[%s7749_s9 + $0x128] sm:$0xff] }
 0x3cd   : > { %v2709_v10 = vmul.f32 %v5522_v63, %v4746_v28  ;;  %v2493_v62 = vpop.f32.mrb[59].mxu0  ;;  %v5538_v28 = vld [vmem:[%s7749_s9 + $0x120] sm:$0xff]  ;;  %v5539_v63 = vld [vmem:[%s7749_s9 + $0x138] sm:$0xff] }
 0x3ce   : > { %v2708_v12 = vmul.f32 %v5524_v36, %v2493_v62 }
 0x3cf   : > { %v7010_v16 = vadd.f32 %v2709_v10, %v2693_v57 }
 0x3d0   : > { %v7012_v19 = vadd.f32 %v2708_v12, %v2692_v50  ;;  %v4749_v24 = vpop.f32.mrb[60].mxu0  ;;  %v5541_v12 = vld [vmem:[%s7749_s9 + $0x148] sm:$0xff] }
 0x3d1   : > { %v2711_v46 = vmul.f32 %v5526_v37, %v4749_v24  ;;  %v2503_v26 = vpop.f32.mrb[61].mxu0 }
 0x3d2   : > { %v2710_v41 = vmul.f32 %v5528_v39, %v2503_v26  ;;  %v5543_v26 = vld [vmem:[%s7749_s9 + $0x158] sm:$0xff]  ;;  %v5544_v39 = vld [vmem:[%s7749_s9 + $0x150] sm:$0xff] }
 0x3d3   : > { %v7028_v6 = vadd.f32 %v2711_v46, %v2695_v51  ;;  %v5542_v51 = vld [vmem:[%s7749_s9 + $0x140] sm:$0xff] }
 0x3d4   : > { %v7030_v14 = vadd.f32 %v2710_v41, %v2694_v55  ;;  %v4752_v44 = vpop.f32.mrb[62].mxu0 }
 0x3d5   : > { %v2713_v5 = vmul.f32 %v5530_v3, %v4752_v44  ;;  %v2513_v48 = vpop.f32.mrb[63].mxu0 }
 0x3d6   : > { %v2712_v49 = vmul.f32 %v5532_v23, %v2513_v48 }
 0x3d7   : > { %v7046_v30 = vadd.f32 %v2713_v5, %v2697_v20  ;;  %v5546_v5 = vld [vmem:[%s7749_s9 + $0x160] sm:$0xff] }
 0x3d8   : > { %v7048_v27 = vadd.f32 %v2712_v49, %v2696_v22  ;;  %v4755_v8 = vpop.f32.mrb[64].mxu0  ;;  %v5547_v22 = vld [vmem:[%s7749_s9 + $0x178] sm:$0xff] }
 0x3d9   : > { %v2715_v17 = vmul.f32 %v5533_v2, %v4755_v8  ;;  %v2523_v9 = vpop.f32.mrb[65].mxu0  ;;  %v5548_v8 = vld [vmem:[%s7749_s9 + $0x170] sm:$0xff] }
 0x3da   : > { %v2714_v53 = vmul.f32 %v5534_v38, %v2523_v9  ;;  %v5549_v9 = vld [vmem:[%s7749_s9 + $0x188] sm:$0xff] }
 0x3db   : > { %v7057_v60 = vadd.f32 %v6928_v13, %v2715_v17 }
 0x3dc   : > { %v7060_v40 = vadd.f32 %v6930_v32, %v2714_v53  ;;  %v4758_v21 = vpop.f32.mrb[66].mxu0 }
 0x3dd   : > { %v2717_v61 = vmul.f32 %v5535_v43, %v4758_v21  ;;  %v2533_v15 = vpop.f32.mrb[67].mxu0  ;;  %v5550_v21 = vld [vmem:[%s7749_s9 + $0x180] sm:$0xff] }
 0x3de   : > { %v2716_v35 = vmul.f32 %v5536_v33, %v2533_v15 }
 0x3df   : > { %v7069_v4 = vadd.f32 %v6944_v47, %v2717_v61 }
 0x3e0   : > { %v7072_v13 = vadd.f32 %v6946_v58, %v2716_v35  ;;  %v4761_v32 = vpop.f32.mrb[68].mxu0 }
 0x3e1   : > { %v2719_v52 = vmul.f32 %v5537_v56, %v4761_v32  ;;  %v2543_v31 = vpop.f32.mrb[69].mxu0  ;;  %v5552_v56 = vld [vmem:[%s7749_s9 + $0x190] sm:$0xff] }
 0x3e2   : > { %v2718_v1 = vmul.f32 %v5538_v28, %v2543_v31 }
 0x3e3   : > { %v7081_v57 = vadd.f32 %v6960_v0, %v2719_v52 }
 0x3e4   : > { %v7084_v47 = vadd.f32 %v6962_v7, %v2718_v1  ;;  %v4764_v58 = vpop.f32.mrb[70].mxu0  ;;  %v5553_v1 = vld [vmem:[%s7749_s9 + $0x1a8] sm:$0xff] }
 0x3e5   : > { %v2721_v10 = vmul.f32 %v5539_v63, %v4764_v58  ;;  %v2553_v62 = vpop.f32.mrb[71].mxu0 }
 0x3e6   : > { %v2720_v50 = vmul.f32 %v5540_v34, %v2553_v62  ;;  %v5554_v62 = vld [vmem:[%s7749_s9 + $0x1a0] sm:$0xff] }
 0x3e7   : > { %v7093_v36 = vadd.f32 %v6976_v42, %v2721_v10 }
 0x3e8   : > { %v7096_v0 = vadd.f32 %v6978_v18, %v2720_v50  ;;  %v4767_v7 = vpop.f32.mrb[72].mxu0 }
 0x3e9   : > { %v2723_v24 = vmul.f32 %v5541_v12, %v4767_v7  ;;  %v2563_v54 = vpop.f32.mrb[73].mxu0  ;;  %v5555_v12 = vld [vmem:[%s7749_s9 + $0x1b8] sm:$0xff] }
 0x3ea   : > { %v2722_v37 = vmul.f32 %v5542_v51, %v2563_v54 }
 0x3eb   : > { %v7105_v46 = vadd.f32 %v6992_v29, %v2723_v24 }
 0x3ec   : > { %v7108_v42 = vadd.f32 %v6994_v25, %v2722_v37  ;;  %v4770_v18 = vpop.f32.mrb[74].mxu0  ;;  %v5556_v37 = vld [vmem:[%s7749_s9 + $0x1b0] sm:$0xff] }
 0x3ed   : > { %v2725_v59 = vmul.f32 %v5543_v26, %v4770_v18  ;;  %v2573_v55 = vpop.f32.mrb[75].mxu0 }
 0x3ee   : > { %v2724_v41 = vmul.f32 %v5544_v39, %v2573_v55  ;;  %v5557_v55 = vld [vmem:[%s7749_s9 + $0x1c8] sm:$0xff] }
 0x3ef   : > { %v7117_v44 = vadd.f32 %v7010_v16, %v2725_v59 }
 0x3f0   : > { %v7120_v29 = vadd.f32 %v7012_v19, %v2724_v41  ;;  %v4773_v25 = vpop.f32.mrb[76].mxu0 }
 0x3f1   : > { %v2727_v20 = vmul.f32 %v5545_v11, %v4773_v25  ;;  %v2583_v3 = vpop.f32.mrb[77].mxu0  ;;  %v5558_v11 = vld [vmem:[%s7749_s9 + $0x1c0] sm:$0xff] }
 0x3f2   : > { %v2726_v48 = vmul.f32 %v5546_v5, %v2583_v3 }
 0x3f3   : > { %v7129_v45 = vadd.f32 %v7028_v6, %v2727_v20 }
 0x3f4   : > { %v7132_v16 = vadd.f32 %v7030_v14, %v2726_v48  ;;  %v4776_v19 = vpop.f32.mrb[78].mxu0  ;;  %v5559_v48 = vld [vmem:[%s7749_s9 + $0x1d8] sm:$0xff] }
 0x3f5   : > { %v2729_v23 = vmul.f32 %v5547_v22, %v4776_v19  ;;  %v2593_v49 = vpop.f32.mrb[79].mxu0 }
 0x3f6   : > { %v2728_v2 = vmul.f32 %v5548_v8, %v2593_v49  ;;  %v5560_v49 = vld [vmem:[%s7749_s9 + $0x1d0] sm:$0xff] }
 0x3f7   : > { %v7141_v17 = vadd.f32 %v7046_v30, %v2729_v23 }
 0x3f8   : > { %v7144_v6 = vadd.f32 %v7048_v27, %v2728_v2  ;;  %v4779_v14 = vpop.f32.mrb[80].mxu0  ;;  %v5551_v27 = vld [vmem:[%s7749_s9 + $0x198] sm:$0xff] }
 0x3f9   : > { %v2731_v38 = vmul.f32 %v5549_v9, %v4779_v14  ;;  %v2603_v53 = vpop.f32.mrb[81].mxu0  ;;  %v5561_v9 = vld [vmem:[%s7749_s9 + $0x1e8] sm:$0xff] }
 0x3fa   : > { %v2730_v43 = vmul.f32 %v5550_v21, %v2603_v53 }
 0x3fb   : > { %v7153_v61 = vadd.f32 %v7057_v60, %v2731_v38 }
 0x3fc   : > { %v4782_v30 = vpop.f32.mrb[82].mxu0  ;;  %v7156_v15 = vadd.f32 %v7060_v40, %v2730_v43  ;;  %v5562_v43 = vld [vmem:[%s7749_s9 + $0x1e0] sm:$0xff] }
 0x3fd   : > { %v2733_v33 = vmul.f32 %v5551_v27, %v4782_v30  ;;  %v2613_v35 = vpop.f32.mrb[83].mxu0  ;;  %v2797_v32 = vsel %vm462_vm0, %v7153_v61, 0.0 }
 0x3fe   : > { %v2732_v52 = vmul.f32 %v5552_v56, %v2613_v35  ;;  %2798 = vadd.xlane.f32.xlu1 %v2797_v32  ;;  %v2794_v60 = vsel %vm462_vm0, %v7156_v15, 0.0  ;;  %v5563_v35 = vld [vmem:[%s7749_s9 + $0x1f8] sm:$0xff] }
 0x3ff   : > { %2795 = vadd.xlane.f32.xlu0 %v2794_v60  ;;  %v7169_v40 = vadd.f32 %v7069_v4, %v2733_v33  ;;  %v5564_v60 = vld [vmem:[%s7749_s9 + $0x1f0] sm:$0xff] }
 0x400   : > { %v4785_v31 = vpop.f32.mrb[84].mxu0  ;;  %v7172_v28 = vadd.f32 %v7072_v13, %v2732_v52 }
 0x401   : > { %v2735_v58 = vmul.f32 %v5553_v1, %v4785_v31  ;;  %v2623_v63 = vpop.f32.mrb[85].mxu0  ;;  %v2803_v10 = vsel %vm462_vm0, %v7169_v40, 0.0 }
 0x402   : > { %v2734_v34 = vmul.f32 %v5554_v62, %v2623_v63  ;;  %2804 = vadd.xlane.f32.xlu1 %v2803_v10  ;;  %v2800_v4 = vsel %vm462_vm0, %v7172_v28, 0.0  ;;  %v3043_v10 = vld [vmem:[%s7745_s5] sm:$0xff] }
 0x403   : > { %2801 = vadd.xlane.f32.xlu0 %v2800_v4  ;;  %v7185_v13 = vadd.f32 %v7081_v57, %v2735_v58 }
 0x404   : > { %v4788_v50 = vpop.f32.mrb[86].mxu0  ;;  %v7188_v7 = vadd.f32 %v7084_v47, %v2734_v34 }
 0x405   : > { %v2737_v24 = vmul.f32 %v5555_v12, %v4788_v50  ;;  %v2633_v54 = vpop.f32.mrb[87].mxu0  ;;  %v2809_v51 = vsel %vm462_vm0, %v7185_v13, 0.0 }
 0x406   : > { %v2736_v18 = vmul.f32 %v5556_v37, %v2633_v54  ;;  %2810 = vadd.xlane.f32.xlu1 %v2809_v51  ;;  %v2806_v57 = vsel %vm462_vm0, %v7188_v7, 0.0 }
 0x407   : > { %2807 = vadd.xlane.f32.xlu0 %v2806_v57  ;;  %v7201_v47 = vadd.f32 %v7093_v36, %v2737_v24 }
 0x408   : > { %v4791_v26 = vpop.f32.mrb[88].mxu0  ;;  %v7204_v59 = vadd.f32 %v7096_v0, %v2736_v18 }
 0x409   : > { %v2739_v39 = vmul.f32 %v5557_v55, %v4791_v26  ;;  %v2643_v41 = vpop.f32.mrb[89].mxu0  ;;  %v2815_v25 = vsel %vm462_vm0, %v7201_v47, 0.0 }
 0x40a   : > { %v2738_v20 = vmul.f32 %v5558_v11, %v2643_v41  ;;  %2816 = vadd.xlane.f32.xlu1 %v2815_v25  ;;  %v2812_v36 = vsel %vm462_vm0, %v7204_v59, 0.0 }
 0x40b   : > { %2813 = vadd.xlane.f32.xlu0 %v2812_v36  ;;  %v7217_v0 = vadd.f32 %v7105_v46, %v2739_v39 }
 0x40c   : > { %v4794_v3 = vpop.f32.mrb[90].mxu0  ;;  %v7220_v5 = vadd.f32 %v7108_v42, %v2738_v20 }
 0x40d   : > { %v2741_v19 = vmul.f32 %v5559_v48, %v4794_v3  ;;  %v2653_v22 = vpop.f32.mrb[91].mxu0  ;;  %v2821_v23 = vsel %vm462_vm0, %v7217_v0, 0.0 }
 0x40e   : > { %v2740_v8 = vmul.f32 %v5560_v49, %v2653_v22  ;;  %2822 = vadd.xlane.f32.xlu1 %v2821_v23  ;;  %v2818_v46 = vsel %vm462_vm0, %v7220_v5, 0.0 }
 0x40f   : > { %2819 = vadd.xlane.f32.xlu0 %v2818_v46  ;;  %v7233_v42 = vadd.f32 %v7117_v44, %v2741_v19 }
 0x410   : > { %v4797_v2 = vpop.f32.mrb[92].mxu0  ;;  %v7236_v14 = vadd.f32 %v7120_v29, %v2740_v8 }
 0x411   : > { %v2743_v38 = vmul.f32 %v5561_v9, %v4797_v2  ;;  %v2663_v53 = vpop.f32.mrb[93].mxu0  ;;  %v2827_v21 = vsel %vm462_vm0, %v7233_v42, 0.0 }
 0x412   : > { %v2742_v30 = vmul.f32 %v5562_v43, %v2663_v53  ;;  %2828 = vadd.xlane.f32.xlu1 %v2827_v21  ;;  %v2824_v44 = vsel %vm462_vm0, %v7236_v14, 0.0 }
 0x413   : > { %2825 = vadd.xlane.f32.xlu0 %v2824_v44  ;;  %v7249_v29 = vadd.f32 %v7129_v45, %v2743_v38 }
 0x414   : > { %v4800_v27 = vpop.f32.mrb[94].mxu0  ;;  %v7252_v33 = vadd.f32 %v7132_v16, %v2742_v30 }
 0x415   : > { %v2745_v32 = vmul.f32 %v5563_v35, %v4800_v27  ;;  %v2673_v56 = vpop.f32.mrb[95].mxu0  ;;  %v2833_v52 = vsel %vm462_vm0, %v7249_v29, 0.0 }
 0x416   : > { %v2744_v31 = vmul.f32 %v5564_v60, %v2673_v56  ;;  %2834 = vadd.xlane.f32.xlu1 %v2833_v52  ;;  %v2830_v45 = vsel %vm462_vm0, %v7252_v33, 0.0 }
 0x417   : > { %2831 = vadd.xlane.f32.xlu0 %v2830_v45  ;;  %v7265_v16 = vadd.f32 %v7141_v17, %v2745_v32  ;;  %v3044_v17 = vld [vmem:[%s7745_s5 + $0x8] sm:$0xff] }
 0x418   : > { %v7268_v1 = vadd.f32 %v7144_v6, %v2744_v31  ;;  %v5007_v62 = vpack.c.bf16 %v3044_v17, %v3043_v10 }
 0x419   : > { %v2839_v58 = vsel %vm462_vm0, %v7265_v16, 0.0 }
 0x41a   : > { %2840 = vadd.xlane.f32.xlu1 %v2839_v58  ;;  %v2836_v63 = vsel %vm462_vm0, %v7268_v1, 0.0  ;;  %5008 = vmatprep.subr.bf16.mxu0 %v5007_v62 }
 0x41b   : > { %2837 = vadd.xlane.f32.xlu0 %v2836_v63  ;;  %5010 = vmatpush3.bf16.msra.mxu0 %v5007_v62 }
 0x48b   : > { %v2799_v6 = vpop.xlane.xlu1 %2798 }
 0x48c   : > { %v2844_v34 = vmul.f32 0.03125, %v2799_v6  ;;  %v2796_v4 = vpop.xlane.xlu0 %2795 }
 0x48d   : > { %v2843_v50 = vmul.f32 0.03125, %v2796_v4 }
 0x48e   : > { %v7281_v12 = vsub.f32 %v7153_v61, %v2844_v34 }
 0x48f   : > { %v7284_v24 = vsub.f32 %v7156_v15, %v2843_v50  ;;  %v2805_v54 = vpop.xlane.xlu1 %2804 }
 0x490   : > { %v2846_v51 = vmul.f32 0.03125, %v2805_v54  ;;  %v2802_v37 = vpop.xlane.xlu0 %2801  ;;  %v2876_v18 = vmul.f32 %v7281_v12, %v7281_v12 }
 0x491   : > { %v2845_v57 = vmul.f32 0.03125, %v2802_v37  ;;  %v2875_v26 = vmul.f32 %v7284_v24, %v7284_v24 }
 0x492   : > { %v7291_v55 = vsub.f32 %v7169_v40, %v2846_v51  ;;  %v2894_v39 = vsel %vm462_vm0, %v2876_v18, 0.0 }
 0x493   : > { %v7295_v61 = vsub.f32 %v7172_v28, %v2845_v57  ;;  %v2811_v15 = vpop.xlane.xlu1 %2810  ;;  %2895 = vadd.xlane.f32.xlu1 %v2894_v39  ;;  %v2891_v41 = vsel %vm462_vm0, %v2875_v26, 0.0 }
 0x494   : > { %v2848_v25 = vmul.f32 0.03125, %v2811_v15  ;;  %2892 = vadd.xlane.f32.xlu0 %v2891_v41  ;;  %v2808_v11 = vpop.xlane.xlu0 %2807  ;;  %v2878_v20 = vmul.f32 %v7291_v55, %v7291_v55 }
 0x495   : > { %v2847_v36 = vmul.f32 0.03125, %v2808_v11  ;;  %v2877_v40 = vmul.f32 %v7295_v61, %v7295_v61 }
 0x496   : > { %v7303_v3 = vsub.f32 %v7185_v13, %v2848_v25  ;;  %v2900_v28 = vsel %vm462_vm0, %v2878_v20, 0.0 }
 0x497   : > { %v7307_v48 = vsub.f32 %v7188_v7, %v2847_v36  ;;  %v2817_v19 = vpop.xlane.xlu1 %2816  ;;  %2901 = vadd.xlane.f32.xlu1 %v2900_v28  ;;  %v2897_v22 = vsel %vm462_vm0, %v2877_v40, 0.0  ;;  %v3046_v40 = vld [vmem:[%s7745_s5 + $0x18] sm:$0xff] }
 0x498   : > { %v2850_v23 = vmul.f32 0.03125, %v2817_v19  ;;  %2898 = vadd.xlane.f32.xlu0 %v2897_v22  ;;  %v2814_v49 = vpop.xlane.xlu0 %2813  ;;  %v2880_v8 = vmul.f32 %v7303_v3, %v7303_v3 }
 0x499   : > { %v2849_v46 = vmul.f32 0.03125, %v2814_v49  ;;  %v2879_v13 = vmul.f32 %v7307_v48, %v7307_v48 }
 0x49a   : > { %v7315_v2 = vsub.f32 %v7201_v47, %v2850_v23  ;;  %v2906_v7 = vsel %vm462_vm0, %v2880_v8, 0.0 }
 0x49b   : > { %v7319_v9 = vsub.f32 %v7204_v59, %v2849_v46  ;;  %v2823_v38 = vpop.xlane.xlu1 %2822  ;;  %2907 = vadd.xlane.f32.xlu1 %v2906_v7  ;;  %v2903_v53 = vsel %vm462_vm0, %v2879_v13, 0.0 }
 0x49c   : > { %v2852_v21 = vmul.f32 0.03125, %v2823_v38  ;;  %2904 = vadd.xlane.f32.xlu0 %v2903_v53  ;;  %v2820_v43 = vpop.xlane.xlu0 %2819  ;;  %v2882_v30 = vmul.f32 %v7315_v2, %v7315_v2 }
 0x49d   : > { %v2851_v44 = vmul.f32 0.03125, %v2820_v43  ;;  %v2881_v47 = vmul.f32 %v7319_v9, %v7319_v9 }
 0x49e   : > { %v7327_v27 = vsub.f32 %v7217_v0, %v2852_v21  ;;  %v2912_v59 = vsel %vm462_vm0, %v2882_v30, 0.0 }
 0x49f   : > { %v7331_v35 = vsub.f32 %v7220_v5, %v2851_v44  ;;  %v2829_v32 = vpop.xlane.xlu1 %2828  ;;  %2913 = vadd.xlane.f32.xlu1 %v2912_v59  ;;  %v2909_v56 = vsel %vm462_vm0, %v2881_v47, 0.0 }
 0x4a0   : > { %v2854_v52 = vmul.f32 0.03125, %v2829_v32  ;;  %2910 = vadd.xlane.f32.xlu0 %v2909_v56  ;;  %v2826_v60 = vpop.xlane.xlu0 %2825  ;;  %v2884_v31 = vmul.f32 %v7327_v27, %v7327_v27 }
 0x4a1   : > { %v2853_v45 = vmul.f32 0.03125, %v2826_v60  ;;  %v2883_v0 = vmul.f32 %v7331_v35, %v7331_v35 }
 0x4a2   : > { %v7339_v58 = vsub.f32 %v7233_v42, %v2854_v52  ;;  %v2918_v5 = vsel %vm462_vm0, %v2884_v31, 0.0 }
 0x4a3   : > { %v7343_v63 = vsub.f32 %v7236_v14, %v2853_v45  ;;  %v2835_v10 = vpop.xlane.xlu1 %2834  ;;  %2919 = vadd.xlane.f32.xlu1 %v2918_v5  ;;  %v2915_v17 = vsel %vm462_vm0, %v2883_v0, 0.0  ;;  %v7385_v5 = vld [vmem:[%s7748_s8 + $0x3] ss:$0 sm:$0xff] }
 0x4a4   : > { %v2856_v62 = vmul.f32 0.03125, %v2835_v10  ;;  %2916 = vadd.xlane.f32.xlu0 %v2915_v17  ;;  %v2832_v6 = vpop.xlane.xlu0 %2831  ;;  %v2886_v34 = vmul.f32 %v7339_v58, %v7339_v58 }
 0x4a5   : > { %v2855_v4 = vmul.f32 0.03125, %v2832_v6  ;;  %v2885_v42 = vmul.f32 %v7343_v63, %v7343_v63 }
 0x4a6   : > { %v7351_v50 = vsub.f32 %v7249_v29, %v2856_v62  ;;  %v2924_v14 = vsel %vm462_vm0, %v2886_v34, 0.0 }
 0x4a7   : > { %v7355_v54 = vsub.f32 %v7252_v33, %v2855_v4  ;;  %2925 = vadd.xlane.f32.xlu1 %v2924_v14  ;;  %v2841_v51 = vpop.xlane.xlu1 %2840  ;;  %v2921_v37 = vsel %vm462_vm0, %v2885_v42, 0.0 }
 0x4a8   : > { %v2858_v18 = vmul.f32 0.03125, %v2841_v51  ;;  %2922 = vadd.xlane.f32.xlu0 %v2921_v37  ;;  %v2838_v57 = vpop.xlane.xlu0 %2837  ;;  %v2888_v26 = vmul.f32 %v7351_v50, %v7351_v50  ;;  %v7392_v51 = vld [vmem:[%s7748_s8 + $0x4] ss:$0 sm:$0xff] }
 0x4a9   : > { %v2857_v39 = vmul.f32 0.03125, %v2838_v57  ;;  %v2887_v29 = vmul.f32 %v7355_v54, %v7355_v54 }
 0x4aa   : > { %v7363_v15 = vsub.f32 %v7265_v16, %v2858_v18  ;;  %v2930_v33 = vsel %vm462_vm0, %v2888_v26, 0.0 }
 0x4ab   : > { %v7367_v41 = vsub.f32 %v7268_v1, %v2857_v39  ;;  %2931 = vadd.xlane.f32.xlu1 %v2930_v33  ;;  %v2927_v25 = vsel %vm462_vm0, %v2887_v29, 0.0  ;;  %v3045_v1 = vld [vmem:[%s7745_s5 + $0x10] sm:$0xff] }
 0x4ac   : > { %2928 = vadd.xlane.f32.xlu0 %v2927_v25  ;;  %v2890_v11 = vmul.f32 %v7363_v15, %v7363_v15  ;;  %v5011_v28 = vpack.c.bf16 %v3046_v40, %v3045_v1 }
 0x4ad   : > { %v2889_v20 = vmul.f32 %v7367_v41, %v7367_v41 }
 0x4ae   : > { %v2936_v36 = vsel %vm462_vm0, %v2890_v11, 0.0  ;;  %5012 = vmatprep.subr.bf16.mxu0 %v5011_v28 }
 0x4af   : > { %2937 = vadd.xlane.f32.xlu1 %v2936_v36  ;;  %v2933_v16 = vsel %vm462_vm0, %v2889_v20, 0.0  ;;  %5014 = vmatpush3.bf16.msra.mxu0 %v5011_v28 }
 0x4b0   : > { %2934 = vadd.xlane.f32.xlu0 %v2933_v16 }
 0x520   : > { %v2896_v19 = vpop.xlane.xlu1 %2895 }
 0x521   : > { %v2940_v22 = vmul.f32 0.03125, %v2896_v19  ;;  %v2893_v23 = vpop.xlane.xlu0 %2892 }
 0x522   : > { %v2939_v49 = vmul.f32 0.03125, %v2893_v23 }
 0x523   : > { %v2956_v8 = vadd.f32 1e-05, %v2940_v22 }
 0x524   : > { %v2955_v46 = vadd.f32 1e-05, %v2939_v49  ;;  %v2902_v13 = vpop.xlane.xlu1 %2901 }
 0x525   : > { %5396 = vrsqrt.f32 %v2956_v8  ;;  %v2942_v7 = vmul.f32 0.03125, %v2902_v13  ;;  %v2899_v38 = vpop.xlane.xlu0 %2898 }
 0x526   : > { %5398 = vrsqrt.f32 %v2955_v46  ;;  %v2941_v53 = vmul.f32 0.03125, %v2899_v38 }
 0x527   : > { %v2958_v21 = vadd.f32 1e-05, %v2942_v7 }
 0x528   : > { %v2957_v43 = vadd.f32 1e-05, %v2941_v53  ;;  %v2908_v30 = vpop.xlane.xlu1 %2907 }
 0x529   : > { %5400 = vrsqrt.f32 %v2958_v21  ;;  %v2944_v44 = vmul.f32 0.03125, %v2908_v30  ;;  %v2905_v47 = vpop.xlane.xlu0 %2904 }
 0x52a   : > { %5402 = vrsqrt.f32 %v2957_v43  ;;  %v2943_v59 = vmul.f32 0.03125, %v2905_v47 }
 0x52b   : > { %v2960_v32 = vadd.f32 1e-05, %v2944_v44 }
 0x52c   : > { %v2959_v56 = vadd.f32 1e-05, %v2943_v59  ;;  %v2914_v52 = vpop.xlane.xlu1 %2913 }
 0x52d   : > { %5404 = vrsqrt.f32 %v2960_v32  ;;  %v2946_v60 = vmul.f32 0.03125, %v2914_v52  ;;  %v2911_v31 = vpop.xlane.xlu0 %2910 }
 0x52e   : > { %5406 = vrsqrt.f32 %v2959_v56  ;;  %v2945_v45 = vmul.f32 0.03125, %v2911_v31 }
 0x52f   : > { %v5397_v0 = vpop.eup %5396  ;;  %v2962_v10 = vadd.f32 1e-05, %v2946_v60 }
 0x530   : > { %v5399_v17 = vpop.eup %5398  ;;  %v2988_v62 = vmul.f32 %v5397_v0, %v7281_v12  ;;  %v2961_v6 = vadd.f32 1e-05, %v2945_v45  ;;  %v2920_v34 = vpop.xlane.xlu1 %2919 }
 0x531   : > { %5408 = vrsqrt.f32 %v2962_v10  ;;  %v2948_v4 = vmul.f32 0.03125, %v2920_v34  ;;  %v2917_v42 = vpop.xlane.xlu0 %2916  ;;  %v2987_v14 = vmul.f32 %v5399_v17, %v7284_v24 }
 0x532   : > { %v3008_v37 = vmul.f32 %v7385_v5, %v2988_v62  ;;  %5410 = vrsqrt.f32 %v2961_v6  ;;  %v2947_v18 = vmul.f32 0.03125, %v2917_v42 }
 0x533   : > { %v5401_v57 = vpop.eup %5400  ;;  %v2964_v26 = vadd.f32 1e-05, %v2948_v4  ;;  %v3007_v12 = vmul.f32 %v7385_v5, %v2987_v14 }
 0x534   : > { %v5403_v39 = vpop.eup %5402  ;;  %v2963_v29 = vadd.f32 1e-05, %v2947_v18  ;;  %v2926_v33 = vpop.xlane.xlu1 %2925  ;;  %v2990_v25 = vmul.f32 %v5401_v57, %v7291_v55  ;;  %v7402_v16 = vadd.f32 %v7392_v51, %v3008_v37 }
 0x535   : > { %5412 = vrsqrt.f32 %v2964_v26  ;;  %v2950_v24 = vmul.f32 0.03125, %v2926_v33  ;;  %v2923_v11 = vpop.xlane.xlu0 %2922  ;;  %v7398_v20 = vadd.f32 %v7392_v51, %v3007_v12  ;;  %v2989_v36 = vmul.f32 %v5403_v39, %v7295_v61 }
 0x536   : > { %5414 = vrsqrt.f32 %v2963_v29  ;;  %v2949_v1 = vmul.f32 0.03125, %v2923_v11  ;;  %v3010_v40 = vmul.f32 %v7385_v5, %v2990_v25 }
 0x537   : > { %v5405_v28 = vpop.eup %5404  ;;  %v2966_v19 = vadd.f32 1e-05, %v2950_v24  ;;  %4809 = vmatprep.mubr.msk.f32.mxu0 %vm462_vm0, %v7398_v20  ;;  %v3009_v55 = vmul.f32 %v7385_v5, %v2989_v36 }
 0x538   : > { %v5407_v22 = vpop.eup %5406  ;;  %v2965_v23 = vadd.f32 1e-05, %v2949_v1  ;;  %v2932_v49 = vpop.xlane.xlu1 %2931  ;;  %4810 = vmatmul.mubr.msk.f32.vlgmr.msra.gmra.mrb[96].mxu0 %vm462_vm0, %v7402_v16  ;;  %v2992_v61 = vmul.f32 %v5405_v28, %v7303_v3  ;;  %v7416_v53 = vadd.f32 %v7392_v51, %v3010_v40 }
 0x539   : > { %5416 = vrsqrt.f32 %v2966_v19  ;;  %v2952_v8 = vmul.f32 0.03125, %v2932_v49  ;;  %v2929_v46 = vpop.xlane.xlu0 %2928  ;;  %v7412_v13 = vadd.f32 %v7392_v51, %v3009_v55  ;;  %v2991_v7 = vmul.f32 %v5407_v22, %v7307_v48 }
 0x53a   : > { %5418 = vrsqrt.f32 %v2965_v23  ;;  %v2951_v38 = vmul.f32 0.03125, %v2929_v46  ;;  %v3012_v21 = vmul.f32 %v7385_v5, %v2992_v61 }
 0x53b   : > { %v5409_v43 = vpop.eup %5408  ;;  %v2968_v30 = vadd.f32 1e-05, %v2952_v8  ;;  %4812 = vmatprep.mubr.msk.f32.mxu0 %vm462_vm0, %v7412_v13  ;;  %v3011_v3 = vmul.f32 %v7385_v5, %v2991_v7 }
 0x53c   : > { %v5411_v44 = vpop.eup %5410  ;;  %v2967_v47 = vadd.f32 1e-05, %v2951_v38  ;;  %v2938_v59 = vpop.xlane.xlu1 %2937  ;;  %4813 = vmatmul.mubr.msk.f32.gmra.mrb[98].mxu0 %vm462_vm0, %v7416_v53  ;;  %v2994_v48 = vmul.f32 %v5409_v43, %v7315_v2  ;;  %v7430_v45 = vadd.f32 %v7392_v51, %v3012_v21 }
 0x53d   : > { %5420 = vrsqrt.f32 %v2968_v30  ;;  %v2954_v32 = vmul.f32 0.03125, %v2938_v59  ;;  %v2935_v56 = vpop.xlane.xlu0 %2934  ;;  %v7426_v52 = vadd.f32 %v7392_v51, %v3011_v3  ;;  %v2993_v60 = vmul.f32 %v5411_v44, %v7319_v9 }
 0x53e   : > { %5422 = vrsqrt.f32 %v2967_v47  ;;  %v2953_v31 = vmul.f32 0.03125, %v2935_v56  ;;  %v3014_v0 = vmul.f32 %v7385_v5, %v2994_v48  ;;  %v7518_v47 = vld [vmem:[%s7748_s8 + $0x6] ss:$0 sm:$0xff] }
 0x53f   : > { %v5413_v10 = vpop.eup %5412  ;;  %v2970_v17 = vadd.f32 1e-05, %v2954_v32  ;;  %4815 = vmatprep.mubr.msk.f32.mxu0 %vm462_vm0, %v7426_v52  ;;  %v3013_v2 = vmul.f32 %v7385_v5, %v2993_v60 }
 0x540   : > { %v5415_v62 = vpop.eup %5414  ;;  %v2969_v6 = vadd.f32 1e-05, %v2953_v31  ;;  %4816 = vmatmul.mubr.msk.f32.gmra.mrb[100].mxu0 %vm462_vm0, %v7430_v45  ;;  %v2996_v9 = vmul.f32 %v5413_v10, %v7327_v27  ;;  %v7444_v42 = vadd.f32 %v7392_v51, %v3014_v0 }
 0x541   : > { %5424 = vrsqrt.f32 %v2970_v17  ;;  %v7440_v34 = vadd.f32 %v7392_v51, %v3013_v2  ;;  %v2995_v4 = vmul.f32 %v5415_v62, %v7331_v35 }
 0x542   : > { %5426 = vrsqrt.f32 %v2969_v6  ;;  %v3016_v14 = vmul.f32 %v7385_v5, %v2996_v9 }
 0x543   : > { %v5417_v37 = vpop.eup %5416  ;;  %4818 = vmatprep.mubr.msk.f32.mxu0 %vm462_vm0, %v7440_v34  ;;  %v3015_v18 = vmul.f32 %v7385_v5, %v2995_v4 }
 0x544   : > { %v5419_v57 = vpop.eup %5418  ;;  %4819 = vmatmul.mubr.msk.f32.gmra.mrb[102].mxu0 %vm462_vm0, %v7444_v42  ;;  %v2998_v27 = vmul.f32 %v5417_v37, %v7339_v58  ;;  %v7458_v12 = vadd.f32 %v7392_v51, %v3016_v14 }
 0x545   : > { %v7454_v35 = vadd.f32 %v7392_v51, %v3015_v18  ;;  %v2997_v26 = vmul.f32 %v5419_v57, %v7343_v63 }
 0x546   : > { %v3018_v39 = vmul.f32 %v7385_v5, %v2998_v27 }
 0x547   : > { %v5421_v29 = vpop.eup %5420  ;;  %4821 = vmatprep.mubr.msk.f32.mxu0 %vm462_vm0, %v7454_v35  ;;  %v3017_v33 = vmul.f32 %v7385_v5, %v2997_v26 }
 0x548   : > { %v5423_v25 = vpop.eup %5422  ;;  %4822 = vmatmul.mubr.msk.f32.gmra.mrb[104].mxu0 %vm462_vm0, %v7458_v12  ;;  %v3000_v58 = vmul.f32 %v5421_v29, %v7351_v50  ;;  %v7472_v11 = vadd.f32 %v7392_v51, %v3018_v39 }
 0x549   : > { %v7468_v24 = vadd.f32 %v7392_v51, %v3017_v33  ;;  %v2999_v63 = vmul.f32 %v5423_v25, %v7355_v54 }
 0x54a   : > { %v3020_v36 = vmul.f32 %v7385_v5, %v3000_v58 }
 0x54b   : > { %v5425_v1 = vpop.eup %5424  ;;  %4824 = vmatprep.mubr.msk.f32.mxu0 %vm462_vm0, %v7468_v24  ;;  %v3019_v40 = vmul.f32 %v7385_v5, %v2999_v63 }
 0x54c   : > { %v5427_v28 = vpop.eup %5426  ;;  %4825 = vmatmul.mubr.msk.f32.gmra.mrb[106].mxu0 %vm462_vm0, %v7472_v11  ;;  %v3002_v50 = vmul.f32 %v5425_v1, %v7363_v15  ;;  %v7486_v55 = vadd.f32 %v7392_v51, %v3020_v36 }
 0x54d   : > { %v7482_v19 = vadd.f32 %v7392_v51, %v3019_v40  ;;  %v3001_v54 = vmul.f32 %v5427_v28, %v7367_v41  ;;  %v7507_v41 = vld [vmem:[%s7748_s8 + $0x5] ss:$0 sm:$0xff] }
 0x54e   : > { %v3022_v22 = vmul.f32 %v7385_v5, %v3002_v50 }
 0x54f   : > { %4827 = vmatprep.mubr.msk.f32.mxu0 %vm462_vm0, %v7482_v19  ;;  %v3021_v23 = vmul.f32 %v7385_v5, %v3001_v54 }
 0x550   : > { %4828 = vmatmul.mubr.msk.f32.gmra.mrb[108].mxu0 %vm462_vm0, %v7486_v55  ;;  %v7498_v49 = vadd.f32 %v7392_v51, %v3022_v22 }
 0x551   : > { %v7495_v15 = vadd.f32 %v7392_v51, %v3021_v23 }
 0x553   : > { %4830 = vmatprep.mubr.msk.f32.mxu0 %vm462_vm0, %v7495_v15 }
 0x554   : > { %4831 = vmatmul.mubr.msk.f32.gmra.mrb[110].mxu0 %vm462_vm0, %v7498_v49 }
 0x60b   : > { %v4811_v5 = vpop.f32.mrb[96].mxu0 }
 0x60c   : > { %v3171_v61 = vadd.f32 %v4811_v5, %v7507_v41  ;;  %v3165_v8 = vpop.f32.mrb[97].mxu0 }
 0x60d   : > { %v3166_v46 = vadd.f32 %v7507_v41, %v3165_v8 }
 0x60e   : > { %5428 = vtanh.f32 %v3171_v61 }
 0x60f   : > { %5430 = vtanh.f32 %v3166_v46  ;;  %v4814_v51 = vpop.f32.mrb[98].mxu0 }
 0x610   : > { %v3181_v7 = vadd.f32 %v4814_v51, %v7507_v41  ;;  %v3175_v38 = vpop.f32.mrb[99].mxu0 }
 0x611   : > { %v3176_v21 = vadd.f32 %v7507_v41, %v3175_v38 }
 0x612   : > { %5432 = vtanh.f32 %v3181_v7 }
 0x613   : > { %5434 = vtanh.f32 %v3176_v21  ;;  %v4817_v43 = vpop.f32.mrb[100].mxu0 }
 0x614   : > { %v3191_v30 = vadd.f32 %v4817_v43, %v7507_v41  ;;  %v3185_v3 = vpop.f32.mrb[101].mxu0 }
 0x615   : > { %v3186_v44 = vadd.f32 %v7507_v41, %v3185_v3 }
 0x616   : > { %5436 = vtanh.f32 %v3191_v30 }
 0x617   : > { %5438 = vtanh.f32 %v3186_v44  ;;  %v4820_v59 = vpop.f32.mrb[102].mxu0 }
 0x618   : > { %v5429_v48 = vpop.eup %5428  ;;  %v3201_v32 = vadd.f32 %v4820_v59, %v7507_v41  ;;  %v3195_v56 = vpop.f32.mrb[103].mxu0 }
 0x619   : > { %v5431_v60 = vpop.eup %5430  ;;  %v3196_v31 = vadd.f32 %v7507_v41, %v3195_v56  ;;  %v3265_v0 = vmul.f32 %v5429_v48, %v7518_v47 }
 0x61a   : > { %5440 = vtanh.f32 %v3201_v32  ;;  %v3264_v10 = vmul.f32 %v5431_v60, %v7518_v47 }
 0x61b   : > { %5442 = vtanh.f32 %v3196_v31  ;;  %v4823_v17 = vpop.f32.mrb[104].mxu0  ;;  %v3283_v2 = vsel %vm462_vm0, %v3265_v0, 0.0 }
 0x61c   : > { %v5433_v62 = vpop.eup %5432  ;;  %v3211_v6 = vadd.f32 %v4823_v17, %v7507_v41  ;;  %3284 = vadd.xlane.f32.xlu1 %v3283_v2  ;;  %v3205_v9 = vpop.f32.mrb[105].mxu0  ;;  %v3280_v4 = vsel %vm462_vm0, %v3264_v10, 0.0 }
 0x61d   : > { %v5435_v14 = vpop.eup %5434  ;;  %v3206_v37 = vadd.f32 %v7507_v41, %v3205_v9  ;;  %3281 = vadd.xlane.f32.xlu0 %v3280_v4  ;;  %v3267_v18 = vmul.f32 %v5433_v62, %v7518_v47 }
 0x61e   : > { %5444 = vtanh.f32 %v3211_v6  ;;  %v3266_v57 = vmul.f32 %v5435_v14, %v7518_v47 }
 0x61f   : > { %5446 = vtanh.f32 %v3206_v37  ;;  %v4826_v27 = vpop.f32.mrb[106].mxu0  ;;  %v3289_v26 = vsel %vm462_vm0, %v3267_v18, 0.0 }
 0x620   : > { %v5437_v39 = vpop.eup %5436  ;;  %v3221_v29 = vadd.f32 %v4826_v27, %v7507_v41  ;;  %3290 = vadd.xlane.f32.xlu1 %v3289_v26  ;;  %v3215_v33 = vpop.f32.mrb[107].mxu0  ;;  %v3286_v25 = vsel %vm462_vm0, %v3266_v57, 0.0 }
 0x621   : > { %v5439_v58 = vpop.eup %5438  ;;  %v3216_v63 = vadd.f32 %v7507_v41, %v3215_v33  ;;  %3287 = vadd.xlane.f32.xlu0 %v3286_v25  ;;  %v3269_v36 = vmul.f32 %v5437_v39, %v7518_v47  ;;  %v3380_v33 = vld [vmem:[%s7751_s11] sm:$0xff] }
 0x622   : > { %5448 = vtanh.f32 %v3221_v29  ;;  %v3268_v1 = vmul.f32 %v5439_v58, %v7518_v47  ;;  %v5630_v29 = vmov 0   ;;  %v7566_v25 = vld [vmem:[%s6393_s28] ss:$0 sm:$0xff]  ;;  %s3927_s28 = sshll.u32 %s7678_s16, 4  ;;  %s7693_s28 = int_to_ptr.vmem [resolvable:$true] %s3927_s28 }
 0x623   : > { %5450 = vtanh.f32 %v3216_v63  ;;  %v4829_v40 = vpop.f32.mrb[108].mxu0  ;;  %v3295_v28 = vsel %vm462_vm0, %v3269_v36, 0.0  ;;  %5138 = vset.pattern.permute.xlu0 %v5630_v29  ;;  %5139 = vset.pattern.permute.xlu1 %v5630_v29  ;;  %v3382_v58 = vmul.f32 %v7566_v25, %v3380_v33  ;;  %s5566_s20 = scalar_lea.vmem %s7693_s28, 1024  ;;  %p5573_p0 = scmp.lt.s32.totalorder %s7693_s28, %s5571_s30 }
 0x624   : > { %v5441_v50 = vpop.eup %5440  ;;  %v3231_v54 = vadd.f32 %v4829_v40, %v7507_v41  ;;  %3296 = vadd.xlane.f32.xlu1 %v3295_v28  ;;  %v3225_v22 = vpop.f32.mrb[109].mxu0  ;;  %v3292_v23 = vsel %vm462_vm0, %v3268_v1, 0.0  ;;  %p5567_p11 = scmp.ne.s32.totalorder %s7693_s28, %s5566_s20  ;;  %p5574_p1 = scmp.lt.s32.totalorder %s5572_s15, %s5566_s20 }
 0x625   : > { %v5443_v5 = vpop.eup %5442  ;;  %v3226_v61 = vadd.f32 %v7507_v41, %v3225_v22  ;;  %3293 = vadd.xlane.f32.xlu0 %v3292_v23  ;;  %v3271_v8 = vmul.f32 %v5441_v50, %v7518_v47  ;;  %4900 = vmatprep.mubr.f32.mxu0 %v3382_v58 }
 0x626   : > { %5452 = vtanh.f32 %v3231_v54  ;;  %v3270_v46 = vmul.f32 %v5443_v5, %v7518_v47  ;;  %4865 = vmatprep.mubr.f32.mxu1 %v3382_v58  ;;  %p5568_p12 = pnand %p5567_p11, %p5738_p5  ;;  %p5575_p2 = por %p5574_p1, %p5573_p0 }
 0x627   : > { %5454 = vtanh.f32 %v3226_v61  ;;  %v4832_v51 = vpop.f32.mrb[110].mxu0  ;;  %v3301_v7 = vsel %vm462_vm0, %v3271_v8, 0.0 }
 0x628   : > { %v5445_v38 = vpop.eup %5444  ;;  %v3241_v21 = vadd.f32 %v4832_v51, %v7507_v41  ;;  %3302 = vadd.xlane.f32.xlu1 %v3301_v7  ;;  %v3235_v43 = vpop.f32.mrb[111].mxu0  ;;  %v3298_v30 = vsel %vm462_vm0, %v3270_v46, 0.0  ;;  %p5569_p13 = pneg %p5568_p12 }
 0x629   : > { %v5447_v3 = vpop.eup %5446  ;;  %v3236_v44 = vadd.f32 %v7507_v41, %v3235_v43  ;;  %3299 = vadd.xlane.f32.xlu0 %v3298_v30  ;;  %v3273_v59 = vmul.f32 %v5445_v38, %v7518_v47 }
 0x62a   : > { %5456 = vtanh.f32 %v3241_v21  ;;  %v3272_v48 = vmul.f32 %v5447_v3, %v7518_v47  ;;  %p5576_p3 = pnand %p5575_p2, %p5569_p13 }
 0x62b   : > { %5458 = vtanh.f32 %v3236_v44  ;;  %v3307_v32 = vsel %vm462_vm0, %v3273_v59, 0.0 }
 0x62c   : > { %v5449_v56 = vpop.eup %5448  ;;  %3308 = vadd.xlane.f32.xlu1 %v3307_v32  ;;  %v3304_v60 = vsel %vm462_vm0, %v3272_v48, 0.0 }
 0x62d   : > { %v5451_v31 = vpop.eup %5450  ;;  %3305 = vadd.xlane.f32.xlu0 %v3304_v60  ;;  %v3275_v0 = vmul.f32 %v5449_v56, %v7518_v47 }
 0x62e   : > { %v3274_v10 = vmul.f32 %v5451_v31, %v7518_v47 }
 0x62f   : > { %v3313_v41 = vsel %vm462_vm0, %v3275_v0, 0.0 }
 0x630   : > { %v5453_v17 = vpop.eup %5452  ;;  %3314 = vadd.xlane.f32.xlu1 %v3313_v41  ;;  %v3310_v2 = vsel %vm462_vm0, %v3274_v10, 0.0 }
 0x631   : > { %v5455_v62 = vpop.eup %5454  ;;  %3311 = vadd.xlane.f32.xlu0 %v3310_v2  ;;  %v3277_v6 = vmul.f32 %v5453_v17, %v7518_v47 }
 0x632   : > { %v3276_v9 = vmul.f32 %v5455_v62, %v7518_v47 }
 0x633   : > { %v3319_v4 = vsel %vm462_vm0, %v3277_v6, 0.0 }
 0x634   : > { %v5457_v14 = vpop.eup %5456  ;;  %3320 = vadd.xlane.f32.xlu1 %v3319_v4  ;;  %v3316_v37 = vsel %vm462_vm0, %v3276_v9, 0.0 }
 0x635   : > { %v5459_v18 = vpop.eup %5458  ;;  %3317 = vadd.xlane.f32.xlu0 %v3316_v37  ;;  %v3279_v57 = vmul.f32 %v5457_v14, %v7518_v47 }
 0x636   : > { %v3278_v27 = vmul.f32 %v5459_v18, %v7518_v47  ;;  %v7572_v47 = vld [vmem:[%s7748_s8 + $0x7] ss:$0 sm:$0xff] }
 0x637   : > { %v3325_v26 = vsel %vm462_vm0, %v3279_v57, 0.0 }
 0x638   : > { %3326 = vadd.xlane.f32.xlu1 %v3325_v26  ;;  %v3322_v39 = vsel %vm462_vm0, %v3278_v27, 0.0 }
 0x639   : > { %3323 = vadd.xlane.f32.xlu0 %v3322_v39 }
 0x6a9   : > { %v3285_v63 = vpop.xlane.xlu1 %3284 }
 0x6aa   : > { %v3333_v36 = vadd.f32 %v7572_v47, %v3285_v63  ;;  %v3282_v1 = vpop.xlane.xlu0 %3281 }
 0x6ab   : > { %v3332_v40 = vadd.f32 %v7572_v47, %v3282_v1 }
 0x6ac   : > { %v3350_v28 = vmul.f32 1.442695, %v3333_v36 }
 0x6ad   : > { %v3348_v50 = vmul.f32 1.442695, %v3332_v40  ;;  %v3291_v54 = vpop.xlane.xlu1 %3290 }
 0x6ae   : > { %5460 = vpow2.f32 %v3350_v28  ;;  %v3335_v22 = vadd.f32 %v7572_v47, %v3291_v54  ;;  %v3288_v23 = vpop.xlane.xlu0 %3287 }
 0x6af   : > { %5462 = vpow2.f32 %v3348_v50  ;;  %v3334_v5 = vadd.f32 %v7572_v47, %v3288_v23 }
 0x6b0   : > { %v3354_v61 = vmul.f32 1.442695, %v3335_v22 }
 0x6b1   : > { %v3352_v8 = vmul.f32 1.442695, %v3334_v5  ;;  %v3297_v46 = vpop.xlane.xlu1 %3296 }
 0x6b2   : > { %5464 = vpow2.f32 %v3354_v61  ;;  %v3337_v51 = vadd.f32 %v7572_v47, %v3297_v46  ;;  %v3294_v7 = vpop.xlane.xlu0 %3293 }
 0x6b3   : > { %5466 = vpow2.f32 %v3352_v8  ;;  %v3336_v38 = vadd.f32 %v7572_v47, %v3294_v7 }
 0x6b4   : > { %v3358_v21 = vmul.f32 1.442695, %v3337_v51 }
 0x6b5   : > { %v3356_v43 = vmul.f32 1.442695, %v3336_v38  ;;  %v3303_v30 = vpop.xlane.xlu1 %3302 }
 0x6b6   : > { %5468 = vpow2.f32 %v3358_v21  ;;  %v3339_v3 = vadd.f32 %v7572_v47, %v3303_v30  ;;  %v3300_v44 = vpop.xlane.xlu0 %3299 }
 0x6b7   : > { %5470 = vpow2.f32 %v3356_v43  ;;  %v3338_v59 = vadd.f32 %v7572_v47, %v3300_v44 }
 0x6b8   : > { %v5461_v48 = vpop.eup %5460  ;;  %v3362_v32 = vmul.f32 1.442695, %v3339_v3 }
 0x6b9   : > { %v5463_v56 = vpop.eup %5462  ;;  %v3360_v60 = vmul.f32 1.442695, %v3338_v59  ;;  %v3309_v31 = vpop.xlane.xlu1 %3308  ;;  %3391 = vperm.xlu1 %5139, %v5461_v48  }
 0x6ba   : > { %5472 = vpow2.f32 %v3362_v32  ;;  %v3341_v0 = vadd.f32 %v7572_v47, %v3309_v31  ;;  %3386 = vperm.xlu0 %5138, %v5463_v56   ;;  %v3306_v10 = vpop.xlane.xlu0 %3305  ;;  %v5047_v41 = vpack.c.bf16 %v5461_v48, %v5463_v56 }
 0x6bb   : > { %5474 = vpow2.f32 %v3360_v60  ;;  %v3340_v17 = vadd.f32 %v7572_v47, %v3306_v10  ;;  %v3381_v60 = vld [vmem:[%s7751_s11 + $0x8] sm:$0xff] }
 0x6bc   : > { %v5465_v2 = vpop.eup %5464  ;;  %v3366_v62 = vmul.f32 1.442695, %v3341_v0  ;;  %5048 = vmatprep.subr.bf16.mxu0 %v5047_v41  ;;  %v3383_v31 = vmul.f32 %v7566_v25, %v3381_v60 }
 0x6bd   : > { %v5467_v6 = vpop.eup %5466  ;;  %v3364_v9 = vmul.f32 1.442695, %v3340_v17  ;;  %v3315_v4 = vpop.xlane.xlu1 %3314  ;;  %3401 = vperm.xlu1 %5139, %v5465_v2   ;;  %5050 = vmatpush3.bf16.msra.mxu0 %v5047_v41 }
 0x6be   : > { %5476 = vpow2.f32 %v3366_v62  ;;  %v3343_v14 = vadd.f32 %v7572_v47, %v3315_v4  ;;  %v3312_v37 = vpop.xlane.xlu0 %3311  ;;  %v5051_v18 = vpack.c.bf16 %v5465_v2, %v5467_v6 }
 0x6bf   : > { %5478 = vpow2.f32 %v3364_v9  ;;  %v3342_v57 = vadd.f32 %v7572_v47, %v3312_v37 }
 0x6c0   : > { %v5469_v27 = vpop.eup %5468  ;;  %v3370_v26 = vmul.f32 1.442695, %v3343_v14  ;;  %5052 = vmatprep.subr.bf16.mxu0 %v5051_v18 }
 0x6c1   : > { %v5471_v39 = vpop.eup %5470  ;;  %v3368_v29 = vmul.f32 1.442695, %v3342_v57  ;;  %v3321_v33 = vpop.xlane.xlu1 %3320  ;;  %3396 = vperm.xlu1 %5139, %v5467_v6   ;;  %5054 = vmatpush3.bf16.msra.mxu0 %v5051_v18 }
 0x6c2   : > { %5480 = vpow2.f32 %v3370_v26  ;;  %v3345_v58 = vadd.f32 %v7572_v47, %v3321_v33  ;;  %v3318_v63 = vpop.xlane.xlu0 %3317  ;;  %v5055_v36 = vpack.c.bf16 %v5469_v27, %v5471_v39 }
 0x6c3   : > { %5482 = vpow2.f32 %v3368_v29  ;;  %v3344_v1 = vadd.f32 %v7572_v47, %v3318_v63 }
 0x6c4   : > { %v5473_v40 = vpop.eup %5472  ;;  %v3374_v28 = vmul.f32 1.442695, %v3345_v58  ;;  %5056 = vmatprep.subr.bf16.mxu0 %v5055_v36 }
 0x6c5   : > { %v5475_v50 = vpop.eup %5474  ;;  %v3372_v54 = vmul.f32 1.442695, %v3344_v1  ;;  %v3327_v22 = vpop.xlane.xlu1 %3326  ;;  %3411 = vperm.xlu1 %5139, %v5469_v27   ;;  %5058 = vmatpush3.bf16.msra.mxu0 %v5055_v36 }
 0x6c6   : > { %5484 = vpow2.f32 %v3374_v28  ;;  %v3347_v23 = vadd.f32 %v7572_v47, %v3327_v22  ;;  %v3324_v5 = vpop.xlane.xlu0 %3323  ;;  %v5059_v61 = vpack.c.bf16 %v5473_v40, %v5475_v50 }
 0x6c7   : > { %5486 = vpow2.f32 %v3372_v54  ;;  %v3346_v8 = vadd.f32 %v7572_v47, %v3324_v5 }
 0x6c8   : > { %v5477_v46 = vpop.eup %5476  ;;  %v3378_v51 = vmul.f32 1.442695, %v3347_v23  ;;  %5060 = vmatprep.subr.bf16.mxu0 %v5059_v61 }
 0x6c9   : > { %v5479_v7 = vpop.eup %5478  ;;  %v3376_v38 = vmul.f32 1.442695, %v3346_v8  ;;  %3431 = vperm.xlu0 %5138, %v5477_v46   ;;  %3406 = vperm.xlu1 %5139, %v5471_v39  }
 0x6ca   : > { %5488 = vpow2.f32 %v3378_v51  ;;  %5062 = vmatpush3.bf16.msra.mxu0 %v5059_v61  ;;  %v5063_v21 = vpack.c.bf16 %v5477_v46, %v5479_v7 }
 0x6cb   : > { %5490 = vpow2.f32 %v3376_v38 }
 0x6cc   : > { %v5481_v43 = vpop.eup %5480  ;;  %5064 = vmatprep.subr.bf16.mxu0 %v5063_v21 }
 0x6cd   : > { %v5483_v30 = vpop.eup %5482  ;;  %3441 = vperm.xlu0 %5138, %v5481_v43   ;;  %3421 = vperm.xlu1 %5139, %v5473_v40  }
 0x6ce   : > { %5066 = vmatpush3.bf16.msra.mxu0 %v5063_v21  ;;  %v5067_v3 = vpack.c.bf16 %v5481_v43, %v5483_v30 }
 0x6d0   : > { %v5485_v44 = vpop.eup %5484  ;;  %5068 = vmatprep.subr.bf16.mxu0 %v5067_v3 }
 0x6d1   : > { %v5487_v47 = vpop.eup %5486  ;;  %3451 = vperm.xlu0 %5138, %v5485_v44   ;;  %3416 = vperm.xlu1 %5139, %v5475_v50  }
 0x6d2   : > { %5070 = vmatpush3.bf16.msra.mxu0 %v5067_v3  ;;  %v5071_v59 = vpack.c.bf16 %v5485_v44, %v5487_v47 }
 0x6d4   : > { %v5489_v48 = vpop.eup %5488  ;;  %5072 = vmatprep.subr.bf16.mxu0 %v5071_v59 }
 0x6d5   : > { %v5491_v32 = vpop.eup %5490  ;;  %3461 = vperm.xlu0 %5138, %v5489_v48   ;;  %3426 = vperm.xlu1 %5139, %v5479_v7  }
 0x6d6   : > { %5074 = vmatpush3.bf16.msra.mxu0 %v5071_v59  ;;  %v5075_v56 = vpack.c.bf16 %v5489_v48, %v5491_v32 }
 0x6d8   : > { %5076 = vmatprep.subr.bf16.mxu0 %v5075_v56 }
 0x6d9   : > { %3436 = vperm.xlu1 %5139, %v5483_v30  }
 0x6da   : > { %5078 = vmatpush3.bf16.msra.mxu0 %v5075_v56 }
 0x6dd   : > { %4901 = vmatmul.mubr.f32.vlgmr.msra.gmra.mrb[112].mxu0 %v3383_v31  ;;  %3446 = vperm.xlu1 %5139, %v5487_v47  }
 0x6e1   : > { %3456 = vperm.xlu1 %5139, %v5491_v32  }
 0x738   : > { %v3392_v0 = vpop.permute.xlu1 %3391 }
 0x739   : > { %v3465_v10 = vmul.f32 %v3392_v0, %v7402_v16  ;;  %v3387_v41 = vpop.permute.xlu0 %3386  ;;  %v3683_v0 = vld [vmem:[%s7746_s6 + $0x8] sm:$0xff] }
 0x73a   : > { %v3464_v17 = vmul.f32 %v3387_v41, %v7398_v20 }
 0x73c   : > { %v5015_v2 = vpack.c.bf16 %v3465_v10, %v3464_v17  ;;  %v3402_v62 = vpop.permute.xlu1 %3401  ;;  %v3687_v10 = vld [vmem:[%s7746_s6 + $0x28] sm:$0xff]  ;;  %v3682_v17 = vld [vmem:[%s7746_s6] sm:$0xff] }
 0x73d   : > { %v3467_v9 = vmul.f32 %v3402_v62, %v7416_v53  ;;  %v5079_v41 = vpack.c.bf16 %v3687_v10, %v3683_v0 }
 0x73e   : > { %5016 = vmatprep.subr.bf16.mxu1 %v5015_v2 }
 0x73f   : > { %5018 = vmatpush3.bf16.msra.mxu1 %v5015_v2  ;;  %v3686_v2 = vld [vmem:[%s7746_s6 + $0x20] sm:$0xff] }
 0x740   : > { %v3397_v6 = vpop.permute.xlu1 %3396  ;;  %v5081_v62 = vpack.c.bf16 %v3686_v2, %v3682_v17 }
 0x741   : > { %v3466_v4 = vmul.f32 %v3397_v6, %v7412_v13  ;;  %v3691_v6 = vld [vmem:[%s7746_s6 + $0x48] sm:$0xff] }
 0x743   : > { %v5019_v25 = vpack.c.bf16 %v3467_v9, %v3466_v4  ;;  %v3695_v9 = vld [vmem:[%s7746_s6 + $0x68] sm:$0xff] }
 0x744   : > { %v3412_v14 = vpop.permute.xlu1 %3411  ;;  %v5083_v4 = vpack.c.bf16 %v3695_v9, %v3691_v6 }
 0x745   : > { %5020 = vmatprep.subr.bf16.mxu1 %v5019_v25  ;;  %v3469_v18 = vmul.f32 %v3412_v14, %v7430_v45  ;;  %v3694_v14 = vld [vmem:[%s7746_s6 + $0x60] sm:$0xff] }
 0x746   : > { %5022 = vmatpush3.bf16.msra.mxu1 %v5019_v25  ;;  %v3690_v25 = vld [vmem:[%s7746_s6 + $0x40] sm:$0xff] }
 0x748   : > { %v3407_v37 = vpop.permute.xlu1 %3406  ;;  %v3432_v20 = vpop.permute.xlu0 %3431 }
 0x749   : > { %v3468_v16 = vmul.f32 %v3407_v37, %v7426_v52  ;;  %v3473_v58 = vmul.f32 %v3432_v20, %v7458_v12  ;;  %v5085_v37 = vpack.c.bf16 %v3694_v14, %v3690_v25 }
 0x74b   : > { %v5023_v57 = vpack.c.bf16 %v3469_v18, %v3468_v16  ;;  %v5631_v18 = vmov 0.0   ;;  %v3685_v16 = vld [vmem:[%s7746_s6 + $0x18] sm:$0xff] }
 0x74c   : > { %v3422_v27 = vpop.permute.xlu1 %3421  ;;  %v3442_v13 = vpop.permute.xlu0 %3441 }
 0x74d   : > { %5024 = vmatprep.subr.bf16.mxu1 %v5023_v57  ;;  %v3471_v39 = vmul.f32 %v3422_v27, %v7444_v42  ;;  %v3475_v1 = vmul.f32 %v3442_v13, %v7472_v11 }
 0x74e   : > { %5026 = vmatpush3.bf16.msra.mxu1 %v5023_v57  ;;  %v3689_v57 = vld [vmem:[%s7746_s6 + $0x38] sm:$0xff] }
 0x74f   : > { %v5087_v20 = vpack.c.bf16 %v3689_v57, %v3685_v16 }
 0x750   : > { %v3417_v26 = vpop.permute.xlu1 %3416  ;;  %v3452_v45 = vpop.permute.xlu0 %3451 }
 0x751   : > { %v3470_v53 = vmul.f32 %v3417_v26, %v7440_v34  ;;  %v3477_v28 = vmul.f32 %v3452_v45, %v7486_v55  ;;  %v3684_v45 = vld [vmem:[%s7746_s6 + $0x10] sm:$0xff] }
 0x753   : > { %v5027_v29 = vpack.c.bf16 %v3471_v39, %v3470_v53 }
 0x754   : > { %v3427_v33 = vpop.permute.xlu1 %3426  ;;  %v3462_v12 = vpop.permute.xlu0 %3461 }
 0x755   : > { %v3472_v63 = vmul.f32 %v3427_v33, %v7454_v35  ;;  %5028 = vmatprep.subr.bf16.mxu1 %v5027_v29  ;;  %v3479_v22 = vmul.f32 %v3462_v12, %v7498_v49 }
 0x756   : > { %5030 = vmatpush3.bf16.msra.mxu1 %v5027_v29 }
 0x757   : > { %v5031_v52 = vpack.c.bf16 %v3473_v58, %v3472_v63  ;;  %v4158_v63 = vld [vmem:[%s7748_s8 + $0x8] ss:$0 sm:$0xff] }
 0x758   : > { %v3437_v36 = vpop.permute.xlu1 %3436 }
 0x759   : > { %v3474_v40 = vmul.f32 %v3437_v36, %v7468_v24  ;;  %5032 = vmatprep.subr.bf16.mxu1 %v5031_v52  ;;  %v3688_v36 = vld [vmem:[%s7746_s6 + $0x30] sm:$0xff] }
 0x75a   : > { %5034 = vmatpush3.bf16.msra.mxu1 %v5031_v52 }
 0x75b   : > { %v5035_v42 = vpack.c.bf16 %v3475_v1, %v3474_v40  ;;  %v4159_v40 = vld [vmem:[%s7748_s8 + $0x9] ss:$0 sm:$0xff] }
 0x75c   : > { %v3447_v34 = vpop.permute.xlu1 %3446 }
 0x75d   : > { %v3476_v50 = vmul.f32 %v3447_v34, %v7482_v19  ;;  %5036 = vmatprep.subr.bf16.mxu1 %v5035_v42  ;;  %v3697_v34 = vld [vmem:[%s7746_s6 + $0x78] sm:$0xff] }
 0x75e   : > { %5038 = vmatpush3.bf16.msra.mxu1 %v5035_v42  ;;  %v3693_v42 = vld [vmem:[%s7746_s6 + $0x58] sm:$0xff] }
 0x75f   : > { %v5039_v35 = vpack.c.bf16 %v3477_v28, %v3476_v50  ;;  %v5089_v50 = vpack.c.bf16 %v3688_v36, %v3684_v45 }
 0x760   : > { %v3457_v54 = vpop.permute.xlu1 %3456 }
 0x761   : > { %v3478_v23 = vmul.f32 %v3457_v54, %v7495_v15  ;;  %5040 = vmatprep.subr.bf16.mxu1 %v5039_v35  ;;  %v5091_v54 = vpack.c.bf16 %v3697_v34, %v3693_v42 }
 0x762   : > { %5042 = vmatpush3.bf16.msra.mxu1 %v5039_v35 }
 0x763   : > { %v5043_v24 = vpack.c.bf16 %v3479_v22, %v3478_v23  ;;  %v3692_v22 = vld [vmem:[%s7746_s6 + $0x50] sm:$0xff] }
 0x764   : > { %v3696_v23 = vld [vmem:[%s7746_s6 + $0x70] sm:$0xff] }
 0x765   : > { %5044 = vmatprep.subr.bf16.mxu1 %v5043_v24 }
 0x766   : > { %5046 = vmatpush3.bf16.msra.mxu1 %v5043_v24  ;;  %v5093_v24 = vpack.c.bf16 %v3696_v23, %v3692_v22 }
 0x767   : > { %5080 = vmatprep.subr.bf16.mxu1 %v5079_v41 }
 0x769   : > { %4866 = vmatmul.mubr.f32.vlgmr.msra.gmra.mrb[80].mxu1 %v3383_v31 }
 0x76a   : > { %5082 = vmatpush1.bf16.msra.mxu1 %v5081_v62  ;;  %3790 = vmatprep.mubr.f32.mxu1 %v5631_v18 }
 0x76b   : > { %5084 = vmatprep.subr.bf16.mxu1 %v5083_v4 }
 0x76e   : > { %5086 = vmatpush1.bf16.msra.mxu1 %v5085_v37 }
 0x76f   : > { %5088 = vmatprep.subr.bf16.mxu1 %v5087_v20 }
 0x7b0   : > { %v4902_v11 = vpop.f32.mrb[112].mxu0 }
 0x7b1   : > { %v3627_v5 = vadd.f32 1e-08, %v4902_v11  ;;  %v3621_v55 = vpop.f32.mrb[113].mxu0 }
 0x7b2   : > { %v3622_v61 = vadd.f32 1e-08, %v3621_v55 }
 0x7b3   : > { %5492 = vrcp.f32 %v3627_v5  ;;  %v3700_v5 = vlaneseq }
 0x7b4   : > { %5494 = vrcp.f32 %v3622_v61 }
 0x7b5   : > { %v3701_v55 = vshrl.u32 %v3700_v5, 7 }
 0x7b7   : > { %v3702_v61 = vsub.s32 0, %v3701_v55 }
 0x7bd   : > { %v5493_v19 = vpop.eup %5492 }
 0x7be   : > { %v5495_v8 = vpop.eup %5494  ;;  %3639 = vperm.xlu0 %5138, %v5493_v19   ;;  %v3698_v19 = vld [vmem:[%s7747_s7] sm:$0xf] }
 0x7bf   : > { %3634 = vperm.xlu1 %5139, %v5495_v8   ;;  %v3706_v8 = vsub.s32 1, %v3701_v55 }
 0x83c   : > { %v4867_v46 = vpop.f32.mrb[80].mxu1 }
 0x83d   : > { %v3640_v49 = vpop.permute.xlu0 %3639  ;;  %v3546_v51 = vpop.f32.mrb[81].mxu1 }
 0x83e   : > { %v3643_v15 = vmul.f32 %v4867_v46, %v3640_v49  ;;  %v3635_v7 = vpop.permute.xlu1 %3634  ;;  %v3703_v46 = vrot.slane %v3698_v19, %v3702_v61  ;;  %v3707_v49 = vrot.slane %v3698_v19, %v3706_v8 }
 0x83f   : > { %v3642_v38 = vmul.f32 %v3635_v7, %v3546_v51 }
 0x840   : > { %v3647_v21 = vsel %vm462_vm0, %v3643_v15, 0.0 }
 0x841   : > { %3648 = vadd.xlane.f32.xlu0 %v3647_v21  ;;  %v3644_v43 = vsel %vm462_vm0, %v3642_v38, 0.0 }
 0x842   : > { %3645 = vadd.xlane.f32.xlu1 %v3644_v43  ;;  %v3714_v43 = vsub.s32 3, %v3701_v55 }
 0x8ce   : > { %v3649_v30 = vpop.xlane.xlu0 %3648 }
 0x8cf   : > { %v3651_v3 = vmul.f32 0.03125, %v3649_v30  ;;  %v3646_v44 = vpop.xlane.xlu1 %3645 }
 0x8d0   : > { %v3650_v47 = vmul.f32 0.03125, %v3646_v44 }
 0x8d1   : > { %v3653_v59 = vsub.f32 %v3643_v15, %v3651_v3 }
 0x8d2   : > { %v3652_v48 = vsub.f32 %v3642_v38, %v3650_v47  ;;  %v3710_v38 = vsub.s32 2, %v3701_v55 }
 0x8d3   : > { %v3655_v32 = vmul.f32 %v3653_v59, %v3653_v59 }
 0x8d4   : > { %v3654_v56 = vmul.f32 %v3652_v48, %v3652_v48 }
 0x8d5   : > { %v3659_v60 = vsel %vm462_vm0, %v3655_v32, 0.0  ;;  %v3711_v32 = vrot.slane %v3698_v19, %v3710_v38 }
 0x8d6   : > { %3660 = vadd.xlane.f32.xlu1 %v3659_v60  ;;  %v3656_v31 = vsel %vm462_vm0, %v3654_v56, 0.0 }
 0x8d7   : > { %3657 = vadd.xlane.f32.xlu0 %v3656_v31  ;;  %v3715_v31 = vrot.slane %v3698_v19, %v3714_v43 }
 0x963   : > { %v3661_v27 = vpop.xlane.xlu1 %3660 }
 0x964   : > { %v3663_v26 = vmul.f32 0.03125, %v3661_v27  ;;  %v3658_v39 = vpop.xlane.xlu0 %3657 }
 0x965   : > { %v3662_v53 = vmul.f32 0.03125, %v3658_v39 }
 0x966   : > { %v3665_v13 = vadd.f32 1e-05, %v3663_v26 }
 0x967   : > { %v3664_v29 = vadd.f32 1e-05, %v3662_v53 }
 0x968   : > { %5496 = vrsqrt.f32 %v3665_v13 }
 0x969   : > { %5498 = vrsqrt.f32 %v3664_v29 }
 0x972   : > { %v5497_v33 = vpop.eup %5496 }
 0x973   : > { %v5499_v58 = vpop.eup %5498  ;;  %v3669_v1 = vmul.f32 %v5497_v33, %v3653_v59 }
 0x974   : > { %v3668_v52 = vmul.f32 %v5499_v58, %v3652_v48 }
 0x975   : > { %v3675_v35 = vmul.f32 %v4158_v63, %v3669_v1 }
 0x976   : > { %v3674_v28 = vmul.f32 %v4158_v63, %v3668_v52 }
 0x977   : > { %v3681_v11 = vadd.f32 %v4159_v40, %v3675_v35 }
 0x978   : > { %v3680_v12 = vadd.f32 %v4159_v40, %v3674_v28 }
 0x97a   : > { %4160 = vmatmul.mubr.msk.f32.vlgmr.msra.gmra.mrb[82].mxu1 %vm462_vm0, %v3680_v12 }
 0x97b   : > { %5090 = vmatpush1.bf16.msra.mxu1 %v5089_v50  ;;  %3796 = vmatprep.mubr.f32.mxu1 %v5631_v18 }
 0x97c   : > { %5092 = vmatprep.subr.bf16.mxu1 %v5091_v54 }
 0x97e   : > { %4161 = vmatmul.mubr.msk.f32.gmra.mrb[84].mxu1 %vm462_vm0, %v3681_v11 }
 0x97f   : > { %5094 = vmatpush1.bf16.msra.mxu1 %v5093_v24  ;;  %3867 = vmatprep.mubr.f32.mxu1 %v5631_v18 }
 0x982   : > { %4162 = vmatmul.mubr.msk.f32.vlgmr.msra.gmra.mrb[86].mxu1 %vm462_vm0, %v3680_v12 }
 0x983   : > { %3873 = vmatprep.mubr.f32.mxu1 %v5631_v18 }
 0x986   : > { %4163 = vmatmul.mubr.msk.f32.gmra.mrb[88].mxu1 %vm462_vm0, %v3681_v11 }
 0xa4d   : > { %v3792_v51 = vpop.f32.mrb[82].mxu1 }
 0xa4e   : > { %v3793_v15 = vadd.f32 %v3792_v51, %v3703_v46  ;;  %v3794_v7 = vpop.f32.mrb[83].mxu1 }
 0xa4f   : > { %v3795_v21 = vadd.f32 %v3794_v7, %v3707_v49 }
 0xa50   : > { %vm3880_vm2 = vcmp.gt.f32.partialorder %v3793_v15, 0.0  ;;  %v3888_v30 = vmul.f32 0.2, %v3793_v15 }
 0xa51   : > { %vm3881_vm3 = vcmp.gt.f32.partialorder %v3795_v21, 0.0  ;;  %v3889_v3 = vmul.f32 0.2, %v3795_v21  ;;  %v3798_v44 = vpop.f32.mrb[84].mxu1 }
 0xa52   : > { %v3896_v47 = vsel %vm3880_vm2, %v3793_v15, %v3888_v30  ;;  %v3799_v59 = vadd.f32 %v3798_v44, %v3703_v46  ;;  %v3800_v48 = vpop.f32.mrb[85].mxu1 }
 0xa53   : > { %3904 = vst [vmem:[%s7678_s16] sm:$0xff] %v3896_v47  ;;  %v3897_v56 = vsel %vm3881_vm3, %v3795_v21, %v3889_v3  ;;  %v3801_v60 = vadd.f32 %v3800_v48, %v3707_v49 }
 0xa54   : > { %3905 = vst [vmem:[%s7678_s16 + $0x8] sm:$0xff] %v3897_v56  ;;  %vm3884_vm4 = vcmp.gt.f32.partialorder %v3799_v59, 0.0  ;;  %v3892_v0 = vmul.f32 0.2, %v3799_v59 }
 0xa55   : > { %vm3885_vm5 = vcmp.gt.f32.partialorder %v3801_v60, 0.0  ;;  %v3893_v10 = vmul.f32 0.2, %v3801_v60  ;;  %v3869_v41 = vpop.f32.mrb[86].mxu1 }
 0xa56   : > { %v3900_v17 = vsel %vm3884_vm4, %v3799_v59, %v3892_v0  ;;  %v3870_v2 = vadd.f32 %v3869_v41, %v3711_v32  ;;  %v3871_v62 = vpop.f32.mrb[87].mxu1 }
 0xa57   : > { %3908 = vst [vmem:[%s7678_s16 + $0x20] sm:$0xff] %v3900_v17  ;;  %v3901_v6 = vsel %vm3885_vm5, %v3801_v60, %v3893_v10  ;;  %v3872_v9 = vadd.f32 %v3871_v62, %v3715_v31 }
 0xa58   : > { %3909 = vst [vmem:[%s7678_s16 + $0x28] sm:$0xff] %v3901_v6  ;;  %vm3882_vm6 = vcmp.gt.f32.partialorder %v3870_v2, 0.0  ;;  %v3890_v4 = vmul.f32 0.2, %v3870_v2 }
 0xa59   : > { %vm3883_vm7 = vcmp.gt.f32.partialorder %v3872_v9, 0.0  ;;  %v3891_v25 = vmul.f32 0.2, %v3872_v9  ;;  %v3875_v14 = vpop.f32.mrb[88].mxu1 }
 0xa5a   : > { %v3898_v37 = vsel %vm3882_vm6, %v3870_v2, %v3890_v4  ;;  %v3876_v18 = vadd.f32 %v3875_v14, %v3711_v32  ;;  %v3877_v16 = vpop.f32.mrb[89].mxu1 }
 0xa5b   : > { %3906 = vst [vmem:[%s7678_s16 + $0x10] sm:$0xff] %v3898_v37  ;;  %v3899_v57 = vsel %vm3883_vm7, %v3872_v9, %v3891_v25  ;;  %v3878_v20 = vadd.f32 %v3877_v16, %v3715_v31 }
 0xa5c   : > { %3907 = vst [vmem:[%s7678_s16 + $0x18] sm:$0xff] %v3899_v57  ;;  %vm3886_vm8 = vcmp.gt.f32.partialorder %v3876_v18, 0.0  ;;  %v3894_v27 = vmul.f32 0.2, %v3876_v18 }
 0xa5d   : > { %vm3887_vm9 = vcmp.gt.f32.partialorder %v3878_v20, 0.0  ;;  %v3895_v26 = vmul.f32 0.2, %v3878_v20 }
 0xa5e   : > { %v3902_v39 = vsel %vm3886_vm8, %v3876_v18, %v3894_v27 }
 0xa5f   : > { %3910 = vst [vmem:[%s7678_s16 + $0x30] sm:$0xff] %v3902_v39  ;;  %v3903_v53 = vsel %vm3887_vm9, %v3878_v20, %v3895_v26 }
 0xa60   : > { %3911 = vst [vmem:[%s7678_s16 + $0x38] sm:$0xff] %v3903_v53 }
 0xa61   : > { %5579 = shalt.err (!%p5576_p3)
}
 0xa62   : > { %s5580_s29 = scalar_lea.hbm %s7691_s0, 1024  ;;  %s5584_s17 = scalar_lea.hbm %s7752_s12, 2048 }
 0xa63   : > { %p5581_p4 = scmp.ne.s32.totalorder %s7691_s0, %s5580_s29  ;;  %p5585_p9 = scmp.lt.u32.totalorder %s7691_s0, %s7752_s12 }
 0xa64   : > { %p5586_p10 = scmp.lt.u32.totalorder %s5584_s17, %s5580_s29  ;;  %p5588_p12 = scmp.lt.u32.totalorder %s5580_s29, %s7691_s0 }
 0xa65   : > { %p5582_p7 = pnand %p5581_p4, %p5738_p5 }
 0xa66   : > { %p5587_p11 = por %p5586_p10, %p5585_p9 }
 0xa67   : > { %p5583_p8 = pneg %p5582_p7 }
 0xa68   : > { %p5589_p13 = por %p5588_p12, %p5587_p11 }
 0xa6a   : > { %p5590_p0 = pnand %p5589_p13, %p5583_p8 }
 0xa6c   : > { %5593 = shalt.err (!%p5590_p0)
}
 0xa6d   : > { %s5633_s20 = smov 512   ;;  %s5634_s30 = smov 32  }
 0xa6e   : > { %5095 = dma.vmem_to_hbm [thread:$0]  (%p5738_p5), %s7693_s28, 1024, %s7691_s0, %s7699_s25, %s5633_s20, %s5633_s20, %s5634_s30  }
 0xa6f PF: > { %p5101_p1 = scmp.ge.s32.totalorder %s5628_s24, 2  ;;  %s3942_s15 = sand.u32 1, %s5616_s21  }
 0xa70   : > { %s3943_s29 = scalar_lea.sflag [#allocation3], %s3942_s15 }
 0xa71   : > { %p5098_p2 = pnand %p5101_p1, %p5742_p6 }
 0xa73   : > { %5611 = dma.done.wait (!%p5098_p2), %s3943_s29, 1024  }
 0xa74   : > { %5613 = vsyncadd (!%p5098_p2), %s3943_s29, 4294966272  ;;  %s7808_s16 = sld [smem:[#allocation5_spill]]  ;;  %p22_p3 = scmp.ge.s32.totalorder %s5725_s27, 4  }
 0xa75   : > { %s7809_s21 = smov %s5620_s22  ;;  %s7810_s22 = smov %s5624_s23 }
 0xa76   : > { %s7812_s24 = smov %s5725_s27  ;;  %24 = sbr.rel (!%p22_p3) target bundleno = 5 (0x5), region = 106 }
 0xa7a   : > { %s7811_s23 = smov %s7808_s16 }
 0xa7d   :  { %3948 = vsyncpa [#allocation3], 1 }
 0xa7e   :  { %3950 = vsyncpa [#allocation3 + $0x1], 1 }

</bundles_post_ra>
